<compile_context>
chip_gen: v7x
topology: tpu7x:2x2x1
jax: 0.10.0
libtpu: 0.0.40
codegen_flags: <defaults>
</compile_context>

<pallas_src>
from functools import partial

import jax
import jax.numpy as jnp
from jax.experimental import pallas as pl
from jax.experimental.pallas import tpu as pltpu


# ---------------------------------------------------------------------------
# Kernel: one batch tile through the whole MLP (all dims lane-dense).
# ---------------------------------------------------------------------------
def mlp_kernel(x_ref, w1_ref, b1_ref, w2_ref, b2_ref, w3_ref, b3_ref, o_ref):
    # Layer 1: (TB, in) @ (in, h1p) + (1, h1p), ReLU.  f32 accumulation.
    x = x_ref[...].astype(w1_ref.dtype)          # no-op for f32 weights
    h = jnp.dot(x, w1_ref[...], preferred_element_type=jnp.float32)
    h = jnp.maximum(h + b1_ref[...], 0.0)        # bias/ReLU in f32 (VPU)
    # Layer 2: (TB, h1p) @ (h1p, h2p) + (1, h2p), ReLU.
    h = jnp.dot(h.astype(w2_ref.dtype), w2_ref[...],
                preferred_element_type=jnp.float32)
    h = jnp.maximum(h + b2_ref[...], 0.0)
    # Output layer: (TB, h2p) @ (h2p, out_pad) + (1, out_pad), no activation.
    # out_pad is a multiple of 128 -> unmasked, lane-dense store.
    h = jnp.dot(h.astype(w3_ref.dtype), w3_ref[...],
                preferred_element_type=jnp.float32)
    o_ref[...] = (h + b3_ref[...]).astype(o_ref.dtype)


def _round_up(n, m):
    return ((n + m - 1) // m) * m


# ---------------------------------------------------------------------------
# One-time parameter preparation (do NOT call per forward pass).
#   PyTorch convention in : w (out, in), b (out,)
#   Kernel-ready layout   : wT (in, out), b (1, out); hidden and output
#   widths zero-padded to multiples of 128 lanes.
#   param_dtype=jnp.bfloat16 recommended on v6e/v7x at realistic layer sizes
#   (halves weight DMA/VMEM, unlocks bf16 MXU); f32 kept here for the strict
#   correctness check.
# ---------------------------------------------------------------------------
def prepare_params(params, *, lane=128, param_dtype=jnp.float32):
    w1, b1 = params["w1"], params["b1"]
    w2, b2 = params["w2"], params["b2"]
    w3, b3 = params["w3"], params["b3"]

    in_f = int(w1.shape[1])
    h1, h2, out_f = int(w1.shape[0]), int(w2.shape[0]), int(w3.shape[0])
    h1p = _round_up(max(h1, lane), lane)
    h2p = _round_up(max(h2, lane), lane)
    outp = _round_up(max(out_f, lane), lane)

    def pad2(a, shape):
        buf = jnp.zeros(shape, jnp.float32)
        return buf.at[: a.shape[0], : a.shape[1]].set(a)

    return {
        "w1t": pad2(w1.T, (in_f, h1p)).astype(param_dtype),   # (in, h1p)
        "b1": jnp.zeros((1, h1p), jnp.float32).at[:, :h1].set(b1),
        "w2t": pad2(w2.T, (h1p, h2p)).astype(param_dtype),    # (h1p, h2p)
        "b2": jnp.zeros((1, h2p), jnp.float32).at[:, :h2].set(b2),
        "w3t": pad2(w3.T, (h2p, outp)).astype(param_dtype),   # (h2p, out_pad)
        "b3": jnp.zeros((1, outp), jnp.float32).at[:, :out_f].set(b3),
        "out_features": out_f,                                 # static python int
    }


# ---------------------------------------------------------------------------
# Forward wrapper: fixed batch tile, resident single-buffered weights.
# ---------------------------------------------------------------------------
def _resident_spec(shape):
    """Constant-index operand: single-buffered (no overlap benefit from 2)."""
    index_map = lambda i: (0,) * len(shape)
    try:
        return pl.BlockSpec(shape, index_map, pipeline_mode=pl.Buffered(1))
    except TypeError:  # older jax without pipeline_mode kwarg
        return pl.BlockSpec(shape, index_map)


@partial(jax.jit, static_argnames=("out_features", "tb"))
def _mlp_forward(x, w1t, b1, w2t, b2, w3t, b3, *, out_features, tb=1024):
    B, in_f = x.shape
    out_pad = w3t.shape[1]
    grid = (pl.cdiv(B, tb),)  # ragged last block is masked by Pallas

    out = pl.pallas_call(
        mlp_kernel,
        out_shape=jax.ShapeDtypeStruct((B, out_pad), x.dtype),
        grid=grid,
        in_specs=[
            pl.BlockSpec((tb, in_f), lambda i: (i, 0)),   # x: tiled over batch
            _resident_spec(w1t.shape), _resident_spec(b1.shape),
            _resident_spec(w2t.shape), _resident_spec(b2.shape),
            _resident_spec(w3t.shape), _resident_spec(b3.shape),
        ],
        out_specs=pl.BlockSpec((tb, out_pad), lambda i: (i, 0)),
        compiler_params=pltpu.CompilerParams(
            dimension_semantics=("parallel",),        # shard batch over TCs
            vmem_limit_bytes=64 * 1024 * 1024,        # headroom for big tiles
        ),
    )(x, w1t, b1, w2t, b2, w3t, b3)

    # Column slice only (rows already exact).  Skip this and consume the
    # padded buffer directly if writeback becomes the binding resource.
    return out[:, :out_features]


def mlp_forward(x, kp, *, tb=1024):
    return _mlp_forward(
        x, kp["w1t"], kp["b1"], kp["w2t"], kp["b2"], kp["w3t"], kp["b3"],
        out_features=kp["out_features"], tb=tb)


# ---------------------------------------------------------------------------
# Init + pure-JAX reference (PyTorch nn.Linear default init convention).
# ---------------------------------------------------------------------------
def init_params(key, in_features, h1, h2, out_features):
    ks = jax.random.split(key, 6)

    def linear(kw, kb, fan_in, fan_out):
        bound = 1.0 / jnp.sqrt(fan_in)
        w = jax.random.uniform(kw, (fan_out, fan_in), jnp.float32, -bound, bound)
        b = jax.random.uniform(kb, (fan_out,), jnp.float32, -bound, bound)
        return w, b

    w1, b1 = linear(ks[0], ks[1], in_features, h1)
    w2, b2 = linear(ks[2], ks[3], h1, h2)
    w3, b3 = linear(ks[4], ks[5], h2, out_features)
    return {"w1": w1, "b1": b1, "w2": w2, "b2": b2, "w3": w3, "b3": b3}


def mlp_reference(x, p):
    h = jnp.maximum(x @ p["w1"].T + p["b1"], 0.0)
    h = jnp.maximum(h @ p["w2"].T + p["b2"], 0.0)
    return h @ p["w3"].T + p["b3"]


if __name__ == "__main__":
    key = jax.random.PRNGKey(0)
    k_x, k_x2, k_p = jax.random.split(key, 3)

    in_features, h1, h2, out_features = 32, 64, 32, 2
    params = init_params(k_p, in_features, h1, h2, out_features)
    kernel_params = prepare_params(params)  # one-time transpose/pad

    # Case 1: small, sublane-aligned batch.
    x = jax.random.normal(k_x, (8, in_features), jnp.float32)
    out = jax.block_until_ready(mlp_forward(x, kernel_params))
    ref = mlp_reference(x, params)
    assert out.shape == (8, out_features)
    assert jnp.allclose(out, ref, atol=1e-5, rtol=1e-5)

    # Case 2: ragged batch (exercises Pallas-masked last block, same compile).
    x2 = jax.random.normal(k_x2, (10, in_features), jnp.float32)
    out2 = jax.block_until_ready(mlp_forward(x2, kernel_params))
    ref2 = mlp_reference(x2, params)
    assert out2.shape == (10, out_features)
    assert jnp.allclose(out2, ref2, atol=1e-5, rtol=1e-5)

    print("KERNEL_OK")
</pallas_src>

<mosaic_0001>
module attributes {stable_mosaic.version = 11 : i64} {
  func.func @mlp_kernel(%arg0: i32, %arg1: memref<1024x32xf32, #tpu.memory_space<vmem>>, %arg2: memref<32x128xf32, #tpu.memory_space<vmem>>, %arg3: memref<1x128xf32, #tpu.memory_space<vmem>>, %arg4: memref<128x128xf32, #tpu.memory_space<vmem>>, %arg5: memref<1x128xf32, #tpu.memory_space<vmem>>, %arg6: memref<128x128xf32, #tpu.memory_space<vmem>>, %arg7: memref<1x128xf32, #tpu.memory_space<vmem>>, %arg8: memref<1024x128xf32, #tpu.memory_space<vmem>>) attributes {dimension_semantics = [#tpu.dimension_semantics<parallel>], iteration_bounds = array<i64: 1>, scalar_prefetch = 0 : i64, scratch_operands = 0 : i64, tpu.core_type = #tpu.core_type<tc>, window_params = [{transform_indices = @transform_0, window_bounds = array<i64: 1024, 32>}, {pipeline_mode = #tpu.pipeline_mode<synchronous>, transform_indices = @transform_1, window_bounds = array<i64: 32, 128>}, {pipeline_mode = #tpu.pipeline_mode<synchronous>, transform_indices = @transform_2, window_bounds = array<i64: 1, 128>}, {pipeline_mode = #tpu.pipeline_mode<synchronous>, transform_indices = @transform_3, window_bounds = array<i64: 128, 128>}, {pipeline_mode = #tpu.pipeline_mode<synchronous>, transform_indices = @transform_4, window_bounds = array<i64: 1, 128>}, {pipeline_mode = #tpu.pipeline_mode<synchronous>, transform_indices = @transform_5, window_bounds = array<i64: 128, 128>}, {pipeline_mode = #tpu.pipeline_mode<synchronous>, transform_indices = @transform_6, window_bounds = array<i64: 1, 128>}, {transform_indices = @transform_7, window_bounds = array<i64: 1024, 128>}]} {
    %c0 = arith.constant 0 : index
    %c0_0 = arith.constant 0 : index
    %0 = vector.load %arg1[%c0, %c0_0] : memref<1024x32xf32, #tpu.memory_space<vmem>>, vector<1024x32xf32>
    %c0_1 = arith.constant 0 : index
    %c0_2 = arith.constant 0 : index
    %1 = vector.load %arg2[%c0_1, %c0_2] : memref<32x128xf32, #tpu.memory_space<vmem>>, vector<32x128xf32>
    %cst = arith.constant dense<0.000000e+00> : vector<1024x128xf32>
    %2 = tpu.matmul %0, %1, %cst {dimension_numbers = #tpu.dot_dimension_numbers<[1], [0], [0], [1], [0, 0, 1, 1], [], []>} : vector<1024x32xf32>, vector<32x128xf32>, vector<1024x128xf32> -> vector<1024x128xf32>
    %c0_3 = arith.constant 0 : index
    %c0_4 = arith.constant 0 : index
    %3 = vector.load %arg3[%c0_3, %c0_4] : memref<1x128xf32, #tpu.memory_space<vmem>>, vector<1x128xf32>
    %4 = vector.broadcast %3 : vector<1x128xf32> to vector<1024x128xf32>
    %5 = arith.addf %2, %4 : vector<1024x128xf32>
    %cst_5 = arith.constant 0.000000e+00 : f32
    %6 = vector.broadcast %cst_5 : f32 to vector<1024x128xf32>
    %7 = arith.maximumf %5, %6 : vector<1024x128xf32>
    %c0_6 = arith.constant 0 : index
    %c0_7 = arith.constant 0 : index
    %8 = vector.load %arg4[%c0_6, %c0_7] : memref<128x128xf32, #tpu.memory_space<vmem>>, vector<128x128xf32>
    %cst_8 = arith.constant dense<0.000000e+00> : vector<1024x128xf32>
    %9 = tpu.matmul %7, %8, %cst_8 {dimension_numbers = #tpu.dot_dimension_numbers<[1], [0], [0], [1], [0, 0, 1, 1], [], []>} : vector<1024x128xf32>, vector<128x128xf32>, vector<1024x128xf32> -> vector<1024x128xf32>
    %c0_9 = arith.constant 0 : index
    %c0_10 = arith.constant 0 : index
    %10 = vector.load %arg5[%c0_9, %c0_10] : memref<1x128xf32, #tpu.memory_space<vmem>>, vector<1x128xf32>
    %11 = vector.broadcast %10 : vector<1x128xf32> to vector<1024x128xf32>
    %12 = arith.addf %9, %11 : vector<1024x128xf32>
    %cst_11 = arith.constant 0.000000e+00 : f32
    %13 = vector.broadcast %cst_11 : f32 to vector<1024x128xf32>
    %14 = arith.maximumf %12, %13 : vector<1024x128xf32>
    %c0_12 = arith.constant 0 : index
    %c0_13 = arith.constant 0 : index
    %15 = vector.load %arg6[%c0_12, %c0_13] : memref<128x128xf32, #tpu.memory_space<vmem>>, vector<128x128xf32>
    %cst_14 = arith.constant dense<0.000000e+00> : vector<1024x128xf32>
    %16 = tpu.matmul %14, %15, %cst_14 {dimension_numbers = #tpu.dot_dimension_numbers<[1], [0], [0], [1], [0, 0, 1, 1], [], []>} : vector<1024x128xf32>, vector<128x128xf32>, vector<1024x128xf32> -> vector<1024x128xf32>
    %c0_15 = arith.constant 0 : index
    %c0_16 = arith.constant 0 : index
    %17 = vector.load %arg7[%c0_15, %c0_16] : memref<1x128xf32, #tpu.memory_space<vmem>>, vector<1x128xf32>
    %18 = vector.broadcast %17 : vector<1x128xf32> to vector<1024x128xf32>
    %19 = arith.addf %16, %18 : vector<1024x128xf32>
    %c0_17 = arith.constant 0 : index
    %c0_18 = arith.constant 0 : index
    %20 = vector.load %arg8[%c0_17, %c0_18] : memref<1024x128xf32, #tpu.memory_space<vmem>>, vector<1024x128xf32>
    tpu.vector_store %arg8[%c0_17, %c0_18], %19 {strides = array<i32>} : memref<1024x128xf32, #tpu.memory_space<vmem>>, vector<1024x128xf32>,
    return
  }
  func.func @transform_0(%arg0: i32) -> (i32, i32) {
    %c0_i32 = arith.constant 0 : i32
    %c0_i32_0 = arith.constant 0 : i32
    return %arg0, %c0_i32 : i32, i32
  }
  func.func @transform_1(%arg0: i32) -> (i32, i32) {
    %c0_i32 = arith.constant 0 : i32
    %c0_i32_0 = arith.constant 0 : i32
    %c0_i32_1 = arith.constant 0 : i32
    return %c0_i32, %c0_i32_0 : i32, i32
  }
  func.func @transform_2(%arg0: i32) -> (i32, i32) {
    %c0_i32 = arith.constant 0 : i32
    %c0_i32_0 = arith.constant 0 : i32
    %c0_i32_1 = arith.constant 0 : i32
    return %c0_i32, %c0_i32_0 : i32, i32
  }
  func.func @transform_3(%arg0: i32) -> (i32, i32) {
    %c0_i32 = arith.constant 0 : i32
    %c0_i32_0 = arith.constant 0 : i32
    %c0_i32_1 = arith.constant 0 : i32
    return %c0_i32, %c0_i32_0 : i32, i32
  }
  func.func @transform_4(%arg0: i32) -> (i32, i32) {
    %c0_i32 = arith.constant 0 : i32
    %c0_i32_0 = arith.constant 0 : i32
    %c0_i32_1 = arith.constant 0 : i32
    return %c0_i32, %c0_i32_0 : i32, i32
  }
  func.func @transform_5(%arg0: i32) -> (i32, i32) {
    %c0_i32 = arith.constant 0 : i32
    %c0_i32_0 = arith.constant 0 : i32
    %c0_i32_1 = arith.constant 0 : i32
    return %c0_i32, %c0_i32_0 : i32, i32
  }
  func.func @transform_6(%arg0: i32) -> (i32, i32) {
    %c0_i32 = arith.constant 0 : i32
    %c0_i32_0 = arith.constant 0 : i32
    %c0_i32_1 = arith.constant 0 : i32
    return %c0_i32, %c0_i32_0 : i32, i32
  }
  func.func @transform_7(%arg0: i32) -> (i32, i32) {
    %c0_i32 = arith.constant 0 : i32
    %c0_i32_0 = arith.constant 0 : i32
    return %arg0, %c0_i32 : i32, i32
  }
}

</mosaic_0001>

<bundles_post_ra>
// kernel: _mlp_forward.1
= control target key start
LH: loop header
LB: loop body
LE: loop exit
PB: predicated region body
PF: predicated region fallthrough
CT: control target
= control target key end

     0   :  { %12 = vsyncpa [#allocation3], 0  ;;  %s5568_s0 = inlined_call_operand.hbm [shape: f32[8,32], index: 0, kind: input, shape index: {}]   ;;  %s5569_s1 = inlined_call_operand.hbm [shape: f32[32,128], index: 1, kind: input, shape index: {}]   ;;  %s5570_s2 = inlined_call_operand.hbm [shape: f32[1,128], index: 2, kind: input, shape index: {}]   ;;  %s5571_s3 = inlined_call_operand.hbm [shape: f32[128,128], index: 3, kind: input, shape index: {}]   ;;  %s5572_s4 = inlined_call_operand.hbm [shape: f32[1,128], index: 4, kind: input, shape index: {}]   ;;  %s5573_s5 = inlined_call_operand.hbm [shape: f32[128,128], index: 5, kind: input, shape index: {}]   ;;  %s5574_s6 = inlined_call_operand.hbm [shape: f32[1,128], index: 6, kind: input, shape index: {}]   ;;  %s5575_s7 = inlined_call_operand.hbm [shape: f32[8,128], index: 7, kind: output, shape index: {}]  }
   0x1   :  { %13 = vsyncpa [#allocation6], 0 }
   0x2   :  { %14 = vsyncpa [#allocation9], 0 }
   0x3   :  { %15 = vsyncpa [#allocation12], 0 }
   0x4   :  { %16 = vsyncpa [#allocation4], 0 }
   0x5   :  { %21 = vsyncadd [#allocation3], 16256  ;;  %s4678_s24 = smov [#allocation5]   ;;  %s4679_s26 = smov [#allocation8]  }
   0x6   :  { %s34_s25 = sshll.u32 %s4678_s24, 4  ;;  %s56_s27 = sshll.u32 %s4679_s26, 4  ;;  %s35_s25 = int_to_ptr.vmem [resolvable:$true] %s34_s25  ;;  %s4728_s27 = int_to_ptr.vmem [resolvable:$true] %s56_s27 }
   0x7   :  { %s4492_s30 = scalar_lea.hbm %s5569_s1, 512 }
   0x8   :  { %p4493_p0 = scmp.ne.s32.totalorder %s5569_s1, %s4492_s30  ;;  %p4496_p1 = scmp.lt.u32.totalorder %s4492_s30, %s5569_s1 }
   0xa   :  { %p4498_p2 = pnand %p4496_p1, %p4493_p0 }
   0xc   :  { %4501 = shalt.err (!%p4498_p2)
}
   0xd   :  { %s4502_s12 = scalar_lea.vmem %s35_s25, 512  ;;  %p4507_p4 = scmp.lt.s32.totalorder %s35_s25, %s35_s25 }
   0xe   :  { %p4503_p3 = scmp.ne.s32.totalorder %s35_s25, %s4502_s12  ;;  %p4508_p5 = scmp.lt.s32.totalorder %s4502_s12, %s4502_s12 }
  0x10   :  { %p4509_p6 = por %p4508_p5, %p4507_p4 }
  0x12   :  { %p4510_p7 = pnand %p4509_p6, %p4503_p3 }
  0x14   :  { %4513 = shalt.err (!%p4510_p7)
}
  0x15   :  { %s4680_s13 = smov 128   ;;  %s4681_s14 = smov 8  }
  0x16   :  { %40 = dma.hbm_to_vmem [thread:$0]  %s5569_s1, 512, %s35_s25, [#allocation6], %s4680_s13, %s4680_s13, %s4681_s14  }
  0x17   :  { %s4514_s19 = scalar_lea.hbm %s5571_s3, 2048 }
  0x18   :  { %p4515_p8 = scmp.ne.s32.totalorder %s5571_s3, %s4514_s19  ;;  %p4518_p9 = scmp.lt.u32.totalorder %s4514_s19, %s5571_s3 }
  0x1a   :  { %p4520_p10 = pnand %p4518_p9, %p4515_p8 }
  0x1c   :  { %4523 = shalt.err (!%p4520_p10)
}
  0x1d   :  { %s4524_s24 = scalar_lea.vmem %s4728_s27, 2048  ;;  %p4529_p12 = scmp.lt.s32.totalorder %s4728_s27, %s4728_s27 }
  0x1e   :  { %p4525_p11 = scmp.ne.s32.totalorder %s4728_s27, %s4524_s24  ;;  %p4530_p13 = scmp.lt.s32.totalorder %s4524_s24, %s4524_s24 }
  0x20   :  { %p4531_p0 = por %p4530_p13, %p4529_p12 }
  0x22   :  { %p4532_p1 = pnand %p4531_p0, %p4525_p11 }
  0x24   :  { %4535 = shalt.err (!%p4532_p1)
}
  0x25   :  { %62 = dma.hbm_to_vmem [thread:$0]  %s5571_s3, 2048, %s4728_s27, [#allocation9], %s4680_s13, %s4680_s13, %s4681_s14  }
  0x26   :  { %s4682_s26 = smov [#allocation11]   ;;  %s4683_s29 = smov [#allocation2]  }
  0x27   :  { %s78_s28 = sshll.u32 %s4682_s26, 4  ;;  %s22_s30 = sshll.u32 %s4683_s29, 4  ;;  %s79_s28 = int_to_ptr.vmem [resolvable:$true] %s78_s28  ;;  %s4765_s30 = int_to_ptr.vmem [resolvable:$true] %s22_s30 }
  0x28   :  { %s4536_s10 = scalar_lea.hbm %s5573_s5, 2048 }
  0x29   :  { %p4537_p2 = scmp.ne.s32.totalorder %s5573_s5, %s4536_s10  ;;  %p4540_p3 = scmp.lt.u32.totalorder %s4536_s10, %s5573_s5 }
  0x2b   :  { %p4542_p4 = pnand %p4540_p3, %p4537_p2 }
  0x2d   :  { %4545 = shalt.err (!%p4542_p4)
}
  0x2e   :  { %s4546_s3 = scalar_lea.vmem %s79_s28, 2048  ;;  %p4551_p6 = scmp.lt.s32.totalorder %s79_s28, %s79_s28 }
  0x2f   :  { %p4547_p5 = scmp.ne.s32.totalorder %s79_s28, %s4546_s3  ;;  %p4552_p7 = scmp.lt.s32.totalorder %s4546_s3, %s4546_s3 }
  0x31   :  { %p4553_p8 = por %p4552_p7, %p4551_p6 }
  0x33   :  { %p4554_p9 = pnand %p4553_p8, %p4547_p5 }
  0x35   :  { %4557 = shalt.err (!%p4554_p9)
}
  0x36   :  { %84 = dma.hbm_to_vmem [thread:$0]  %s5573_s5, 2048, %s79_s28, [#allocation12], %s4680_s13, %s4680_s13, %s4681_s14  }
  0x37   :  { %s4558_s20 = scalar_lea.hbm %s5568_s0, 128 }
  0x38   :  { %p4559_p10 = scmp.ne.s32.totalorder %s5568_s0, %s4558_s20  ;;  %p4562_p11 = scmp.lt.u32.totalorder %s4558_s20, %s5568_s0 }
  0x3a   :  { %p4564_p12 = pnand %p4562_p11, %p4559_p10 }
  0x3c   :  { %4567 = shalt.err (!%p4564_p12)
}
  0x3d   :  { %s4568_s1 = scalar_lea.vmem %s4765_s30, 128  ;;  %s4572_s5 = scalar_lea.vmem %s4765_s30, 16384 }
  0x3e   :  { %p4569_p13 = scmp.ne.s32.totalorder %s4765_s30, %s4568_s1  ;;  %p4573_p0 = scmp.lt.s32.totalorder %s4765_s30, %s4765_s30 }
  0x3f   :  { %p4574_p1 = scmp.lt.s32.totalorder %s4572_s5, %s4568_s1 }
  0x41   :  { %p4575_p2 = por %p4574_p1, %p4573_p0 }
  0x43   :  { %p4576_p3 = pnand %p4575_p2, %p4569_p13 }
  0x45   :  { %4579 = shalt.err (!%p4576_p3)
}
  0x46   :  { %28 = dma.hbm_to_vmem [thread:$0]  %s5568_s0, 128, %s4765_s30, [#allocation3], %s4680_s13, %s4680_s13, %s4681_s14  }
  0x47   :  { %s4684_s28 = smov [#allocation7]   ;;  %s4685_s8 = smov [#allocation10]  }
  0x48   :  { %s47_s29 = sshll.u32 %s4684_s28, 4  ;;  %s69_s9 = sshll.u32 %s4685_s8, 4  ;;  %s48_s29 = int_to_ptr.vmem [resolvable:$true] %s47_s29  ;;  %s70_s9 = int_to_ptr.vmem [resolvable:$true] %s69_s9 }
  0x49   :  { %s4580_s12 = scalar_lea.hbm %s5570_s2, 16 }
  0x4a   :  { %p4581_p4 = scmp.ne.s32.totalorder %s5570_s2, %s4580_s12  ;;  %p4584_p5 = scmp.lt.u32.totalorder %s4580_s12, %s5570_s2 }
  0x4c   :  { %p4586_p6 = pnand %p4584_p5, %p4581_p4 }
  0x4e   :  { %4589 = shalt.err (!%p4586_p6)
}
  0x4f   :  { %s4590_s0 = scalar_lea.vmem %s48_s29, 16  ;;  %s4594_s30 = scalar_lea.vmem %s48_s29, 32 }
  0x50   :  { %p4591_p7 = scmp.ne.s32.totalorder %s48_s29, %s4590_s0  ;;  %p4595_p8 = scmp.lt.s32.totalorder %s48_s29, %s48_s29 }
  0x51   :  { %p4596_p9 = scmp.lt.s32.totalorder %s4594_s30, %s4590_s0 }
  0x53   :  { %p4597_p10 = por %p4596_p9, %p4595_p8 }
  0x55   :  { %p4598_p11 = pnand %p4597_p10, %p4591_p7 }
  0x57   :  { %4601 = shalt.err (!%p4598_p11)
}
  0x58   :  { %50 = dma.hbm_to_vmem [thread:$0]  %s5570_s2, 16, %s48_s29, [#allocation6]  }
  0x59   :  { %s4602_s21 = scalar_lea.hbm %s5572_s4, 16 }
  0x5a   :  { %p4603_p12 = scmp.ne.s32.totalorder %s5572_s4, %s4602_s21  ;;  %p4606_p13 = scmp.lt.u32.totalorder %s4602_s21, %s5572_s4 }
  0x5c   :  { %p4608_p0 = pnand %p4606_p13, %p4603_p12 }
  0x5e   :  { %4611 = shalt.err (!%p4608_p0)
}
  0x5f   :  { %s4612_s5 = scalar_lea.vmem %s70_s9, 16  ;;  %s4616_s25 = scalar_lea.vmem %s70_s9, 32 }
  0x60   :  { %p4613_p1 = scmp.ne.s32.totalorder %s70_s9, %s4612_s5  ;;  %p4617_p2 = scmp.lt.s32.totalorder %s70_s9, %s70_s9 }
  0x61   :  { %p4618_p3 = scmp.lt.s32.totalorder %s4616_s25, %s4612_s5 }
  0x63   :  { %p4619_p4 = por %p4618_p3, %p4617_p2 }
  0x65   :  { %p4620_p5 = pnand %p4619_p4, %p4613_p1 }
  0x67   :  { %4623 = shalt.err (!%p4620_p5)
}
  0x68   :  { %72 = dma.hbm_to_vmem [thread:$0]  %s5572_s4, 16, %s70_s9, [#allocation9]  }
  0x69   :  { %s4686_s28 = smov [#allocation13]   ;;  %s4624_s11 = scalar_lea.hbm %s5574_s6, 16 }
  0x6a   :  { %s91_s29 = sshll.u32 %s4686_s28, 4  ;;  %p4625_p6 = scmp.ne.s32.totalorder %s5574_s6, %s4624_s11  ;;  %s92_s29 = int_to_ptr.vmem [resolvable:$true] %s91_s29 }
  0x6b   :  { %p4628_p7 = scmp.lt.u32.totalorder %s4624_s11, %s5574_s6 }
  0x6d   :  { %p4630_p8 = pnand %p4628_p7, %p4625_p6 }
  0x6f   :  { %4633 = shalt.err (!%p4630_p8)
}
  0x70   :  { %s4634_s27 = scalar_lea.vmem %s92_s29, 16  ;;  %s4638_s4 = scalar_lea.vmem %s92_s29, 32 }
  0x71   :  { %p4635_p9 = scmp.ne.s32.totalorder %s92_s29, %s4634_s27  ;;  %p4639_p10 = scmp.lt.s32.totalorder %s92_s29, %s92_s29 }
  0x72   :  { %p4640_p11 = scmp.lt.s32.totalorder %s4638_s4, %s4634_s27 }
  0x74   :  { %p4641_p12 = por %p4640_p11, %p4639_p10 }
  0x76   :  { %p4642_p13 = pnand %p4641_p12, %p4635_p9 }
  0x78   :  { %4645 = shalt.err (!%p4642_p13)
}
  0x79   :  { %94 = dma.hbm_to_vmem [thread:$0]  %s5574_s6, 16, %s92_s29, [#allocation12]  }
  0x7a   :  { %4668 = dma.done.wait [#allocation3], 16384  }
  0x7b   :  { %4669 = vsyncadd [#allocation3], 4294950912 }
  0x7c   :  { %4670 = dma.done.wait [#allocation6], 528  }
  0x7d   :  { %4671 = vsyncadd [#allocation6], 4294966768 }
  0x7e   :  { %4672 = dma.done.wait [#allocation9], 2064  }
  0x7f   :  { %4673 = vsyncadd [#allocation9], 4294965232 }
  0x80   :  { %4674 = dma.done.wait [#allocation12], 2064  }
  0x81   :  { %4675 = vsyncadd [#allocation12], 4294965232  ;;  %vm255_vm0 = vcmask 261120   ;;  %v244_v0 = vld [vmem:[#allocation5] sm:$0xff]  ;;  %v245_v1 = vld [vmem:[#allocation5 + $0x8] sm:$0xff] }
  0x82   :  { %v246_v2 = vld [vmem:[#allocation5 + $0x10] sm:$0xff]  ;;  %v4404_v3 = vpack.c.bf16 %v245_v1, %v244_v0  ;;  %v247_v4 = vld [vmem:[#allocation5 + $0x18] sm:$0xff]  ;;  %v116_v5 = vld [vmem:[#allocation2] sm:$0xff] }
  0x83   :  { %v4408_v6 = vpack.c.bf16 %v247_v4, %v246_v2  ;;  %3764 = vmatprep.mubr.msk.f32.mxu0 %vm255_vm0, %v116_v5  ;;  %v117_v7 = vld [vmem:[#allocation2 + $0x8] sm:$0xff]  ;;  %v118_v8 = vld [vmem:[#allocation2 + $0x10] sm:$0xff]  ;;  %v119_v9 = vld [vmem:[#allocation2 + $0x18] sm:$0xff] }
  0x84   :  { %4405 = vmatprep.subr.bf16.mxu0 %v4404_v3  ;;  %4476 = vmatprep.subr.bf16.mxu1 %v4404_v3  ;;  %v120_v10 = vld [vmem:[#allocation2 + $0x20] sm:$0xff]  ;;  %v121_v11 = vld [vmem:[#allocation2 + $0x28] sm:$0xff]  ;;  %v122_v12 = vld [vmem:[#allocation2 + $0x30] sm:$0xff] }
  0x85   :  { %4407 = vmatpush3.bf16.msra.mxu0 %v4404_v3  ;;  %4478 = vmatpush3.bf16.msra.mxu1 %v4404_v3  ;;  %v180_v13 = vld [vmem:[#allocation2 + $0x200] sm:$0xff]  ;;  %v181_v14 = vld [vmem:[#allocation2 + $0x208] sm:$0xff]  ;;  %v182_v18 = vld [vmem:[#allocation2 + $0x210] sm:$0xff] }
  0x86   :  { %4409 = vmatprep.subr.bf16.mxu0 %v4408_v6  ;;  %4477 = vmatprep.subr.bf16.mxu1 %v4408_v6  ;;  %v1473_v15 = vld [vmem:[#allocation8] sm:$0xff]  ;;  %v1474_v16 = vld [vmem:[#allocation8 + $0x8] sm:$0xff]  ;;  %v183_v19 = vld [vmem:[#allocation2 + $0x218] sm:$0xff] }
  0x87   :  { %3860 = vmatprep.mubr.msk.f32.mxu1 %vm255_vm0, %v180_v13  ;;  %v4412_v17 = vpack.c.bf16 %v1474_v16, %v1473_v15  ;;  %v123_v20 = vld [vmem:[#allocation2 + $0x38] sm:$0xff]  ;;  %v184_v21 = vld [vmem:[#allocation2 + $0x220] sm:$0xff]  ;;  %v185_v23 = vld [vmem:[#allocation2 + $0x228] sm:$0xff] }
  0x88   :  { %v124_v22 = vld [vmem:[#allocation2 + $0x40] sm:$0xff]  ;;  %v1475_v24 = vld [vmem:[#allocation8 + $0x10] sm:$0xff]  ;;  %v125_v26 = vld [vmem:[#allocation2 + $0x48] sm:$0xff] }
  0x89   :  { %4411 = vmatpush3.bf16.msra.mxu0 %v4408_v6  ;;  %4479 = vmatpush3.bf16.msra.mxu1 %v4408_v6  ;;  %v1476_v25 = vld [vmem:[#allocation8 + $0x18] sm:$0xff]  ;;  %v186_v27 = vld [vmem:[#allocation2 + $0x230] sm:$0xff]  ;;  %v1477_v34 = vld [vmem:[#allocation8 + $0x20] sm:$0xff] }
  0x8a   :  { %4413 = vmatprep.subr.bf16.mxu1 %v4412_v17  ;;  %v4416_v28 = vpack.c.bf16 %v1476_v25, %v1475_v24  ;;  %v126_v29 = vld [vmem:[#allocation2 + $0x50] sm:$0xff]  ;;  %v187_v30 = vld [vmem:[#allocation2 + $0x238] sm:$0xff]  ;;  %v188_v32 = vld [vmem:[#allocation2 + $0x240] sm:$0xff] }
  0x8b   :  { %v127_v31 = vld [vmem:[#allocation2 + $0x58] sm:$0xff]  ;;  %v128_v33 = vld [vmem:[#allocation2 + $0x60] sm:$0xff]  ;;  %v1478_v35 = vld [vmem:[#allocation8 + $0x28] sm:$0xff] }
  0x8c   :  { %3765 = vmatmul.mubr.msk.f32.vlgmr.msra.gmra.mrb[0].mxu0 %vm255_vm0, %v117_v7  ;;  %3861 = vmatmul.mubr.msk.f32.vlgmr.msra.gmra.mrb[0].mxu1 %vm255_vm0, %v181_v14  ;;  %v4420_v36 = vpack.c.bf16 %v1478_v35, %v1477_v34  ;;  %v189_v37 = vld [vmem:[#allocation2 + $0x248] sm:$0xff]  ;;  %v190_v39 = vld [vmem:[#allocation2 + $0x250] sm:$0xff]  ;;  %v1480_v42 = vld [vmem:[#allocation8 + $0x38] sm:$0xff] }
  0x8d   :  { %3767 = vmatprep.mubr.msk.f32.mxu0 %vm255_vm0, %v118_v8  ;;  %3863 = vmatprep.mubr.msk.f32.mxu1 %vm255_vm0, %v182_v18  ;;  %v129_v38 = vld [vmem:[#allocation2 + $0x68] sm:$0xff]  ;;  %v130_v40 = vld [vmem:[#allocation2 + $0x70] sm:$0xff]  ;;  %v191_v44 = vld [vmem:[#allocation2 + $0x258] sm:$0xff] }
  0x8e   :  { %4415 = vmatpush3.bf16.msra.mxu1 %v4412_v17  ;;  %v1479_v41 = vld [vmem:[#allocation8 + $0x30] sm:$0xff]  ;;  %v192_v46 = vld [vmem:[#allocation2 + $0x260] sm:$0xff]  ;;  %v1482_v49 = vld [vmem:[#allocation8 + $0x48] sm:$0xff] }
  0x8f   :  { %4417 = vmatprep.subr.bf16.mxu1 %v4416_v28  ;;  %v4424_v43 = vpack.c.bf16 %v1480_v42, %v1479_v41  ;;  %v131_v45 = vld [vmem:[#allocation2 + $0x78] sm:$0xff]  ;;  %v1481_v47 = vld [vmem:[#allocation8 + $0x40] sm:$0xff]  ;;  %v194_v53 = vld [vmem:[#allocation2 + $0x270] sm:$0xff] }
  0x90   :  { %3768 = vmatmul.mubr.msk.f32.gmra.mrb[2].mxu0 %vm255_vm0, %v119_v9  ;;  %3864 = vmatmul.mubr.msk.f32.gmra.mrb[2].mxu1 %vm255_vm0, %v183_v19  ;;  %v132_v48 = vld [vmem:[#allocation2 + $0x80] sm:$0xff]  ;;  %v4428_v50 = vpack.c.bf16 %v1482_v49, %v1481_v47  ;;  %v133_v51 = vld [vmem:[#allocation2 + $0x88] sm:$0xff]  ;;  %v1483_v54 = vld [vmem:[#allocation8 + $0x50] sm:$0xff] }
  0x91   :  { %3770 = vmatprep.mubr.msk.f32.mxu0 %vm255_vm0, %v120_v10  ;;  %3866 = vmatprep.mubr.msk.f32.mxu1 %vm255_vm0, %v184_v21  ;;  %v193_v52 = vld [vmem:[#allocation2 + $0x268] sm:$0xff]  ;;  %v1484_v55 = vld [vmem:[#allocation8 + $0x58] sm:$0xff]  ;;  %v134_v56 = vld [vmem:[#allocation2 + $0x90] sm:$0xff] }
  0x92   :  { %4419 = vmatpush3.bf16.msra.mxu1 %v4416_v28  ;;  %v4432_v57 = vpack.c.bf16 %v1484_v55, %v1483_v54  ;;  %v195_v58 = vld [vmem:[#allocation2 + $0x278] sm:$0xff]  ;;  %v1485_v59 = vld [vmem:[#allocation8 + $0x60] sm:$0xff]  ;;  %v1486_v60 = vld [vmem:[#allocation8 + $0x68] sm:$0xff] }
  0x93   :  { %4421 = vmatprep.subr.bf16.mxu1 %v4420_v36  ;;  %v135_v61 = vld [vmem:[#allocation2 + $0x98] sm:$0xff]  ;;  %v196_v62 = vld [vmem:[#allocation2 + $0x280] sm:$0xff]  ;;  %v4436_v63 = vpack.c.bf16 %v1486_v60, %v1485_v59  ;;  %v197_v2 = vld [vmem:[#allocation2 + $0x288] sm:$0xff] }
  0x94   :  { %3771 = vmatmul.mubr.msk.f32.gmra.mrb[4].mxu0 %vm255_vm0, %v121_v11  ;;  %3867 = vmatmul.mubr.msk.f32.gmra.mrb[4].mxu1 %vm255_vm0, %v185_v23  ;;  %v136_v0 = vld [vmem:[#allocation2 + $0xa0] sm:$0xff]  ;;  %v1487_v1 = vld [vmem:[#allocation8 + $0x70] sm:$0xff]  ;;  %v137_v4 = vld [vmem:[#allocation2 + $0xa8] sm:$0xff] }
  0x95   :  { %3773 = vmatprep.mubr.msk.f32.mxu0 %vm255_vm0, %v122_v12  ;;  %3869 = vmatprep.mubr.msk.f32.mxu1 %vm255_vm0, %v186_v27  ;;  %v1488_v3 = vld [vmem:[#allocation8 + $0x78] sm:$0xff]  ;;  %v198_v5 = vld [vmem:[#allocation2 + $0x290] sm:$0xff]  ;;  %v201_v12 = vld [vmem:[#allocation2 + $0x2a8] sm:$0xff] }
  0x96   :  { %4423 = vmatpush3.bf16.msra.mxu1 %v4420_v36  ;;  %v4440_v6 = vpack.c.bf16 %v1488_v3, %v1487_v1  ;;  %v138_v7 = vld [vmem:[#allocation2 + $0xb0] sm:$0xff]  ;;  %v199_v8 = vld [vmem:[#allocation2 + $0x298] sm:$0xff]  ;;  %v200_v10 = vld [vmem:[#allocation2 + $0x2a0] sm:$0xff] }
  0x97   :  { %4425 = vmatprep.subr.bf16.mxu1 %v4424_v43  ;;  %v139_v9 = vld [vmem:[#allocation2 + $0xb8] sm:$0xff]  ;;  %v140_v11 = vld [vmem:[#allocation2 + $0xc0] sm:$0xff]  ;;  %v141_v13 = vld [vmem:[#allocation2 + $0xc8] sm:$0xff] }
  0x98   :  { %3774 = vmatmul.mubr.msk.f32.gmra.mrb[6].mxu0 %vm255_vm0, %v123_v20  ;;  %3870 = vmatmul.mubr.msk.f32.gmra.mrb[6].mxu1 %vm255_vm0, %v187_v30  ;;  %v202_v14 = vld [vmem:[#allocation2 + $0x2b0] sm:$0xff]  ;;  %v203_v16 = vld [vmem:[#allocation2 + $0x2b8] sm:$0xff]  ;;  %v204_v18 = vld [vmem:[#allocation2 + $0x2c0] sm:$0xff] }
  0x99   :  { %3776 = vmatprep.mubr.msk.f32.mxu0 %vm255_vm0, %v124_v22  ;;  %3872 = vmatprep.mubr.msk.f32.mxu1 %vm255_vm0, %v188_v32  ;;  %v142_v15 = vld [vmem:[#allocation2 + $0xd0] sm:$0xff]  ;;  %v143_v17 = vld [vmem:[#allocation2 + $0xd8] sm:$0xff]  ;;  %v144_v19 = vld [vmem:[#allocation2 + $0xe0] sm:$0xff] }
  0x9a   :  { %4427 = vmatpush3.bf16.msra.mxu1 %v4424_v43  ;;  %v205_v20 = vld [vmem:[#allocation2 + $0x2c8] sm:$0xff]  ;;  %v206_v22 = vld [vmem:[#allocation2 + $0x2d0] sm:$0xff]  ;;  %v207_v24 = vld [vmem:[#allocation2 + $0x2d8] sm:$0xff] }
  0x9b   :  { %4429 = vmatprep.subr.bf16.mxu1 %v4428_v50  ;;  %v145_v21 = vld [vmem:[#allocation2 + $0xe8] sm:$0xff]  ;;  %v146_v23 = vld [vmem:[#allocation2 + $0xf0] sm:$0xff]  ;;  %v147_v25 = vld [vmem:[#allocation2 + $0xf8] sm:$0xff] }
  0x9c   :  { %3777 = vmatmul.mubr.msk.f32.gmra.mrb[8].mxu0 %vm255_vm0, %v125_v26  ;;  %3873 = vmatmul.mubr.msk.f32.gmra.mrb[8].mxu1 %vm255_vm0, %v189_v37  ;;  %v208_v26 = vld [vmem:[#allocation2 + $0x2e0] sm:$0xff]  ;;  %v209_v28 = vld [vmem:[#allocation2 + $0x2e8] sm:$0xff]  ;;  %v210_v30 = vld [vmem:[#allocation2 + $0x2f0] sm:$0xff] }
  0x9d   :  { %3779 = vmatprep.mubr.msk.f32.mxu0 %vm255_vm0, %v126_v29  ;;  %3875 = vmatprep.mubr.msk.f32.mxu1 %vm255_vm0, %v190_v39  ;;  %v148_v27 = vld [vmem:[#allocation2 + $0x100] sm:$0xff]  ;;  %v149_v29 = vld [vmem:[#allocation2 + $0x108] sm:$0xff]  ;;  %v211_v32 = vld [vmem:[#allocation2 + $0x2f8] sm:$0xff] }
  0x9e   :  { %4431 = vmatpush3.bf16.msra.mxu1 %v4428_v50  ;;  %v212_v34 = vld [vmem:[#allocation2 + $0x300] sm:$0xff]  ;;  %v213_v36 = vld [vmem:[#allocation2 + $0x308] sm:$0xff]  ;;  %v154_v39 = vld [vmem:[#allocation2 + $0x130] sm:$0xff] }
  0x9f   :  { %4433 = vmatprep.subr.bf16.mxu1 %v4432_v57  ;;  %v152_v35 = vld [vmem:[#allocation2 + $0x120] sm:$0xff]  ;;  %v153_v37 = vld [vmem:[#allocation2 + $0x128] sm:$0xff]  ;;  %v155_v41 = vld [vmem:[#allocation2 + $0x138] sm:$0xff] }
  0xa0   :  { %3780 = vmatmul.mubr.msk.f32.gmra.mrb[10].mxu0 %vm255_vm0, %v127_v31  ;;  %3876 = vmatmul.mubr.msk.f32.gmra.mrb[10].mxu1 %vm255_vm0, %v191_v44  ;;  %v150_v31 = vld [vmem:[#allocation2 + $0x110] sm:$0xff]  ;;  %v216_v42 = vld [vmem:[#allocation2 + $0x320] sm:$0xff]  ;;  %v217_v44 = vld [vmem:[#allocation2 + $0x328] sm:$0xff] }
  0xa1   :  { %3782 = vmatprep.mubr.msk.f32.mxu0 %vm255_vm0, %v128_v33  ;;  %3878 = vmatprep.mubr.msk.f32.mxu1 %vm255_vm0, %v192_v46  ;;  %v151_v33 = vld [vmem:[#allocation2 + $0x118] sm:$0xff]  ;;  %v156_v43 = vld [vmem:[#allocation2 + $0x140] sm:$0xff]  ;;  %v218_v46 = vld [vmem:[#allocation2 + $0x330] sm:$0xff] }
  0xa2   :  { %4435 = vmatpush3.bf16.msra.mxu1 %v4432_v57  ;;  %v158_v47 = vld [vmem:[#allocation2 + $0x150] sm:$0xff]  ;;  %v159_v49 = vld [vmem:[#allocation2 + $0x158] sm:$0xff]  ;;  %v220_v50 = vld [vmem:[#allocation2 + $0x340] sm:$0xff] }
  0xa3   :  { %4437 = vmatprep.subr.bf16.mxu1 %v4436_v63  ;;  %v222_v54 = vld [vmem:[#allocation2 + $0x350] sm:$0xff]  ;;  %v163_v57 = vld [vmem:[#allocation2 + $0x178] sm:$0xff]  ;;  %v164_v59 = vld [vmem:[#allocation2 + $0x180] sm:$0xff] }
  0xa4   :  { %3783 = vmatmul.mubr.msk.f32.gmra.mrb[12].mxu0 %vm255_vm0, %v129_v38  ;;  %3879 = vmatmul.mubr.msk.f32.gmra.mrb[12].mxu1 %vm255_vm0, %v193_v52  ;;  %v214_v38 = vld [vmem:[#allocation2 + $0x310] sm:$0xff]  ;;  %v221_v52 = vld [vmem:[#allocation2 + $0x348] sm:$0xff]  ;;  %v167_v1 = vld [vmem:[#allocation2 + $0x198] sm:$0xff] }
  0xa5   :  { %3785 = vmatprep.mubr.msk.f32.mxu0 %vm255_vm0, %v130_v40  ;;  %3881 = vmatprep.mubr.msk.f32.mxu1 %vm255_vm0, %v194_v53  ;;  %v215_v40 = vld [vmem:[#allocation2 + $0x318] sm:$0xff]  ;;  %v161_v53 = vld [vmem:[#allocation2 + $0x168] sm:$0xff]  ;;  %v162_v55 = vld [vmem:[#allocation2 + $0x170] sm:$0xff] }
  0xa6   :  { %4439 = vmatpush3.bf16.msra.mxu1 %v4436_v63  ;;  %v225_v60 = vld [vmem:[#allocation2 + $0x368] sm:$0xff]  ;;  %v166_v63 = vld [vmem:[#allocation2 + $0x190] sm:$0xff]  ;;  %v168_v3 = vld [vmem:[#allocation2 + $0x1a0] sm:$0xff] }
  0xa7   :  { %4441 = vmatprep.subr.bf16.mxu1 %v4440_v6 }
  0xa8   :  { %3786 = vmatmul.mubr.msk.f32.gmra.mrb[14].mxu0 %vm255_vm0, %v131_v45  ;;  %3882 = vmatmul.mubr.msk.f32.gmra.mrb[14].mxu1 %vm255_vm0, %v195_v58  ;;  %v157_v45 = vld [vmem:[#allocation2 + $0x148] sm:$0xff]  ;;  %v224_v58 = vld [vmem:[#allocation2 + $0x360] sm:$0xff] }
  0xa9   :  { %3788 = vmatprep.mubr.msk.f32.mxu0 %vm255_vm0, %v132_v48  ;;  %3884 = vmatprep.mubr.msk.f32.mxu1 %vm255_vm0, %v196_v62  ;;  %v219_v48 = vld [vmem:[#allocation2 + $0x338] sm:$0xff]  ;;  %v226_v62 = vld [vmem:[#allocation2 + $0x370] sm:$0xff] }
  0xaa   :  { %4443 = vmatpush3.bf16.msra.mxu1 %v4440_v6  ;;  %v230_v6 = vld [vmem:[#allocation2 + $0x390] sm:$0xff] }
  0xac   :  { %3789 = vmatmul.mubr.msk.f32.gmra.mrb[16].mxu0 %vm255_vm0, %v133_v51  ;;  %3885 = vmatmul.mubr.msk.f32.gmra.mrb[16].mxu1 %vm255_vm0, %v197_v2  ;;  %v160_v51 = vld [vmem:[#allocation2 + $0x160] sm:$0xff] }
  0xad   :  { %3791 = vmatprep.mubr.msk.f32.mxu0 %vm255_vm0, %v134_v56  ;;  %3887 = vmatprep.mubr.msk.f32.mxu1 %vm255_vm0, %v198_v5  ;;  %v223_v56 = vld [vmem:[#allocation2 + $0x358] sm:$0xff]  ;;  %v228_v2 = vld [vmem:[#allocation2 + $0x380] sm:$0xff]  ;;  %v169_v5 = vld [vmem:[#allocation2 + $0x1a8] sm:$0xff] }
  0xb0   :  { %3792 = vmatmul.mubr.msk.f32.gmra.mrb[18].mxu0 %vm255_vm0, %v135_v61  ;;  %3888 = vmatmul.mubr.msk.f32.gmra.mrb[18].mxu1 %vm255_vm0, %v199_v8  ;;  %v165_v61 = vld [vmem:[#allocation2 + $0x188] sm:$0xff]  ;;  %v231_v8 = vld [vmem:[#allocation2 + $0x398] sm:$0xff] }
  0xb1   :  { %3794 = vmatprep.mubr.msk.f32.mxu0 %vm255_vm0, %v136_v0  ;;  %3890 = vmatprep.mubr.msk.f32.mxu1 %vm255_vm0, %v200_v10  ;;  %v227_v0 = vld [vmem:[#allocation2 + $0x378] sm:$0xff]  ;;  %v232_v10 = vld [vmem:[#allocation2 + $0x3a0] sm:$0xff] }
  0xb4   :  { %3795 = vmatmul.mubr.msk.f32.gmra.mrb[20].mxu0 %vm255_vm0, %v137_v4  ;;  %3891 = vmatmul.mubr.msk.f32.gmra.mrb[20].mxu1 %vm255_vm0, %v201_v12  ;;  %v229_v4 = vld [vmem:[#allocation2 + $0x388] sm:$0xff] }
  0xb5   :  { %3797 = vmatprep.mubr.msk.f32.mxu0 %vm255_vm0, %v138_v7  ;;  %3893 = vmatprep.mubr.msk.f32.mxu1 %vm255_vm0, %v202_v14  ;;  %v170_v7 = vld [vmem:[#allocation2 + $0x1b0] sm:$0xff]  ;;  %v233_v12 = vld [vmem:[#allocation2 + $0x3a8] sm:$0xff] }
  0xb6   :  { %v234_v14 = vld [vmem:[#allocation2 + $0x3b0] sm:$0xff] }
  0xb8   :  { %3798 = vmatmul.mubr.msk.f32.gmra.mrb[22].mxu0 %vm255_vm0, %v139_v9  ;;  %3894 = vmatmul.mubr.msk.f32.gmra.mrb[22].mxu1 %vm255_vm0, %v203_v16  ;;  %v171_v9 = vld [vmem:[#allocation2 + $0x1b8] sm:$0xff] }
  0xb9   :  { %3800 = vmatprep.mubr.msk.f32.mxu0 %vm255_vm0, %v140_v11  ;;  %3896 = vmatprep.mubr.msk.f32.mxu1 %vm255_vm0, %v204_v18  ;;  %v172_v11 = vld [vmem:[#allocation2 + $0x1c0] sm:$0xff]  ;;  %v235_v16 = vld [vmem:[#allocation2 + $0x3b8] sm:$0xff] }
  0xba   :  { %v236_v18 = vld [vmem:[#allocation2 + $0x3c0] sm:$0xff] }
  0xbc   :  { %3801 = vmatmul.mubr.msk.f32.gmra.mrb[24].mxu0 %vm255_vm0, %v141_v13  ;;  %3897 = vmatmul.mubr.msk.f32.gmra.mrb[24].mxu1 %vm255_vm0, %v205_v20  ;;  %v173_v13 = vld [vmem:[#allocation2 + $0x1c8] sm:$0xff] }
  0xbd   :  { %3803 = vmatprep.mubr.msk.f32.mxu0 %vm255_vm0, %v142_v15  ;;  %3899 = vmatprep.mubr.msk.f32.mxu1 %vm255_vm0, %v206_v22  ;;  %v174_v15 = vld [vmem:[#allocation2 + $0x1d0] sm:$0xff]  ;;  %v237_v20 = vld [vmem:[#allocation2 + $0x3c8] sm:$0xff] }
  0xbe   :  { %v238_v22 = vld [vmem:[#allocation2 + $0x3d0] sm:$0xff] }
  0xc0   :  { %3804 = vmatmul.mubr.msk.f32.gmra.mrb[26].mxu0 %vm255_vm0, %v143_v17  ;;  %3900 = vmatmul.mubr.msk.f32.gmra.mrb[26].mxu1 %vm255_vm0, %v207_v24  ;;  %v175_v17 = vld [vmem:[#allocation2 + $0x1d8] sm:$0xff] }
  0xc1   :  { %3806 = vmatprep.mubr.msk.f32.mxu0 %vm255_vm0, %v144_v19  ;;  %3902 = vmatprep.mubr.msk.f32.mxu1 %vm255_vm0, %v208_v26  ;;  %v176_v19 = vld [vmem:[#allocation2 + $0x1e0] sm:$0xff]  ;;  %v239_v24 = vld [vmem:[#allocation2 + $0x3d8] sm:$0xff] }
  0xc2   :  { %v240_v26 = vld [vmem:[#allocation2 + $0x3e0] sm:$0xff] }
  0xc4   :  { %3807 = vmatmul.mubr.msk.f32.gmra.mrb[28].mxu0 %vm255_vm0, %v145_v21  ;;  %3903 = vmatmul.mubr.msk.f32.gmra.mrb[28].mxu1 %vm255_vm0, %v209_v28  ;;  %v177_v21 = vld [vmem:[#allocation2 + $0x1e8] sm:$0xff]  ;;  %v242_v28 = vld [vmem:[#allocation2 + $0x3f0] sm:$0xff] }
  0xc5   :  { %3809 = vmatprep.mubr.msk.f32.mxu0 %vm255_vm0, %v146_v23  ;;  %3905 = vmatprep.mubr.msk.f32.mxu1 %vm255_vm0, %v210_v30  ;;  %v178_v23 = vld [vmem:[#allocation2 + $0x1f0] sm:$0xff]  ;;  %v2329_v30 = vld [vmem:[#allocation11] sm:$0xff] }
  0xc8   :  { %3810 = vmatmul.mubr.msk.f32.gmra.mrb[30].mxu0 %vm255_vm0, %v147_v25  ;;  %3906 = vmatmul.mubr.msk.f32.gmra.mrb[30].mxu1 %vm255_vm0, %v211_v32  ;;  %v179_v25 = vld [vmem:[#allocation2 + $0x1f8] sm:$0xff] }
  0xc9   :  { %3812 = vmatprep.mubr.msk.f32.mxu0 %vm255_vm0, %v148_v27  ;;  %3908 = vmatprep.mubr.msk.f32.mxu1 %vm255_vm0, %v212_v34  ;;  %v241_v27 = vld [vmem:[#allocation2 + $0x3e8] sm:$0xff]  ;;  %v2332_v34 = vld [vmem:[#allocation11 + $0x18] sm:$0xff] }
  0xcc   :  { %3813 = vmatmul.mubr.msk.f32.gmra.mrb[32].mxu0 %vm255_vm0, %v149_v29  ;;  %3909 = vmatmul.mubr.msk.f32.gmra.mrb[32].mxu1 %vm255_vm0, %v213_v36  ;;  %v243_v29 = vld [vmem:[#allocation2 + $0x3f8] sm:$0xff]  ;;  %v4967_v36 = vld [vmem:[#allocation7] ss:$0 sm:$0xff] }
  0xcd   :  { %3815 = vmatprep.mubr.msk.f32.mxu0 %vm255_vm0, %v150_v31  ;;  %3911 = vmatprep.mubr.msk.f32.mxu1 %vm255_vm0, %v214_v38  ;;  %v2330_v31 = vld [vmem:[#allocation11 + $0x8] sm:$0xff]  ;;  %v2333_v38 = vld [vmem:[#allocation11 + $0x20] sm:$0xff] }
  0xce   :  { %v4444_v32 = vpack.c.bf16 %v2330_v31, %v2329_v30 }
  0xd0   :  { %3816 = vmatmul.mubr.msk.f32.gmra.mrb[34].mxu0 %vm255_vm0, %v151_v33  ;;  %3912 = vmatmul.mubr.msk.f32.gmra.mrb[34].mxu1 %vm255_vm0, %v215_v40  ;;  %v2331_v33 = vld [vmem:[#allocation11 + $0x10] sm:$0xff] }
  0xd1   :  { %3818 = vmatprep.mubr.msk.f32.mxu0 %vm255_vm0, %v152_v35  ;;  %3914 = vmatprep.mubr.msk.f32.mxu1 %vm255_vm0, %v216_v42  ;;  %v4448_v35 = vpack.c.bf16 %v2332_v34, %v2331_v33 }
  0xd2   :  { %4445 = vmatprep.subr.bf16.mxu0 %v4444_v32 }
  0xd3   :  { %4447 = vmatpush3.bf16.msra.mxu0 %v4444_v32 }
  0xd4   :  { %3819 = vmatmul.mubr.msk.f32.gmra.mrb[36].mxu0 %vm255_vm0, %v153_v37  ;;  %3915 = vmatmul.mubr.msk.f32.gmra.mrb[36].mxu1 %vm255_vm0, %v217_v44 }
  0xd5   :  { %3821 = vmatprep.mubr.msk.f32.mxu0 %vm255_vm0, %v154_v39  ;;  %3917 = vmatprep.mubr.msk.f32.mxu1 %vm255_vm0, %v218_v46  ;;  %v2334_v39 = vld [vmem:[#allocation11 + $0x28] sm:$0xff] }
  0xd6   :  { %4449 = vmatprep.subr.bf16.mxu0 %v4448_v35  ;;  %v4452_v42 = vpack.c.bf16 %v2334_v39, %v2333_v38 }
  0xd7   :  { %4451 = vmatpush3.bf16.msra.mxu0 %v4448_v35 }
  0xd8   :  { %3822 = vmatmul.mubr.msk.f32.gmra.mrb[38].mxu0 %vm255_vm0, %v155_v41  ;;  %3918 = vmatmul.mubr.msk.f32.gmra.mrb[38].mxu1 %vm255_vm0, %v219_v48 }
  0xd9   :  { %3824 = vmatprep.mubr.msk.f32.mxu0 %vm255_vm0, %v156_v43  ;;  %3920 = vmatprep.mubr.msk.f32.mxu1 %vm255_vm0, %v220_v50 }
  0xda   :  { %4453 = vmatprep.subr.bf16.mxu0 %v4452_v42 }
  0xdb   :  { %4455 = vmatpush3.bf16.msra.mxu0 %v4452_v42  ;;  %v2337_v42 = vld [vmem:[#allocation11 + $0x40] sm:$0xff] }
  0xdc   :  { %3825 = vmatmul.mubr.msk.f32.gmra.mrb[40].mxu0 %vm255_vm0, %v157_v45  ;;  %3921 = vmatmul.mubr.msk.f32.gmra.mrb[40].mxu1 %vm255_vm0, %v221_v52 }
  0xdd   :  { %3827 = vmatprep.mubr.msk.f32.mxu0 %vm255_vm0, %v158_v47  ;;  %3923 = vmatprep.mubr.msk.f32.mxu1 %vm255_vm0, %v222_v54 }
  0xe0   :  { %3828 = vmatmul.mubr.msk.f32.gmra.mrb[42].mxu0 %vm255_vm0, %v159_v49  ;;  %3924 = vmatmul.mubr.msk.f32.gmra.mrb[42].mxu1 %vm255_vm0, %v223_v56 }
  0xe1   :  { %3830 = vmatprep.mubr.msk.f32.mxu0 %vm255_vm0, %v160_v51  ;;  %3926 = vmatprep.mubr.msk.f32.mxu1 %vm255_vm0, %v224_v58 }
  0xe4   :  { %3831 = vmatmul.mubr.msk.f32.gmra.mrb[44].mxu0 %vm255_vm0, %v161_v53  ;;  %3927 = vmatmul.mubr.msk.f32.gmra.mrb[44].mxu1 %vm255_vm0, %v225_v60 }
  0xe5   :  { %3833 = vmatprep.mubr.msk.f32.mxu0 %vm255_vm0, %v162_v55  ;;  %3929 = vmatprep.mubr.msk.f32.mxu1 %vm255_vm0, %v226_v62 }
  0xe8   :  { %3834 = vmatmul.mubr.msk.f32.gmra.mrb[46].mxu0 %vm255_vm0, %v163_v57  ;;  %3930 = vmatmul.mubr.msk.f32.gmra.mrb[46].mxu1 %vm255_vm0, %v227_v0 }
  0xe9   :  { %3836 = vmatprep.mubr.msk.f32.mxu0 %vm255_vm0, %v164_v59  ;;  %3932 = vmatprep.mubr.msk.f32.mxu1 %vm255_vm0, %v228_v2 }
  0xec   :  { %3837 = vmatmul.mubr.msk.f32.gmra.mrb[48].mxu0 %vm255_vm0, %v165_v61  ;;  %3933 = vmatmul.mubr.msk.f32.gmra.mrb[48].mxu1 %vm255_vm0, %v229_v4 }
  0xed   :  { %3839 = vmatprep.mubr.msk.f32.mxu0 %vm255_vm0, %v166_v63  ;;  %3935 = vmatprep.mubr.msk.f32.mxu1 %vm255_vm0, %v230_v6  ;;  %v2335_v6 = vld [vmem:[#allocation11 + $0x30] sm:$0xff] }
  0xf0   :  { %3840 = vmatmul.mubr.msk.f32.gmra.mrb[50].mxu0 %vm255_vm0, %v167_v1  ;;  %3936 = vmatmul.mubr.msk.f32.gmra.mrb[50].mxu1 %vm255_vm0, %v231_v8 }
  0xf1   :  { %3842 = vmatprep.mubr.msk.f32.mxu0 %vm255_vm0, %v168_v3  ;;  %3938 = vmatprep.mubr.msk.f32.mxu1 %vm255_vm0, %v232_v10 }
  0xf4   :  { %3843 = vmatmul.mubr.msk.f32.gmra.mrb[52].mxu0 %vm255_vm0, %v169_v5  ;;  %3939 = vmatmul.mubr.msk.f32.gmra.mrb[52].mxu1 %vm255_vm0, %v233_v12 }
  0xf5   :  { %3845 = vmatprep.mubr.msk.f32.mxu0 %vm255_vm0, %v170_v7  ;;  %3941 = vmatprep.mubr.msk.f32.mxu1 %vm255_vm0, %v234_v14  ;;  %v2336_v7 = vld [vmem:[#allocation11 + $0x38] sm:$0xff] }
  0xf8   :  { %3846 = vmatmul.mubr.msk.f32.gmra.mrb[54].mxu0 %vm255_vm0, %v171_v9  ;;  %3942 = vmatmul.mubr.msk.f32.gmra.mrb[54].mxu1 %vm255_vm0, %v235_v16 }
  0xf9   :  { %3848 = vmatprep.mubr.msk.f32.mxu0 %vm255_vm0, %v172_v11  ;;  %3944 = vmatprep.mubr.msk.f32.mxu1 %vm255_vm0, %v236_v18  ;;  %v4456_v11 = vpack.c.bf16 %v2336_v7, %v2335_v6 }
  0xfb   :  { %4457 = vmatprep.subr.bf16.mxu0 %v4456_v11 }
  0xfc   :  { %3849 = vmatmul.mubr.msk.f32.gmra.mrb[56].mxu0 %vm255_vm0, %v173_v13  ;;  %3945 = vmatmul.mubr.msk.f32.gmra.mrb[56].mxu1 %vm255_vm0, %v237_v20 }
  0xfd   :  { %3851 = vmatprep.mubr.msk.f32.mxu0 %vm255_vm0, %v174_v15  ;;  %3947 = vmatprep.mubr.msk.f32.mxu1 %vm255_vm0, %v238_v22 }
  0xfe   :  { %4459 = vmatpush3.bf16.msra.mxu0 %v4456_v11 }
 0x100   :  { %3852 = vmatmul.mubr.msk.f32.gmra.mrb[58].mxu0 %vm255_vm0, %v175_v17  ;;  %3948 = vmatmul.mubr.msk.f32.gmra.mrb[58].mxu1 %vm255_vm0, %v239_v24 }
 0x101   :  { %3854 = vmatprep.mubr.msk.f32.mxu0 %vm255_vm0, %v176_v19  ;;  %3950 = vmatprep.mubr.msk.f32.mxu1 %vm255_vm0, %v240_v26 }
 0x104   :  { %3855 = vmatmul.mubr.msk.f32.gmra.mrb[60].mxu0 %vm255_vm0, %v177_v21  ;;  %3951 = vmatmul.mubr.msk.f32.gmra.mrb[60].mxu1 %vm255_vm0, %v241_v27 }
 0x105   :  { %3857 = vmatprep.mubr.msk.f32.mxu0 %vm255_vm0, %v178_v23  ;;  %3953 = vmatprep.mubr.msk.f32.mxu1 %vm255_vm0, %v242_v28 }
 0x108   :  { %3858 = vmatmul.mubr.msk.f32.gmra.mrb[62].mxu0 %vm255_vm0, %v179_v25  ;;  %3954 = vmatmul.mubr.msk.f32.gmra.mrb[62].mxu1 %vm255_vm0, %v243_v29 }
 0x15f   :  { %v3766_v37 = vpop.f32.mrb[0].mxu0  ;;  %v4973_v50 = vpop.f32.mrb[0].mxu1 }
 0x160   :  { %v712_v40 = vadd.f32 %v3766_v37, %v4967_v36  ;;  %v706_v41 = vpop.f32.mrb[1].mxu0  ;;  %v4975_v53 = vpop.f32.mrb[1].mxu1 }
 0x161   :  { %v707_v43 = vadd.f32 %v4967_v36, %v706_v41 }
 0x162   :  { %v1346_v46 = vmax.f32 %v712_v40, 0.0 }
 0x163   :  { %v1345_v44 = vmax.f32 %v707_v43, 0.0  ;;  %v3769_v45 = vpop.f32.mrb[2].mxu0  ;;  %v4979_v58 = vpop.f32.mrb[2].mxu1  ;;  %v2338_v43 = vld [vmem:[#allocation11 + $0x48] sm:$0xff] }
 0x164   :  { %v722_v47 = vadd.f32 %v3769_v45, %v4967_v36  ;;  %v716_v48 = vpop.f32.mrb[3].mxu0  ;;  %v4981_v61 = vpop.f32.mrb[3].mxu1 }
 0x165   :  { %v717_v49 = vadd.f32 %v4967_v36, %v716_v48  ;;  %3988 = vmatprep.mubr.f32.mxu1 %v1345_v44 }
 0x166   :  { %3989 = vmatmul.mubr.f32.vlgmr.msra.gmra.mrb[64].mxu1 %v1346_v46  ;;  %v1348_v54 = vmax.f32 %v722_v47, 0.0  ;;  %v4460_v47 = vpack.c.bf16 %v2338_v43, %v2337_v42 }
 0x167   :  { %v1347_v51 = vmax.f32 %v717_v49, 0.0  ;;  %v3772_v52 = vpop.f32.mrb[4].mxu0  ;;  %v4985_v2 = vpop.f32.mrb[4].mxu1 }
 0x168   :  { %v732_v55 = vadd.f32 %v3772_v52, %v4967_v36  ;;  %v726_v56 = vpop.f32.mrb[5].mxu0  ;;  %v4987_v5 = vpop.f32.mrb[5].mxu1  ;;  %4461 = vmatprep.subr.bf16.mxu0 %v4460_v47 }
 0x169   :  { %v727_v57 = vadd.f32 %v4967_v36, %v726_v56  ;;  %3991 = vmatprep.mubr.f32.mxu1 %v1347_v51  ;;  %4463 = vmatpush3.bf16.msra.mxu0 %v4460_v47 }
 0x16a   :  { %3992 = vmatmul.mubr.f32.gmra.mrb[66].mxu1 %v1348_v54  ;;  %v1350_v62 = vmax.f32 %v732_v55, 0.0 }
 0x16b   :  { %v1349_v59 = vmax.f32 %v727_v57, 0.0  ;;  %v3775_v60 = vpop.f32.mrb[6].mxu0  ;;  %v4991_v13 = vpop.f32.mrb[6].mxu1 }
 0x16c   :  { %v742_v63 = vadd.f32 %v3775_v60, %v4967_v36  ;;  %v736_v0 = vpop.f32.mrb[7].mxu0  ;;  %v4993_v16 = vpop.f32.mrb[7].mxu1 }
 0x16d   :  { %v737_v1 = vadd.f32 %v4967_v36, %v736_v0  ;;  %3994 = vmatprep.mubr.f32.mxu1 %v1349_v59 }
 0x16e   :  { %3995 = vmatmul.mubr.f32.gmra.mrb[68].mxu1 %v1350_v62  ;;  %v1352_v8 = vmax.f32 %v742_v63, 0.0 }
 0x16f   :  { %v1351_v3 = vmax.f32 %v737_v1, 0.0  ;;  %v3778_v4 = vpop.f32.mrb[8].mxu0  ;;  %v4997_v21 = vpop.f32.mrb[8].mxu1 }
 0x170   :  { %v752_v9 = vadd.f32 %v3778_v4, %v4967_v36  ;;  %v746_v10 = vpop.f32.mrb[9].mxu0  ;;  %v4999_v24 = vpop.f32.mrb[9].mxu1 }
 0x171   :  { %v747_v12 = vadd.f32 %v4967_v36, %v746_v10  ;;  %3997 = vmatprep.mubr.f32.mxu1 %v1351_v3 }
 0x172   :  { %3998 = vmatmul.mubr.f32.gmra.mrb[70].mxu1 %v1352_v8  ;;  %v1354_v17 = vmax.f32 %v752_v9, 0.0 }
 0x173   :  { %v1353_v14 = vmax.f32 %v747_v12, 0.0  ;;  %v3781_v15 = vpop.f32.mrb[10].mxu0  ;;  %v5003_v29 = vpop.f32.mrb[10].mxu1 }
 0x174   :  { %v762_v18 = vadd.f32 %v3781_v15, %v4967_v36  ;;  %v756_v19 = vpop.f32.mrb[11].mxu0  ;;  %v5005_v32 = vpop.f32.mrb[11].mxu1 }
 0x175   :  { %v757_v20 = vadd.f32 %v4967_v36, %v756_v19  ;;  %4000 = vmatprep.mubr.f32.mxu1 %v1353_v14 }
 0x176   :  { %4001 = vmatmul.mubr.f32.gmra.mrb[72].mxu1 %v1354_v17  ;;  %v1356_v25 = vmax.f32 %v762_v18, 0.0 }
 0x177   :  { %v1355_v22 = vmax.f32 %v757_v20, 0.0  ;;  %v3784_v23 = vpop.f32.mrb[12].mxu0  ;;  %v5009_v38 = vpop.f32.mrb[12].mxu1 }
 0x178   :  { %v772_v26 = vadd.f32 %v3784_v23, %v4967_v36  ;;  %v766_v27 = vpop.f32.mrb[13].mxu0  ;;  %v5011_v41 = vpop.f32.mrb[13].mxu1  ;;  %v2340_v23 = vld [vmem:[#allocation11 + $0x58] sm:$0xff] }
 0x179   :  { %v767_v28 = vadd.f32 %v4967_v36, %v766_v27  ;;  %4003 = vmatprep.mubr.f32.mxu1 %v1355_v22  ;;  %v2339_v22 = vld [vmem:[#allocation11 + $0x50] sm:$0xff] }
 0x17a   :  { %4004 = vmatmul.mubr.f32.gmra.mrb[74].mxu1 %v1356_v25  ;;  %v1358_v33 = vmax.f32 %v772_v26, 0.0 }
 0x17b   :  { %v1357_v30 = vmax.f32 %v767_v28, 0.0  ;;  %v3787_v31 = vpop.f32.mrb[14].mxu0  ;;  %v5015_v49 = vpop.f32.mrb[14].mxu1  ;;  %v4464_v28 = vpack.c.bf16 %v2340_v23, %v2339_v22 }
 0x17c   :  { %v782_v34 = vadd.f32 %v3787_v31, %v4967_v36  ;;  %v776_v35 = vpop.f32.mrb[15].mxu0  ;;  %v5017_v54 = vpop.f32.mrb[15].mxu1 }
 0x17d   :  { %v777_v37 = vadd.f32 %v4967_v36, %v776_v35  ;;  %4006 = vmatprep.mubr.f32.mxu1 %v1357_v30  ;;  %4465 = vmatprep.subr.bf16.mxu0 %v4464_v28 }
 0x17e   :  { %4007 = vmatmul.mubr.f32.gmra.mrb[76].mxu1 %v1358_v33  ;;  %v1360_v44 = vmax.f32 %v782_v34, 0.0  ;;  %4467 = vmatpush3.bf16.msra.mxu0 %v4464_v28 }
 0x17f   :  { %v1359_v39 = vmax.f32 %v777_v37, 0.0  ;;  %v3790_v40 = vpop.f32.mrb[16].mxu0  ;;  %v5021_v60 = vpop.f32.mrb[16].mxu1 }
 0x180   :  { %v792_v45 = vadd.f32 %v3790_v40, %v4967_v36  ;;  %v786_v46 = vpop.f32.mrb[17].mxu0  ;;  %v5023_v0 = vpop.f32.mrb[17].mxu1 }
 0x181   :  { %v787_v48 = vadd.f32 %v4967_v36, %v786_v46  ;;  %4009 = vmatprep.mubr.f32.mxu1 %v1359_v39 }
 0x182   :  { %4010 = vmatmul.mubr.f32.gmra.mrb[78].mxu1 %v1360_v44  ;;  %v1362_v55 = vmax.f32 %v792_v45, 0.0 }
 0x183   :  { %v1361_v51 = vmax.f32 %v787_v48, 0.0  ;;  %v3793_v52 = vpop.f32.mrb[18].mxu0  ;;  %v5027_v7 = vpop.f32.mrb[18].mxu1 }
 0x184   :  { %v802_v56 = vadd.f32 %v3793_v52, %v4967_v36  ;;  %v796_v57 = vpop.f32.mrb[19].mxu0  ;;  %v5029_v10 = vpop.f32.mrb[19].mxu1 }
 0x185   :  { %v797_v59 = vadd.f32 %v4967_v36, %v796_v57  ;;  %4012 = vmatprep.mubr.f32.mxu1 %v1361_v51 }
 0x186   :  { %4013 = vmatmul.mubr.f32.gmra.mrb[80].mxu1 %v1362_v55  ;;  %v1364_v1 = vmax.f32 %v802_v56, 0.0 }
 0x187   :  { %v1363_v62 = vmax.f32 %v797_v59, 0.0  ;;  %v3796_v63 = vpop.f32.mrb[20].mxu0  ;;  %v5033_v17 = vpop.f32.mrb[20].mxu1 }
 0x188   :  { %v812_v3 = vadd.f32 %v3796_v63, %v4967_v36  ;;  %v806_v4 = vpop.f32.mrb[21].mxu0  ;;  %v5035_v20 = vpop.f32.mrb[21].mxu1 }
 0x189   :  { %v807_v6 = vadd.f32 %v4967_v36, %v806_v4  ;;  %4015 = vmatprep.mubr.f32.mxu1 %v1363_v62 }
 0x18a   :  { %4016 = vmatmul.mubr.f32.gmra.mrb[82].mxu1 %v1364_v1  ;;  %v1366_v11 = vmax.f32 %v812_v3, 0.0 }
 0x18b   :  { %v1365_v8 = vmax.f32 %v807_v6, 0.0  ;;  %v3799_v9 = vpop.f32.mrb[22].mxu0  ;;  %v5039_v31 = vpop.f32.mrb[22].mxu1 }
 0x18c   :  { %v822_v12 = vadd.f32 %v3799_v9, %v4967_v36  ;;  %v816_v14 = vpop.f32.mrb[23].mxu0  ;;  %v5041_v35 = vpop.f32.mrb[23].mxu1 }
 0x18d   :  { %v817_v15 = vadd.f32 %v4967_v36, %v816_v14  ;;  %4018 = vmatprep.mubr.f32.mxu1 %v1365_v8 }
 0x18e   :  { %4019 = vmatmul.mubr.f32.gmra.mrb[84].mxu1 %v1366_v11  ;;  %v1368_v25 = vmax.f32 %v822_v12, 0.0  ;;  %v2341_v11 = vld [vmem:[#allocation11 + $0x60] sm:$0xff]  ;;  %v2342_v12 = vld [vmem:[#allocation11 + $0x68] sm:$0xff] }
 0x18f   :  { %v1367_v18 = vmax.f32 %v817_v15, 0.0  ;;  %v3802_v19 = vpop.f32.mrb[24].mxu0  ;;  %v5045_v43 = vpop.f32.mrb[24].mxu1 }
 0x190   :  { %v832_v26 = vadd.f32 %v3802_v19, %v4967_v36  ;;  %v826_v27 = vpop.f32.mrb[25].mxu0  ;;  %v5047_v46 = vpop.f32.mrb[25].mxu1  ;;  %v4468_v19 = vpack.c.bf16 %v2342_v12, %v2341_v11 }
 0x191   :  { %v827_v30 = vadd.f32 %v4967_v36, %v826_v27  ;;  %4021 = vmatprep.mubr.f32.mxu1 %v1367_v18 }
 0x192   :  { %4022 = vmatmul.mubr.f32.gmra.mrb[86].mxu1 %v1368_v25  ;;  %v1370_v37 = vmax.f32 %v832_v26, 0.0  ;;  %4469 = vmatprep.subr.bf16.mxu0 %v4468_v19 }
 0x193   :  { %v1369_v33 = vmax.f32 %v827_v30, 0.0  ;;  %v3805_v34 = vpop.f32.mrb[26].mxu0  ;;  %v5051_v55 = vpop.f32.mrb[26].mxu1  ;;  %4471 = vmatpush3.bf16.msra.mxu0 %v4468_v19 }
 0x194   :  { %v842_v39 = vadd.f32 %v3805_v34, %v4967_v36  ;;  %v836_v40 = vpop.f32.mrb[27].mxu0  ;;  %v5053_v59 = vpop.f32.mrb[27].mxu1 }
 0x195   :  { %v837_v42 = vadd.f32 %v4967_v36, %v836_v40  ;;  %4024 = vmatprep.mubr.f32.mxu1 %v1369_v33 }
 0x196   :  { %4025 = vmatmul.mubr.f32.gmra.mrb[88].mxu1 %v1370_v37  ;;  %v1372_v47 = vmax.f32 %v842_v39, 0.0 }
 0x197   :  { %v1371_v44 = vmax.f32 %v837_v42, 0.0  ;;  %v3808_v45 = vpop.f32.mrb[28].mxu0  ;;  %v5057_v4 = vpop.f32.mrb[28].mxu1 }
 0x198   :  { %v852_v48 = vadd.f32 %v3808_v45, %v4967_v36  ;;  %v846_v51 = vpop.f32.mrb[29].mxu0  ;;  %v5059_v9 = vpop.f32.mrb[29].mxu1 }
 0x199   :  { %v847_v52 = vadd.f32 %v4967_v36, %v846_v51  ;;  %4027 = vmatprep.mubr.f32.mxu1 %v1371_v44 }
 0x19a   :  { %4028 = vmatmul.mubr.f32.gmra.mrb[90].mxu1 %v1372_v47  ;;  %v1374_v62 = vmax.f32 %v852_v48, 0.0 }
 0x19b   :  { %v1373_v56 = vmax.f32 %v847_v52, 0.0  ;;  %v3811_v57 = vpop.f32.mrb[30].mxu0  ;;  %v5063_v23 = vpop.f32.mrb[30].mxu1 }
 0x19c   :  { %v862_v63 = vadd.f32 %v3811_v57, %v4967_v36  ;;  %v856_v1 = vpop.f32.mrb[31].mxu0  ;;  %v5065_v27 = vpop.f32.mrb[31].mxu1 }
 0x19d   :  { %v857_v3 = vadd.f32 %v4967_v36, %v856_v1  ;;  %4030 = vmatprep.mubr.f32.mxu1 %v1373_v56 }
 0x19e   :  { %4031 = vmatmul.mubr.f32.gmra.mrb[92].mxu1 %v1374_v62  ;;  %v1376_v14 = vmax.f32 %v862_v63, 0.0 }
 0x19f   :  { %v1375_v6 = vmax.f32 %v857_v3, 0.0  ;;  %v3814_v8 = vpop.f32.mrb[32].mxu0  ;;  %v5069_v37 = vpop.f32.mrb[32].mxu1 }
 0x1a0   :  { %v872_v15 = vadd.f32 %v3814_v8, %v4967_v36  ;;  %v866_v18 = vpop.f32.mrb[33].mxu0  ;;  %v5071_v42 = vpop.f32.mrb[33].mxu1 }
 0x1a1   :  { %v867_v22 = vadd.f32 %v4967_v36, %v866_v18  ;;  %4033 = vmatprep.mubr.f32.mxu1 %v1375_v6 }
 0x1a2   :  { %4034 = vmatmul.mubr.f32.gmra.mrb[94].mxu1 %v1376_v14  ;;  %v1378_v28 = vmax.f32 %v872_v15, 0.0  ;;  %v2343_v14 = vld [vmem:[#allocation11 + $0x70] sm:$0xff]  ;;  %v2344_v15 = vld [vmem:[#allocation11 + $0x78] sm:$0xff] }
 0x1a3   :  { %v1377_v25 = vmax.f32 %v867_v22, 0.0  ;;  %v3817_v26 = vpop.f32.mrb[34].mxu0  ;;  %v5075_v51 = vpop.f32.mrb[34].mxu1 }
 0x1a4   :  { %v882_v30 = vadd.f32 %v3817_v26, %v4967_v36  ;;  %v876_v33 = vpop.f32.mrb[35].mxu0  ;;  %v5077_v57 = vpop.f32.mrb[35].mxu1 }
 0x1a5   :  { %v877_v34 = vadd.f32 %v4967_v36, %v876_v33  ;;  %4036 = vmatprep.mubr.f32.mxu1 %v1377_v25  ;;  %v4472_v25 = vpack.c.bf16 %v2344_v15, %v2343_v14 }
 0x1a6   :  { %4037 = vmatmul.mubr.f32.gmra.mrb[96].mxu1 %v1378_v28  ;;  %v1380_v44 = vmax.f32 %v882_v30, 0.0 }
 0x1a7   :  { %v1379_v39 = vmax.f32 %v877_v34, 0.0  ;;  %v3820_v40 = vpop.f32.mrb[36].mxu0  ;;  %v5081_v6 = vpop.f32.mrb[36].mxu1  ;;  %4473 = vmatprep.subr.bf16.mxu0 %v4472_v25 }
 0x1a8   :  { %v892_v45 = vadd.f32 %v3820_v40, %v4967_v36  ;;  %v886_v47 = vpop.f32.mrb[37].mxu0  ;;  %v5083_v12 = vpop.f32.mrb[37].mxu1  ;;  %4475 = vmatpush3.bf16.msra.mxu0 %v4472_v25 }
 0x1a9   :  { %v887_v48 = vadd.f32 %v4967_v36, %v886_v47  ;;  %4039 = vmatprep.mubr.f32.mxu1 %v1379_v39 }
 0x1aa   :  { %4040 = vmatmul.mubr.f32.gmra.mrb[98].mxu1 %v1380_v44  ;;  %v1382_v62 = vmax.f32 %v892_v45, 0.0 }
 0x1ab   :  { %v1381_v52 = vmax.f32 %v887_v48, 0.0  ;;  %v3823_v56 = vpop.f32.mrb[38].mxu0  ;;  %v5087_v28 = vpop.f32.mrb[38].mxu1 }
 0x1ac   :  { %v902_v63 = vadd.f32 %v3823_v56, %v4967_v36  ;;  %v896_v1 = vpop.f32.mrb[39].mxu0  ;;  %v5089_v34 = vpop.f32.mrb[39].mxu1 }
 0x1ad   :  { %v897_v3 = vadd.f32 %v4967_v36, %v896_v1  ;;  %4042 = vmatprep.mubr.f32.mxu1 %v1381_v52 }
 0x1ae   :  { %4043 = vmatmul.mubr.f32.gmra.mrb[100].mxu1 %v1382_v62  ;;  %v1384_v18 = vmax.f32 %v902_v63, 0.0 }
 0x1af   :  { %v1383_v8 = vmax.f32 %v897_v3, 0.0  ;;  %v3826_v11 = vpop.f32.mrb[40].mxu0  ;;  %v5093_v47 = vpop.f32.mrb[40].mxu1 }
 0x1b0   :  { %v912_v19 = vadd.f32 %v3826_v11, %v4967_v36  ;;  %v906_v22 = vpop.f32.mrb[41].mxu0  ;;  %v5095_v56 = vpop.f32.mrb[41].mxu1 }
 0x1b1   :  { %v907_v26 = vadd.f32 %v4967_v36, %v906_v22  ;;  %4045 = vmatprep.mubr.f32.mxu1 %v1383_v8 }
 0x1b2   :  { %4046 = vmatmul.mubr.f32.gmra.mrb[102].mxu1 %v1384_v18  ;;  %v1386_v39 = vmax.f32 %v912_v19, 0.0 }
 0x1b3   :  { %v1385_v30 = vmax.f32 %v907_v26, 0.0  ;;  %v3829_v33 = vpop.f32.mrb[42].mxu0  ;;  %v5099_v8 = vpop.f32.mrb[42].mxu1 }
 0x1b4   :  { %v922_v40 = vadd.f32 %v3829_v33, %v4967_v36  ;;  %v916_v44 = vpop.f32.mrb[43].mxu0  ;;  %v5101_v15 = vpop.f32.mrb[43].mxu1 }
 0x1b5   :  { %v917_v45 = vadd.f32 %v4967_v36, %v916_v44  ;;  %4048 = vmatprep.mubr.f32.mxu1 %v1385_v30 }
 0x1b6   :  { %4049 = vmatmul.mubr.f32.gmra.mrb[104].mxu1 %v1386_v39  ;;  %v1388_v62 = vmax.f32 %v922_v40, 0.0 }
 0x1b7   :  { %v1387_v48 = vmax.f32 %v917_v45, 0.0  ;;  %v3832_v52 = vpop.f32.mrb[44].mxu0  ;;  %v5105_v26 = vpop.f32.mrb[44].mxu1 }
 0x1b8   :  { %v932_v63 = vadd.f32 %v3832_v52, %v4967_v36  ;;  %v926_v1 = vpop.f32.mrb[45].mxu0  ;;  %v5107_v39 = vpop.f32.mrb[45].mxu1 }
 0x1b9   :  { %v927_v3 = vadd.f32 %v4967_v36, %v926_v1  ;;  %4051 = vmatprep.mubr.f32.mxu1 %v1387_v48 }
 0x1ba   :  { %4052 = vmatmul.mubr.f32.gmra.mrb[106].mxu1 %v1388_v62  ;;  %v1390_v18 = vmax.f32 %v932_v63, 0.0 }
 0x1bb   :  { %v1389_v11 = vmax.f32 %v927_v3, 0.0  ;;  %v3835_v14 = vpop.f32.mrb[46].mxu0  ;;  %v5111_v52 = vpop.f32.mrb[46].mxu1 }
 0x1bc   :  { %v942_v19 = vadd.f32 %v3835_v14, %v4967_v36  ;;  %v936_v22 = vpop.f32.mrb[47].mxu0  ;;  %v5113_v1 = vpop.f32.mrb[47].mxu1 }
 0x1bd   :  { %v937_v25 = vadd.f32 %v4967_v36, %v936_v22  ;;  %4054 = vmatprep.mubr.f32.mxu1 %v1389_v11 }
 0x1be   :  { %4055 = vmatmul.mubr.f32.gmra.mrb[108].mxu1 %v1390_v18  ;;  %v1392_v40 = vmax.f32 %v942_v19, 0.0 }
 0x1bf   :  { %v1391_v30 = vmax.f32 %v937_v25, 0.0  ;;  %v3838_v33 = vpop.f32.mrb[48].mxu0  ;;  %v5117_v19 = vpop.f32.mrb[48].mxu1 }
 0x1c0   :  { %v952_v44 = vadd.f32 %v3838_v33, %v4967_v36  ;;  %v946_v45 = vpop.f32.mrb[49].mxu0  ;;  %5576 = vst [vmem:[#allocation20_spill] sm:$0xff] %v5117_v19 }
 0x1c1   :  { %v947_v48 = vadd.f32 %v4967_v36, %v946_v45  ;;  %4057 = vmatprep.mubr.f32.mxu1 %v1391_v30  ;;  %v5119_v30 = vpop.f32.mrb[49].mxu1 }
 0x1c2   :  { %4058 = vmatmul.mubr.f32.gmra.mrb[110].mxu1 %v1392_v40  ;;  %v1394_v3 = vmax.f32 %v952_v44, 0.0  ;;  %5577 = vst [vmem:[#allocation21_spill] sm:$0xff] %v5119_v30 }
 0x1c3   :  { %v1393_v62 = vmax.f32 %v947_v48, 0.0  ;;  %v3841_v63 = vpop.f32.mrb[50].mxu0  ;;  %v5123_v44 = vpop.f32.mrb[50].mxu1 }
 0x1c4   :  { %v962_v11 = vadd.f32 %v3841_v63, %v4967_v36  ;;  %v956_v14 = vpop.f32.mrb[51].mxu0  ;;  %5578 = vst [vmem:[#allocation22_spill] sm:$0xff] %v5123_v44 }
 0x1c5   :  { %v957_v18 = vadd.f32 %v4967_v36, %v956_v14  ;;  %4060 = vmatprep.mubr.f32.mxu1 %v1393_v62  ;;  %v5125_v62 = vpop.f32.mrb[51].mxu1 }
 0x1c6   :  { %4061 = vmatmul.mubr.f32.gmra.mrb[112].mxu1 %v1394_v3  ;;  %v1396_v33 = vmax.f32 %v962_v11, 0.0  ;;  %5579 = vst [vmem:[#allocation23_spill] sm:$0xff] %v5125_v62 }
 0x1c7   :  { %v1395_v22 = vmax.f32 %v957_v18, 0.0  ;;  %v3844_v25 = vpop.f32.mrb[52].mxu0  ;;  %v5129_v11 = vpop.f32.mrb[52].mxu1 }
 0x1c8   :  { %v972_v40 = vadd.f32 %v3844_v25, %v4967_v36  ;;  %v966_v45 = vpop.f32.mrb[53].mxu0  ;;  %5580 = vst [vmem:[#allocation24_spill] sm:$0xff] %v5129_v11 }
 0x1c9   :  { %v967_v48 = vadd.f32 %v4967_v36, %v966_v45  ;;  %4063 = vmatprep.mubr.f32.mxu1 %v1395_v22  ;;  %v5131_v22 = vpop.f32.mrb[53].mxu1 }
 0x1ca   :  { %4064 = vmatmul.mubr.f32.gmra.mrb[114].mxu1 %v1396_v33  ;;  %v1398_v3 = vmax.f32 %v972_v40, 0.0  ;;  %5581 = vst [vmem:[#allocation25_spill] sm:$0xff] %v5131_v22 }
 0x1cb   :  { %v1397_v63 = vmax.f32 %v967_v48, 0.0  ;;  %v3847_v14 = vpop.f32.mrb[54].mxu0  ;;  %v5135_v40 = vpop.f32.mrb[54].mxu1 }
 0x1cc   :  { %v982_v18 = vadd.f32 %v3847_v14, %v4967_v36  ;;  %v976_v19 = vpop.f32.mrb[55].mxu0  ;;  %5582 = vst [vmem:[#allocation26_spill] sm:$0xff] %v5135_v40 }
 0x1cd   :  { %v977_v30 = vadd.f32 %v4967_v36, %v976_v19  ;;  %4066 = vmatprep.mubr.f32.mxu1 %v1397_v63  ;;  %v5137_v63 = vpop.f32.mrb[55].mxu1 }
 0x1ce   :  { %4067 = vmatmul.mubr.f32.gmra.mrb[116].mxu1 %v1398_v3  ;;  %v1400_v33 = vmax.f32 %v982_v18, 0.0  ;;  %5583 = vst [vmem:[#allocation27_spill] sm:$0xff] %v5137_v63 }
 0x1cf   :  { %v1399_v25 = vmax.f32 %v977_v30, 0.0  ;;  %v3850_v45 = vpop.f32.mrb[56].mxu0  ;;  %v5141_v18 = vpop.f32.mrb[56].mxu1 }
 0x1d0   :  { %v992_v48 = vadd.f32 %v3850_v45, %v4967_v36  ;;  %v986_v44 = vpop.f32.mrb[57].mxu0  ;;  %5584 = vst [vmem:[#allocation28_spill] sm:$0xff] %v5141_v18 }
 0x1d1   :  { %v987_v62 = vadd.f32 %v4967_v36, %v986_v44  ;;  %4069 = vmatprep.mubr.f32.mxu1 %v1399_v25  ;;  %v5143_v25 = vpop.f32.mrb[57].mxu1 }
 0x1d2   :  { %4070 = vmatmul.mubr.f32.gmra.mrb[118].mxu1 %v1400_v33  ;;  %v1402_v3 = vmax.f32 %v992_v48, 0.0 }
 0x1d3   :  { %v1401_v14 = vmax.f32 %v987_v62, 0.0  ;;  %v3853_v19 = vpop.f32.mrb[58].mxu0  ;;  %v5147_v48 = vpop.f32.mrb[58].mxu1 }
 0x1d4   :  { %v1002_v30 = vadd.f32 %v3853_v19, %v4967_v36  ;;  %v996_v11 = vpop.f32.mrb[59].mxu0  ;;  %5585 = vst [vmem:[#allocation29_spill] sm:$0xff] %v5147_v48 }
 0x1d5   :  { %v997_v22 = vadd.f32 %v4967_v36, %v996_v11  ;;  %4072 = vmatprep.mubr.f32.mxu1 %v1401_v14  ;;  %v5149_v14 = vpop.f32.mrb[59].mxu1 }
 0x1d6   :  { %4073 = vmatmul.mubr.f32.gmra.mrb[120].mxu1 %v1402_v3  ;;  %v1404_v33 = vmax.f32 %v1002_v30, 0.0  ;;  %v1027_v30 = vadd.f32 %v4967_v36, %v4975_v53 }
 0x1d7   :  { %v1403_v45 = vmax.f32 %v997_v22, 0.0  ;;  %v3856_v44 = vpop.f32.mrb[60].mxu0 }
 0x1d8   :  { %v1012_v62 = vadd.f32 %v3856_v44, %v4967_v36  ;;  %v1006_v40 = vpop.f32.mrb[61].mxu0 }
 0x1d9   :  { %v1007_v63 = vadd.f32 %v4967_v36, %v1006_v40  ;;  %4075 = vmatprep.mubr.f32.mxu1 %v1403_v45  ;;  %v5155_v40 = vpop.f32.mrb[60].mxu1 }
 0x1da   :  { %4076 = vmatmul.mubr.f32.gmra.mrb[122].mxu1 %v1404_v33  ;;  %v1406_v3 = vmax.f32 %v1012_v62, 0.0  ;;  %v5157_v33 = vpop.f32.mrb[61].mxu1  ;;  %v1409_v62 = vmax.f32 %v1027_v30, 0.0  ;;  %v1057_v30 = vadd.f32 %v4967_v36, %v4993_v16  ;;  %v1077_v16 = vadd.f32 %v4967_v36, %v5005_v32 }
 0x1db   :  { %v1405_v19 = vmax.f32 %v1007_v63, 0.0  ;;  %v3859_v11 = vpop.f32.mrb[62].mxu0  ;;  %v1032_v63 = vadd.f32 %v4973_v50, %v4967_v36  ;;  %v5163_v53 = vpop.f32.mrb[62].mxu1  ;;  %v1047_v50 = vadd.f32 %v4967_v36, %v4987_v5  ;;  %v1067_v5 = vadd.f32 %v4967_v36, %v4999_v24 }
 0x1dc   :  { %v1022_v22 = vadd.f32 %v3859_v11, %v4967_v36  ;;  %v1016_v18 = vpop.f32.mrb[63].mxu0  ;;  %v1037_v11 = vadd.f32 %v4967_v36, %v4981_v61  ;;  %v1052_v61 = vadd.f32 %v4985_v2, %v4967_v36  ;;  %v1072_v2 = vadd.f32 %v4997_v21, %v4967_v36 }
 0x1dd   :  { %v1017_v44 = vadd.f32 %v4967_v36, %v1016_v18  ;;  %4078 = vmatprep.mubr.f32.mxu1 %v1405_v19  ;;  %v5165_v18 = vpop.f32.mrb[63].mxu1  ;;  %v1410_v19 = vmax.f32 %v1032_v63, 0.0  ;;  %v1415_v63 = vmax.f32 %v1057_v30, 0.0  ;;  %v1087_v24 = vadd.f32 %v4967_v36, %v5011_v41 }
 0x1de   :  { %4079 = vmatmul.mubr.f32.gmra.mrb[124].mxu1 %v1406_v3  ;;  %v1408_v48 = vmax.f32 %v1022_v22, 0.0  ;;  %v1042_v3 = vadd.f32 %v4979_v58, %v4967_v36  ;;  %v1062_v58 = vadd.f32 %v4991_v13, %v4967_v36  ;;  %v1082_v13 = vadd.f32 %v5003_v29, %v4967_v36 }
 0x1df   :  { %v1407_v45 = vmax.f32 %v1017_v44, 0.0  ;;  %v1411_v44 = vmax.f32 %v1037_v11, 0.0  ;;  %v1417_v11 = vmax.f32 %v1067_v5, 0.0  ;;  %v1092_v21 = vadd.f32 %v5009_v38, %v4967_v36 }
 0x1e0   :  { %v1412_v22 = vmax.f32 %v1042_v3, 0.0  ;;  %v1419_v3 = vmax.f32 %v1077_v16, 0.0  ;;  %v1097_v32 = vadd.f32 %v4967_v36, %v5017_v54  ;;  %v1102_v29 = vadd.f32 %v5015_v49, %v4967_v36 }
 0x1e1   :  { %4081 = vmatprep.mubr.f32.mxu1 %v1407_v45  ;;  %v1414_v45 = vmax.f32 %v1052_v61, 0.0  ;;  %v1107_v41 = vadd.f32 %v4967_v36, %v5023_v0  ;;  %v1112_v38 = vadd.f32 %v5021_v60, %v4967_v36  ;;  %v1117_v54 = vadd.f32 %v4967_v36, %v5029_v10 }
 0x1e2   :  { %4082 = vmatmul.mubr.f32.gmra.mrb[126].mxu1 %v1408_v48  ;;  %v1413_v48 = vmax.f32 %v1047_v50, 0.0  ;;  %v1421_v50 = vmax.f32 %v1087_v24, 0.0  ;;  %v1423_v61 = vmax.f32 %v1097_v32, 0.0  ;;  %v1122_v49 = vadd.f32 %v5027_v7, %v4967_v36 }
 0x1e3   :  { %4084 = vmatprep.mubr.f32.mxu1 %v1409_v62  ;;  %v1416_v62 = vmax.f32 %v1062_v58, 0.0  ;;  %v1425_v30 = vmax.f32 %v1107_v41, 0.0  ;;  %v1427_v58 = vmax.f32 %v1117_v54, 0.0  ;;  %v1127_v0 = vadd.f32 %v4967_v36, %v5035_v20 }
 0x1e4   :  { %v1132_v60 = vadd.f32 %v5033_v17, %v4967_v36  ;;  %v1137_v10 = vadd.f32 %v4967_v36, %v5041_v35  ;;  %v1142_v7 = vadd.f32 %v5039_v31, %v4967_v36  ;;  %v1147_v20 = vadd.f32 %v4967_v36, %v5047_v46 }
 0x1e5   :  { %v1429_v5 = vmax.f32 %v1127_v0, 0.0  ;;  %v1152_v17 = vadd.f32 %v5045_v43, %v4967_v36  ;;  %v1157_v35 = vadd.f32 %v4967_v36, %v5053_v59  ;;  %v1162_v31 = vadd.f32 %v5051_v55, %v4967_v36 }
 0x1e6   :  { %4085 = vmatmul.mubr.f32.gmra.mrb[128].mxu1 %v1410_v19  ;;  %v1418_v19 = vmax.f32 %v1072_v2, 0.0  ;;  %v1431_v2 = vmax.f32 %v1137_v10, 0.0  ;;  %v1433_v16 = vmax.f32 %v1147_v20, 0.0  ;;  %v1167_v46 = vadd.f32 %v4967_v36, %v5059_v9 }
 0x1e7   :  { %4087 = vmatprep.mubr.f32.mxu1 %v1411_v44  ;;  %v1420_v44 = vmax.f32 %v1082_v13, 0.0  ;;  %v1435_v13 = vmax.f32 %v1157_v35, 0.0  ;;  %v1172_v43 = vadd.f32 %v5057_v4, %v4967_v36  ;;  %v1177_v59 = vadd.f32 %v4967_v36, %v5065_v27 }
 0x1e8   :  { %v1437_v24 = vmax.f32 %v1167_v46, 0.0  ;;  %v1182_v55 = vadd.f32 %v5063_v23, %v4967_v36  ;;  %v1187_v9 = vadd.f32 %v4967_v36, %v5071_v42  ;;  %v1192_v4 = vadd.f32 %v5069_v37, %v4967_v36  ;;  %v5588_v46 = vld [vmem:[#allocation23_spill] sm:$0xff] }
 0x1e9   :  { %v1197_v27 = vadd.f32 %v4967_v36, %v5077_v57  ;;  %v1202_v23 = vadd.f32 %v5075_v51, %v4967_v36  ;;  %v1207_v42 = vadd.f32 %v4967_v36, %v5083_v12  ;;  %v1212_v37 = vadd.f32 %v5081_v6, %v4967_v36 }
 0x1ea   :  { %4088 = vmatmul.mubr.f32.gmra.mrb[130].mxu1 %v1412_v22  ;;  %v1422_v22 = vmax.f32 %v1092_v21, 0.0  ;;  %v1439_v21 = vmax.f32 %v1177_v59, 0.0  ;;  %v1441_v32 = vmax.f32 %v1187_v9, 0.0  ;;  %v1217_v57 = vadd.f32 %v4967_v36, %v5089_v34 }
 0x1eb   :  { %4090 = vmatprep.mubr.f32.mxu1 %v1413_v48  ;;  %v1424_v48 = vmax.f32 %v1102_v29, 0.0  ;;  %v1443_v29 = vmax.f32 %v1197_v27, 0.0  ;;  %v1445_v41 = vmax.f32 %v1207_v42, 0.0  ;;  %v1222_v51 = vadd.f32 %v5087_v28, %v4967_v36 }
 0x1ec   :  { %v1227_v12 = vadd.f32 %v4967_v36, %v5095_v56  ;;  %v1232_v6 = vadd.f32 %v5093_v47, %v4967_v36  ;;  %v1237_v34 = vadd.f32 %v4967_v36, %v5101_v15  ;;  %v1242_v28 = vadd.f32 %v5099_v8, %v4967_v36 }
 0x1ed   :  { %v1247_v56 = vadd.f32 %v4967_v36, %v5107_v39  ;;  %v1252_v47 = vadd.f32 %v5105_v26, %v4967_v36  ;;  %v1257_v15 = vadd.f32 %v4967_v36, %v5113_v1 }
 0x1ee   :  { %4091 = vmatmul.mubr.f32.gmra.mrb[132].mxu1 %v1414_v45  ;;  %v1426_v45 = vmax.f32 %v1112_v38, 0.0  ;;  %v1447_v38 = vmax.f32 %v1217_v57, 0.0  ;;  %v1449_v54 = vmax.f32 %v1227_v12, 0.0  ;;  %v1452_v0 = vmax.f32 %v1242_v28, 0.0  ;;  %v5592_v12 = vld [vmem:[#allocation27_spill] sm:$0xff] }
 0x1ef   :  { %4093 = vmatprep.mubr.f32.mxu1 %v1415_v63  ;;  %v1428_v63 = vmax.f32 %v1122_v49, 0.0  ;;  %v1451_v49 = vmax.f32 %v1237_v34, 0.0  ;;  %v1454_v39 = vmax.f32 %v1252_v47, 0.0 }
 0x1f2   :  { %4094 = vmatmul.mubr.f32.gmra.mrb[134].mxu1 %v1416_v62  ;;  %v1430_v62 = vmax.f32 %v1132_v60, 0.0 }
 0x1f3   :  { %4096 = vmatprep.mubr.f32.mxu1 %v1417_v11  ;;  %v1432_v11 = vmax.f32 %v1142_v7, 0.0  ;;  %v1455_v7 = vmax.f32 %v1257_v15, 0.0 }
 0x1f6   :  { %4097 = vmatmul.mubr.f32.gmra.mrb[136].mxu1 %v1418_v19  ;;  %v1434_v19 = vmax.f32 %v1152_v17, 0.0 }
 0x1f7   :  { %4099 = vmatprep.mubr.f32.mxu1 %v1419_v3  ;;  %v1436_v3 = vmax.f32 %v1162_v31, 0.0  ;;  %v5587_v31 = vld [vmem:[#allocation20_spill] sm:$0xff] }
 0x1fa   :  { %4100 = vmatmul.mubr.f32.gmra.mrb[138].mxu1 %v1420_v44  ;;  %v1438_v44 = vmax.f32 %v1172_v43, 0.0 }
 0x1fb   :  { %4102 = vmatprep.mubr.f32.mxu1 %v1421_v50  ;;  %v1440_v50 = vmax.f32 %v1182_v55, 0.0 }
 0x1fe   :  { %4103 = vmatmul.mubr.f32.gmra.mrb[140].mxu1 %v1422_v22  ;;  %v1442_v22 = vmax.f32 %v1192_v4, 0.0  ;;  %v5589_v4 = vld [vmem:[#allocation22_spill] sm:$0xff] }
 0x1ff   :  { %4105 = vmatprep.mubr.f32.mxu1 %v1423_v61  ;;  %v1444_v61 = vmax.f32 %v1202_v23, 0.0 }
 0x202   :  { %4106 = vmatmul.mubr.f32.gmra.mrb[142].mxu1 %v1424_v48  ;;  %v1446_v48 = vmax.f32 %v1212_v37, 0.0 }
 0x203   :  { %4108 = vmatprep.mubr.f32.mxu1 %v1425_v30  ;;  %v1448_v30 = vmax.f32 %v1222_v51, 0.0 }
 0x206   :  { %4109 = vmatmul.mubr.f32.gmra.mrb[144].mxu1 %v1426_v45  ;;  %v1450_v45 = vmax.f32 %v1232_v6, 0.0 }
 0x207   :  { %4111 = vmatprep.mubr.f32.mxu1 %v1427_v58  ;;  %v5251_v58 = vld [vmem:[#allocation10] ss:$0 sm:$0xff] }
 0x20a   :  { %4112 = vmatmul.mubr.f32.gmra.mrb[146].mxu1 %v1428_v63  ;;  %v1453_v63 = vmax.f32 %v1247_v56, 0.0 }
 0x20b   :  { %4114 = vmatprep.mubr.f32.mxu1 %v1429_v5 }
 0x20e   :  { %4115 = vmatmul.mubr.f32.gmra.mrb[148].mxu1 %v1430_v62  ;;  %v1262_v62 = vadd.f32 %v5111_v52, %v4967_v36 }
 0x20f   :  { %4117 = vmatprep.mubr.f32.mxu1 %v1431_v2  ;;  %v5586_v2 = vld [vmem:[#allocation21_spill] sm:$0xff] }
 0x210   :  { %v1267_v26 = vadd.f32 %v4967_v36, %v5586_v2  ;;  %v5594_v2 = vld [vmem:[#allocation28_spill] sm:$0xff] }
 0x212   :  { %4118 = vmatmul.mubr.f32.gmra.mrb[150].mxu1 %v1432_v11  ;;  %v1457_v52 = vmax.f32 %v1267_v26, 0.0 }
 0x213   :  { %4120 = vmatprep.mubr.f32.mxu1 %v1433_v16 }
 0x216   :  { %4121 = vmatmul.mubr.f32.gmra.mrb[152].mxu1 %v1434_v19  ;;  %v1456_v19 = vmax.f32 %v1262_v62, 0.0 }
 0x217   :  { %4123 = vmatprep.mubr.f32.mxu1 %v1435_v13  ;;  %v1272_v13 = vadd.f32 %v5587_v31, %v4967_v36 }
 0x219   :  { %v1458_v9 = vmax.f32 %v1272_v13, 0.0  ;;  %v5595_v13 = vld [vmem:[#allocation29_spill] sm:$0xff] }
 0x21a   :  { %4124 = vmatmul.mubr.f32.gmra.mrb[154].mxu1 %v1436_v3  ;;  %v1277_v3 = vadd.f32 %v4967_v36, %v5588_v46  ;;  %v5590_v36 = vld [vmem:[#allocation25_spill] sm:$0xff] }
 0x21b   :  { %4126 = vmatprep.mubr.f32.mxu1 %v1437_v24 }
 0x21c   :  { %v1459_v27 = vmax.f32 %v1277_v3, 0.0 }
 0x21e   :  { %4127 = vmatmul.mubr.f32.gmra.mrb[156].mxu1 %v1438_v44 }
 0x21f   :  { %4129 = vmatprep.mubr.f32.mxu1 %v1439_v21 }
 0x222   :  { %4130 = vmatmul.mubr.f32.gmra.mrb[158].mxu1 %v1440_v50  ;;  %v5271_v50 = vld [vmem:[#allocation7] ss:$0 sm:$0xff] }
 0x223   :  { %4132 = vmatprep.mubr.f32.mxu1 %v1441_v32  ;;  %v1282_v32 = vadd.f32 %v5271_v50, %v5589_v4  ;;  %v1307_v15 = vadd.f32 %v5271_v50, %v5143_v25  ;;  %v1312_v26 = vadd.f32 %v5271_v50, %v5594_v2  ;;  %v1317_v25 = vadd.f32 %v5271_v50, %v5149_v14 }
 0x224   :  { %v1327_v14 = vadd.f32 %v5271_v50, %v5157_v33  ;;  %v1337_v33 = vadd.f32 %v5271_v50, %v5165_v18 }
 0x225   :  { %v1460_v57 = vmax.f32 %v1282_v32, 0.0  ;;  %v1466_v31 = vmax.f32 %v1312_v26, 0.0  ;;  %v1467_v46 = vmax.f32 %v1317_v25, 0.0 }
 0x226   :  { %4133 = vmatmul.mubr.f32.gmra.mrb[160].mxu1 %v1442_v22  ;;  %v1287_v22 = vadd.f32 %v5271_v50, %v5590_v36  ;;  %v1469_v4 = vmax.f32 %v1327_v14, 0.0 }
 0x227   :  { %4135 = vmatprep.mubr.f32.mxu1 %v1443_v29 }
 0x22a   :  { %4136 = vmatmul.mubr.f32.gmra.mrb[162].mxu1 %v1444_v61 }
 0x22b   :  { %4138 = vmatprep.mubr.f32.mxu1 %v1445_v41 }
 0x22e   :  { %4139 = vmatmul.mubr.f32.gmra.mrb[164].mxu1 %v1446_v48  ;;  %v5591_v48 = vld [vmem:[#allocation24_spill] sm:$0xff] }
 0x22f   :  { %4141 = vmatprep.mubr.f32.mxu1 %v1447_v38  ;;  %v1292_v51 = vadd.f32 %v5271_v50, %v5591_v48  ;;  %v1461_v38 = vmax.f32 %v1287_v22, 0.0 }
 0x231   :  { %v1462_v56 = vmax.f32 %v1292_v51, 0.0 }
 0x232   :  { %4142 = vmatmul.mubr.f32.gmra.mrb[166].mxu1 %v1448_v30  ;;  %v1297_v30 = vadd.f32 %v5271_v50, %v5592_v12 }
 0x233   :  { %4144 = vmatprep.mubr.f32.mxu1 %v1449_v54 }
 0x236   :  { %4145 = vmatmul.mubr.f32.gmra.mrb[168].mxu1 %v1450_v45 }
 0x237   :  { %4147 = vmatprep.mubr.f32.mxu1 %v1451_v49 }
 0x239   :  { %v3990_v60 = vpop.f32.mrb[64].mxu1 }
 0x23a   :  { %v1568_v5 = vadd.f32 %v3990_v60, %v5251_v58  ;;  %v1562_v8 = vpop.f32.mrb[65].mxu1  ;;  %4148 = vmatmul.mubr.f32.gmra.mrb[170].mxu1 %v1452_v0  ;;  %v5593_v0 = vld [vmem:[#allocation26_spill] sm:$0xff] }
 0x23b   :  { %v1563_v10 = vadd.f32 %v5251_v58, %v1562_v8  ;;  %4150 = vmatprep.mubr.f32.mxu1 %v1453_v63  ;;  %v1302_v47 = vadd.f32 %v5271_v50, %v5593_v0  ;;  %v1463_v63 = vmax.f32 %v1297_v30, 0.0 }
 0x23c   :  { %v2202_v17 = vmax.f32 %v1568_v5, 0.0 }
 0x23d   :  { %v2201_v20 = vmax.f32 %v1563_v10, 0.0  ;;  %v3993_v11 = vpop.f32.mrb[66].mxu1 }
 0x23e   :  { %v1578_v1 = vadd.f32 %v3993_v11, %v5251_v58  ;;  %v1572_v16 = vpop.f32.mrb[67].mxu1  ;;  %4151 = vmatmul.mubr.f32.gmra.mrb[172].mxu1 %v1454_v39 }
 0x23f   :  { %v1573_v35 = vadd.f32 %v5251_v58, %v1572_v16  ;;  %4153 = vmatprep.mubr.f32.mxu1 %v1455_v7  ;;  %4212 = vmatprep.mubr.f32.mxu0 %v2201_v20  ;;  %v1464_v7 = vmax.f32 %v1302_v47, 0.0  ;;  %v1465_v20 = vmax.f32 %v1307_v15, 0.0 }
 0x240   :  { %4213 = vmatmul.mubr.f32.vlgmr.msra.gmra.mrb[64].mxu0 %v2202_v17  ;;  %v2204_v59 = vmax.f32 %v1578_v1, 0.0 }
 0x241   :  { %v2203_v43 = vmax.f32 %v1573_v35, 0.0  ;;  %v3996_v24 = vpop.f32.mrb[68].mxu1 }
 0x242   :  { %v1588_v44 = vadd.f32 %v3996_v24, %v5251_v58  ;;  %v1582_v55 = vpop.f32.mrb[69].mxu1  ;;  %4154 = vmatmul.mubr.f32.gmra.mrb[174].mxu1 %v1456_v19 }
 0x243   :  { %v1583_v21 = vadd.f32 %v5251_v58, %v1582_v55  ;;  %4156 = vmatprep.mubr.f32.mxu1 %v1457_v52  ;;  %4215 = vmatprep.mubr.f32.mxu0 %v2203_v43  ;;  %v1322_v52 = vadd.f32 %v5271_v50, %v5595_v13 }
 0x244   :  { %4216 = vmatmul.mubr.f32.gmra.mrb[66].mxu0 %v2204_v59  ;;  %v2206_v42 = vmax.f32 %v1588_v44, 0.0 }
 0x245   :  { %v2205_v23 = vmax.f32 %v1583_v21, 0.0  ;;  %v3999_v29 = vpop.f32.mrb[70].mxu1  ;;  %v1468_v21 = vmax.f32 %v1322_v52, 0.0 }
 0x246   :  { %v1598_v61 = vadd.f32 %v3999_v29, %v5251_v58  ;;  %v1592_v37 = vpop.f32.mrb[71].mxu1  ;;  %4157 = vmatmul.mubr.f32.gmra.mrb[176].mxu1 %v1458_v9  ;;  %v1332_v9 = vadd.f32 %v5271_v50, %v5155_v40  ;;  %v1342_v40 = vadd.f32 %v5271_v50, %v5163_v53 }
 0x247   :  { %v1593_v41 = vadd.f32 %v5251_v58, %v1592_v37  ;;  %4159 = vmatprep.mubr.f32.mxu1 %v1459_v27  ;;  %4218 = vmatprep.mubr.f32.mxu0 %v2205_v23 }
 0x248   :  { %4219 = vmatmul.mubr.f32.gmra.mrb[68].mxu0 %v2206_v42  ;;  %v2208_v34 = vmax.f32 %v1598_v61, 0.0  ;;  %v1470_v42 = vmax.f32 %v1332_v9, 0.0  ;;  %v1471_v61 = vmax.f32 %v1337_v33, 0.0 }
 0x249   :  { %v2207_v6 = vmax.f32 %v1593_v41, 0.0  ;;  %v4002_v54 = vpop.f32.mrb[72].mxu1 }
 0x24a   :  { %v1608_v45 = vadd.f32 %v4002_v54, %v5251_v58  ;;  %v1602_v28 = vpop.f32.mrb[73].mxu1  ;;  %4160 = vmatmul.mubr.f32.gmra.mrb[178].mxu1 %v1460_v57 }
 0x24b   :  { %v1603_v49 = vadd.f32 %v5251_v58, %v1602_v28  ;;  %4162 = vmatprep.mubr.f32.mxu1 %v1461_v38  ;;  %4221 = vmatprep.mubr.f32.mxu0 %v2207_v6  ;;  %v1472_v38 = vmax.f32 %v1342_v40, 0.0 }
 0x24c   :  { %4222 = vmatmul.mubr.f32.gmra.mrb[70].mxu0 %v2208_v34  ;;  %v2210_v8 = vmax.f32 %v1608_v45, 0.0 }
 0x24d   :  { %v2209_v60 = vmax.f32 %v1603_v49, 0.0  ;;  %v4005_v5 = vpop.f32.mrb[74].mxu1 }
 0x24e   :  { %v1618_v10 = vadd.f32 %v4005_v5, %v5251_v58  ;;  %v1612_v39 = vpop.f32.mrb[75].mxu1  ;;  %4163 = vmatmul.mubr.f32.gmra.mrb[180].mxu1 %v1462_v56 }
 0x24f   :  { %v1613_v62 = vadd.f32 %v5251_v58, %v1612_v39  ;;  %4165 = vmatprep.mubr.f32.mxu1 %v1463_v63  ;;  %4224 = vmatprep.mubr.f32.mxu0 %v2209_v60 }
 0x250   :  { %4225 = vmatmul.mubr.f32.gmra.mrb[72].mxu0 %v2210_v8  ;;  %v2212_v1 = vmax.f32 %v1618_v10, 0.0 }
 0x251   :  { %v2211_v11 = vmax.f32 %v1613_v62, 0.0  ;;  %v4008_v17 = vpop.f32.mrb[76].mxu1 }
 0x252   :  { %v1628_v16 = vadd.f32 %v4008_v17, %v5251_v58  ;;  %v1622_v35 = vpop.f32.mrb[77].mxu1  ;;  %4166 = vmatmul.mubr.f32.gmra.mrb[182].mxu1 %v1464_v7 }
 0x253   :  { %v1623_v19 = vadd.f32 %v5251_v58, %v1622_v35  ;;  %4168 = vmatprep.mubr.f32.mxu1 %v1465_v20  ;;  %4227 = vmatprep.mubr.f32.mxu0 %v2211_v11 }
 0x254   :  { %4228 = vmatmul.mubr.f32.gmra.mrb[74].mxu0 %v2212_v1  ;;  %v2214_v24 = vmax.f32 %v1628_v16, 0.0 }
 0x255   :  { %v2213_v3 = vmax.f32 %v1623_v19, 0.0  ;;  %v4011_v43 = vpop.f32.mrb[78].mxu1 }
 0x256   :  { %v1638_v59 = vadd.f32 %v4011_v43, %v5251_v58  ;;  %v1632_v44 = vpop.f32.mrb[79].mxu1  ;;  %4169 = vmatmul.mubr.f32.gmra.mrb[184].mxu1 %v1466_v31 }
 0x257   :  { %v1633_v55 = vadd.f32 %v5251_v58, %v1632_v44  ;;  %4171 = vmatprep.mubr.f32.mxu1 %v1467_v46  ;;  %4230 = vmatprep.mubr.f32.mxu0 %v2213_v3 }
 0x258   :  { %4231 = vmatmul.mubr.f32.gmra.mrb[76].mxu0 %v2214_v24  ;;  %v2216_v36 = vmax.f32 %v1638_v59, 0.0 }
 0x259   :  { %v2215_v32 = vmax.f32 %v1633_v55, 0.0  ;;  %v4014_v27 = vpop.f32.mrb[80].mxu1 }
 0x25a   :  { %v1648_v22 = vadd.f32 %v4014_v27, %v5251_v58  ;;  %v1642_v23 = vpop.f32.mrb[81].mxu1  ;;  %4172 = vmatmul.mubr.f32.gmra.mrb[186].mxu1 %v1468_v21 }
 0x25b   :  { %v1643_v29 = vadd.f32 %v5251_v58, %v1642_v23  ;;  %4174 = vmatprep.mubr.f32.mxu1 %v1469_v4  ;;  %4233 = vmatprep.mubr.f32.mxu0 %v2215_v32 }
 0x25c   :  { %4234 = vmatmul.mubr.f32.gmra.mrb[78].mxu0 %v2216_v36  ;;  %v2218_v18 = vmax.f32 %v1648_v22, 0.0 }
 0x25d   :  { %v2217_v37 = vmax.f32 %v1643_v29, 0.0  ;;  %v4017_v41 = vpop.f32.mrb[82].mxu1 }
 0x25e   :  { %v1658_v57 = vadd.f32 %v4017_v41, %v5251_v58  ;;  %v1652_v48 = vpop.f32.mrb[83].mxu1  ;;  %4175 = vmatmul.mubr.f32.gmra.mrb[188].mxu1 %v1470_v42 }
 0x25f   :  { %v1653_v51 = vadd.f32 %v5251_v58, %v1652_v48  ;;  %4177 = vmatprep.mubr.f32.mxu1 %v1471_v61  ;;  %4236 = vmatprep.mubr.f32.mxu0 %v2217_v37 }
 0x260   :  { %4237 = vmatmul.mubr.f32.gmra.mrb[80].mxu0 %v2218_v18  ;;  %v2220_v6 = vmax.f32 %v1658_v57, 0.0 }
 0x261   :  { %v2219_v12 = vmax.f32 %v1653_v51, 0.0  ;;  %v4020_v30 = vpop.f32.mrb[84].mxu1 }
 0x262   :  { %v1668_v53 = vadd.f32 %v4020_v30, %v5251_v58  ;;  %v1662_v50 = vpop.f32.mrb[85].mxu1  ;;  %4178 = vmatmul.mubr.f32.gmra.mrb[190].mxu1 %v1472_v38 }
 0x263   :  { %v1663_v54 = vadd.f32 %v5251_v58, %v1662_v50  ;;  %4239 = vmatprep.mubr.f32.mxu0 %v2219_v12 }
 0x264   :  { %4240 = vmatmul.mubr.f32.gmra.mrb[82].mxu0 %v2220_v6  ;;  %v2222_v28 = vmax.f32 %v1668_v53, 0.0 }
 0x265   :  { %v2221_v34 = vmax.f32 %v1663_v54, 0.0  ;;  %v4023_v45 = vpop.f32.mrb[86].mxu1 }
 0x266   :  { %v1678_v49 = vadd.f32 %v4023_v45, %v5251_v58  ;;  %v1672_v56 = vpop.f32.mrb[87].mxu1 }
 0x267   :  { %v1673_v0 = vadd.f32 %v5251_v58, %v1672_v56  ;;  %4242 = vmatprep.mubr.f32.mxu0 %v2221_v34 }
 0x268   :  { %4243 = vmatmul.mubr.f32.gmra.mrb[84].mxu0 %v2222_v28  ;;  %v2224_v15 = vmax.f32 %v1678_v49, 0.0 }
 0x269   :  { %v2223_v47 = vmax.f32 %v1673_v0, 0.0  ;;  %v4026_v63 = vpop.f32.mrb[88].mxu1 }
 0x26a   :  { %v1688_v60 = vadd.f32 %v4026_v63, %v5251_v58  ;;  %v1682_v5 = vpop.f32.mrb[89].mxu1 }
 0x26b   :  { %v1683_v8 = vadd.f32 %v5251_v58, %v1682_v5  ;;  %4245 = vmatprep.mubr.f32.mxu0 %v2223_v47 }
 0x26c   :  { %4246 = vmatmul.mubr.f32.gmra.mrb[86].mxu0 %v2224_v15  ;;  %v2226_v62 = vmax.f32 %v1688_v60, 0.0 }
 0x26d   :  { %v2225_v10 = vmax.f32 %v1683_v8, 0.0  ;;  %v4029_v39 = vpop.f32.mrb[90].mxu1 }
 0x26e   :  { %v1698_v7 = vadd.f32 %v4029_v39, %v5251_v58  ;;  %v1692_v2 = vpop.f32.mrb[91].mxu1 }
 0x26f   :  { %v1693_v26 = vadd.f32 %v5251_v58, %v1692_v2  ;;  %4248 = vmatprep.mubr.f32.mxu0 %v2225_v10 }
 0x270   :  { %4249 = vmatmul.mubr.f32.gmra.mrb[88].mxu0 %v2226_v62  ;;  %v2228_v11 = vmax.f32 %v1698_v7, 0.0 }
 0x271   :  { %v2227_v20 = vmax.f32 %v1693_v26, 0.0  ;;  %v4032_v25 = vpop.f32.mrb[92].mxu1 }
 0x272   :  { %v1708_v17 = vadd.f32 %v4032_v25, %v5251_v58  ;;  %v1702_v1 = vpop.f32.mrb[93].mxu1 }
 0x273   :  { %v1703_v16 = vadd.f32 %v5251_v58, %v1702_v1  ;;  %4251 = vmatprep.mubr.f32.mxu0 %v2227_v20 }
 0x274   :  { %4252 = vmatmul.mubr.f32.gmra.mrb[90].mxu0 %v2228_v11  ;;  %v2230_v31 = vmax.f32 %v1708_v17, 0.0 }
 0x275   :  { %v2229_v35 = vmax.f32 %v1703_v16, 0.0  ;;  %v4035_v19 = vpop.f32.mrb[94].mxu1 }
 0x276   :  { %v1718_v13 = vadd.f32 %v4035_v19, %v5251_v58  ;;  %v1712_v52 = vpop.f32.mrb[95].mxu1 }
 0x277   :  { %v1713_v46 = vadd.f32 %v5251_v58, %v1712_v52  ;;  %4254 = vmatprep.mubr.f32.mxu0 %v2229_v35 }
 0x278   :  { %4255 = vmatmul.mubr.f32.gmra.mrb[92].mxu0 %v2230_v31  ;;  %v2232_v43 = vmax.f32 %v1718_v13, 0.0 }
 0x279   :  { %v2231_v14 = vmax.f32 %v1713_v46, 0.0  ;;  %v4038_v3 = vpop.f32.mrb[96].mxu1 }
 0x27a   :  { %v1728_v24 = vadd.f32 %v4038_v3, %v5251_v58  ;;  %v1722_v59 = vpop.f32.mrb[97].mxu1 }
 0x27b   :  { %v1723_v44 = vadd.f32 %v5251_v58, %v1722_v59  ;;  %4257 = vmatprep.mubr.f32.mxu0 %v2231_v14 }
 0x27c   :  { %4258 = vmatmul.mubr.f32.gmra.mrb[94].mxu0 %v2232_v43  ;;  %v2234_v9 = vmax.f32 %v1728_v24, 0.0 }
 0x27d   :  { %v2233_v55 = vmax.f32 %v1723_v44, 0.0  ;;  %v4041_v21 = vpop.f32.mrb[98].mxu1 }
 0x27e   :  { %v1738_v4 = vadd.f32 %v4041_v21, %v5251_v58  ;;  %v1732_v33 = vpop.f32.mrb[99].mxu1 }
 0x27f   :  { %v1733_v32 = vadd.f32 %v5251_v58, %v1732_v33  ;;  %4260 = vmatprep.mubr.f32.mxu0 %v2233_v55 }
 0x280   :  { %4261 = vmatmul.mubr.f32.gmra.mrb[96].mxu0 %v2234_v9  ;;  %v2236_v22 = vmax.f32 %v1738_v4, 0.0 }
 0x281   :  { %v2235_v27 = vmax.f32 %v1733_v32, 0.0  ;;  %v4044_v36 = vpop.f32.mrb[100].mxu1 }
 0x282   :  { %v1748_v23 = vadd.f32 %v4044_v36, %v5251_v58  ;;  %v1742_v29 = vpop.f32.mrb[101].mxu1 }
 0x283   :  { %v1743_v42 = vadd.f32 %v5251_v58, %v1742_v29  ;;  %4263 = vmatprep.mubr.f32.mxu0 %v2235_v27 }
 0x284   :  { %4264 = vmatmul.mubr.f32.gmra.mrb[98].mxu0 %v2236_v22  ;;  %v2238_v37 = vmax.f32 %v1748_v23, 0.0 }
 0x285   :  { %v2237_v40 = vmax.f32 %v1743_v42, 0.0  ;;  %v4047_v61 = vpop.f32.mrb[102].mxu1 }
 0x286   :  { %v1758_v41 = vadd.f32 %v4047_v61, %v5251_v58  ;;  %v1752_v18 = vpop.f32.mrb[103].mxu1 }
 0x287   :  { %v1753_v57 = vadd.f32 %v5251_v58, %v1752_v18  ;;  %4266 = vmatprep.mubr.f32.mxu0 %v2237_v40 }
 0x288   :  { %4267 = vmatmul.mubr.f32.gmra.mrb[100].mxu0 %v2238_v37  ;;  %v2240_v38 = vmax.f32 %v1758_v41, 0.0 }
 0x289   :  { %v2239_v48 = vmax.f32 %v1753_v57, 0.0  ;;  %v4050_v51 = vpop.f32.mrb[104].mxu1 }
 0x28a   :  { %v1768_v12 = vadd.f32 %v4050_v51, %v5251_v58  ;;  %v1762_v30 = vpop.f32.mrb[105].mxu1 }
 0x28b   :  { %v1763_v6 = vadd.f32 %v5251_v58, %v1762_v30  ;;  %4269 = vmatprep.mubr.f32.mxu0 %v2239_v48 }
 0x28c   :  { %4270 = vmatmul.mubr.f32.gmra.mrb[102].mxu0 %v2240_v38  ;;  %v2242_v54 = vmax.f32 %v1768_v12, 0.0 }
 0x28d   :  { %v2241_v53 = vmax.f32 %v1763_v6, 0.0  ;;  %v4053_v50 = vpop.f32.mrb[106].mxu1 }
 0x28e   :  { %v1778_v34 = vadd.f32 %v4053_v50, %v5251_v58  ;;  %v1772_v45 = vpop.f32.mrb[107].mxu1 }
 0x28f   :  { %v1773_v28 = vadd.f32 %v5251_v58, %v1772_v45  ;;  %4272 = vmatprep.mubr.f32.mxu0 %v2241_v53 }
 0x290   :  { %4273 = vmatmul.mubr.f32.gmra.mrb[104].mxu0 %v2242_v54  ;;  %v2244_v0 = vmax.f32 %v1778_v34, 0.0 }
 0x291   :  { %v2243_v49 = vmax.f32 %v1773_v28, 0.0  ;;  %v4056_v56 = vpop.f32.mrb[108].mxu1 }
 0x292   :  { %v1788_v47 = vadd.f32 %v4056_v56, %v5251_v58  ;;  %v1782_v63 = vpop.f32.mrb[109].mxu1 }
 0x293   :  { %v1783_v15 = vadd.f32 %v5251_v58, %v1782_v63  ;;  %4275 = vmatprep.mubr.f32.mxu0 %v2243_v49 }
 0x294   :  { %4276 = vmatmul.mubr.f32.gmra.mrb[106].mxu0 %v2244_v0  ;;  %v2246_v8 = vmax.f32 %v1788_v47, 0.0 }
 0x295   :  { %v2245_v60 = vmax.f32 %v1783_v15, 0.0  ;;  %v4059_v5 = vpop.f32.mrb[110].mxu1 }
 0x296   :  { %v1798_v10 = vadd.f32 %v4059_v5, %v5251_v58  ;;  %v1792_v39 = vpop.f32.mrb[111].mxu1 }
 0x297   :  { %v1793_v62 = vadd.f32 %v5251_v58, %v1792_v39  ;;  %4278 = vmatprep.mubr.f32.mxu0 %v2245_v60 }
 0x298   :  { %4279 = vmatmul.mubr.f32.gmra.mrb[108].mxu0 %v2246_v8  ;;  %v2248_v26 = vmax.f32 %v1798_v10, 0.0 }
 0x299   :  { %v2247_v7 = vmax.f32 %v1793_v62, 0.0  ;;  %v4062_v2 = vpop.f32.mrb[112].mxu1 }
 0x29a   :  { %v1808_v20 = vadd.f32 %v4062_v2, %v5251_v58  ;;  %v1802_v25 = vpop.f32.mrb[113].mxu1 }
 0x29b   :  { %v1803_v11 = vadd.f32 %v5251_v58, %v1802_v25  ;;  %4281 = vmatprep.mubr.f32.mxu0 %v2247_v7 }
 0x29c   :  { %4282 = vmatmul.mubr.f32.gmra.mrb[110].mxu0 %v2248_v26  ;;  %v2250_v16 = vmax.f32 %v1808_v20, 0.0 }
 0x29d   :  { %v2249_v17 = vmax.f32 %v1803_v11, 0.0  ;;  %v4065_v1 = vpop.f32.mrb[114].mxu1 }
 0x29e   :  { %v1818_v35 = vadd.f32 %v4065_v1, %v5251_v58  ;;  %v1812_v19 = vpop.f32.mrb[115].mxu1 }
 0x29f   :  { %v1813_v31 = vadd.f32 %v5251_v58, %v1812_v19  ;;  %4284 = vmatprep.mubr.f32.mxu0 %v2249_v17 }
 0x2a0   :  { %4285 = vmatmul.mubr.f32.gmra.mrb[112].mxu0 %v2250_v16  ;;  %v2252_v46 = vmax.f32 %v1818_v35, 0.0 }
 0x2a1   :  { %v2251_v13 = vmax.f32 %v1813_v31, 0.0  ;;  %v4068_v52 = vpop.f32.mrb[116].mxu1 }
 0x2a2   :  { %v1828_v14 = vadd.f32 %v4068_v52, %v5251_v58  ;;  %v1822_v3 = vpop.f32.mrb[117].mxu1 }
 0x2a3   :  { %v1823_v43 = vadd.f32 %v5251_v58, %v1822_v3  ;;  %4287 = vmatprep.mubr.f32.mxu0 %v2251_v13 }
 0x2a4   :  { %4288 = vmatmul.mubr.f32.gmra.mrb[114].mxu0 %v2252_v46  ;;  %v2254_v44 = vmax.f32 %v1828_v14, 0.0 }
 0x2a5   :  { %v2253_v24 = vmax.f32 %v1823_v43, 0.0  ;;  %v4071_v59 = vpop.f32.mrb[118].mxu1 }
 0x2a6   :  { %v1838_v55 = vadd.f32 %v4071_v59, %v5251_v58  ;;  %v1832_v21 = vpop.f32.mrb[119].mxu1 }
 0x2a7   :  { %v1833_v9 = vadd.f32 %v5251_v58, %v1832_v21  ;;  %4290 = vmatprep.mubr.f32.mxu0 %v2253_v24 }
 0x2a8   :  { %4291 = vmatmul.mubr.f32.gmra.mrb[116].mxu0 %v2254_v44  ;;  %v2256_v32 = vmax.f32 %v1838_v55, 0.0 }
 0x2a9   :  { %v2255_v4 = vmax.f32 %v1833_v9, 0.0  ;;  %v4074_v33 = vpop.f32.mrb[120].mxu1 }
 0x2aa   :  { %v1848_v27 = vadd.f32 %v4074_v33, %v5251_v58  ;;  %v1842_v36 = vpop.f32.mrb[121].mxu1 }
 0x2ab   :  { %v1843_v22 = vadd.f32 %v5251_v58, %v1842_v36  ;;  %4293 = vmatprep.mubr.f32.mxu0 %v2255_v4 }
 0x2ac   :  { %4294 = vmatmul.mubr.f32.gmra.mrb[118].mxu0 %v2256_v32  ;;  %v2258_v42 = vmax.f32 %v1848_v27, 0.0 }
 0x2ad   :  { %v2257_v23 = vmax.f32 %v1843_v22, 0.0  ;;  %v4077_v29 = vpop.f32.mrb[122].mxu1 }
 0x2ae   :  { %v1858_v40 = vadd.f32 %v4077_v29, %v5251_v58  ;;  %v1852_v61 = vpop.f32.mrb[123].mxu1 }
 0x2af   :  { %v1853_v37 = vadd.f32 %v5251_v58, %v1852_v61  ;;  %4296 = vmatprep.mubr.f32.mxu0 %v2257_v23 }
 0x2b0   :  { %4297 = vmatmul.mubr.f32.gmra.mrb[120].mxu0 %v2258_v42  ;;  %v2260_v57 = vmax.f32 %v1858_v40, 0.0 }
 0x2b1   :  { %v2259_v41 = vmax.f32 %v1853_v37, 0.0  ;;  %v4080_v18 = vpop.f32.mrb[124].mxu1 }
 0x2b2   :  { %v1868_v48 = vadd.f32 %v4080_v18, %v5251_v58  ;;  %v1862_v51 = vpop.f32.mrb[125].mxu1 }
 0x2b3   :  { %v1863_v38 = vadd.f32 %v5251_v58, %v1862_v51  ;;  %4299 = vmatprep.mubr.f32.mxu0 %v2259_v41 }
 0x2b4   :  { %4300 = vmatmul.mubr.f32.gmra.mrb[122].mxu0 %v2260_v57  ;;  %v2262_v6 = vmax.f32 %v1868_v48, 0.0 }
 0x2b5   :  { %v2261_v12 = vmax.f32 %v1863_v38, 0.0  ;;  %v4083_v30 = vpop.f32.mrb[126].mxu1 }
 0x2b6   :  { %v1878_v53 = vadd.f32 %v4083_v30, %v5251_v58  ;;  %v1872_v50 = vpop.f32.mrb[127].mxu1 }
 0x2b7   :  { %v1873_v54 = vadd.f32 %v5251_v58, %v1872_v50  ;;  %4302 = vmatprep.mubr.f32.mxu0 %v2261_v12 }
 0x2b8   :  { %4303 = vmatmul.mubr.f32.gmra.mrb[124].mxu0 %v2262_v6  ;;  %v2264_v28 = vmax.f32 %v1878_v53, 0.0 }
 0x2b9   :  { %v2263_v34 = vmax.f32 %v1873_v54, 0.0  ;;  %v4086_v45 = vpop.f32.mrb[128].mxu1 }
 0x2ba   :  { %v1888_v49 = vadd.f32 %v4086_v45, %v5251_v58  ;;  %v1882_v56 = vpop.f32.mrb[129].mxu1 }
 0x2bb   :  { %v1883_v0 = vadd.f32 %v5251_v58, %v1882_v56  ;;  %4305 = vmatprep.mubr.f32.mxu0 %v2263_v34 }
 0x2bc   :  { %4306 = vmatmul.mubr.f32.gmra.mrb[126].mxu0 %v2264_v28  ;;  %v2266_v15 = vmax.f32 %v1888_v49, 0.0 }
 0x2bd   :  { %v2265_v47 = vmax.f32 %v1883_v0, 0.0  ;;  %v4089_v63 = vpop.f32.mrb[130].mxu1 }
 0x2be   :  { %v1898_v60 = vadd.f32 %v4089_v63, %v5251_v58  ;;  %v1892_v5 = vpop.f32.mrb[131].mxu1 }
 0x2bf   :  { %v1893_v8 = vadd.f32 %v5251_v58, %v1892_v5  ;;  %4308 = vmatprep.mubr.f32.mxu0 %v2265_v47 }
 0x2c0   :  { %4309 = vmatmul.mubr.f32.gmra.mrb[128].mxu0 %v2266_v15  ;;  %v2268_v62 = vmax.f32 %v1898_v60, 0.0 }
 0x2c1   :  { %v2267_v10 = vmax.f32 %v1893_v8, 0.0  ;;  %v4092_v39 = vpop.f32.mrb[132].mxu1 }
 0x2c2   :  { %v1908_v7 = vadd.f32 %v4092_v39, %v5251_v58  ;;  %v1902_v2 = vpop.f32.mrb[133].mxu1 }
 0x2c3   :  { %v1903_v26 = vadd.f32 %v5251_v58, %v1902_v2  ;;  %4311 = vmatprep.mubr.f32.mxu0 %v2267_v10 }
 0x2c4   :  { %4312 = vmatmul.mubr.f32.gmra.mrb[130].mxu0 %v2268_v62  ;;  %v2270_v11 = vmax.f32 %v1908_v7, 0.0 }
 0x2c5   :  { %v2269_v20 = vmax.f32 %v1903_v26, 0.0  ;;  %v4095_v25 = vpop.f32.mrb[134].mxu1 }
 0x2c6   :  { %v1918_v17 = vadd.f32 %v4095_v25, %v5251_v58  ;;  %v1912_v1 = vpop.f32.mrb[135].mxu1 }
 0x2c7   :  { %v1913_v16 = vadd.f32 %v5251_v58, %v1912_v1  ;;  %4314 = vmatprep.mubr.f32.mxu0 %v2269_v20 }
 0x2c8   :  { %4315 = vmatmul.mubr.f32.gmra.mrb[132].mxu0 %v2270_v11  ;;  %v2272_v31 = vmax.f32 %v1918_v17, 0.0 }
 0x2c9   :  { %v2271_v35 = vmax.f32 %v1913_v16, 0.0  ;;  %v4098_v19 = vpop.f32.mrb[136].mxu1 }
 0x2ca   :  { %v1928_v13 = vadd.f32 %v4098_v19, %v5251_v58  ;;  %v1922_v52 = vpop.f32.mrb[137].mxu1 }
 0x2cb   :  { %v1923_v46 = vadd.f32 %v5251_v58, %v1922_v52  ;;  %4317 = vmatprep.mubr.f32.mxu0 %v2271_v35 }
 0x2cc   :  { %4318 = vmatmul.mubr.f32.gmra.mrb[134].mxu0 %v2272_v31  ;;  %v2274_v43 = vmax.f32 %v1928_v13, 0.0 }
 0x2cd   :  { %v2273_v14 = vmax.f32 %v1923_v46, 0.0  ;;  %v4101_v3 = vpop.f32.mrb[138].mxu1 }
 0x2ce   :  { %v1938_v24 = vadd.f32 %v4101_v3, %v5251_v58  ;;  %v1932_v59 = vpop.f32.mrb[139].mxu1 }
 0x2cf   :  { %v1933_v44 = vadd.f32 %v5251_v58, %v1932_v59  ;;  %4320 = vmatprep.mubr.f32.mxu0 %v2273_v14 }
 0x2d0   :  { %4321 = vmatmul.mubr.f32.gmra.mrb[136].mxu0 %v2274_v43  ;;  %v2276_v9 = vmax.f32 %v1938_v24, 0.0 }
 0x2d1   :  { %v2275_v55 = vmax.f32 %v1933_v44, 0.0  ;;  %v4104_v21 = vpop.f32.mrb[140].mxu1 }
 0x2d2   :  { %v1948_v4 = vadd.f32 %v4104_v21, %v5251_v58  ;;  %v1942_v33 = vpop.f32.mrb[141].mxu1 }
 0x2d3   :  { %v1943_v32 = vadd.f32 %v5251_v58, %v1942_v33  ;;  %4323 = vmatprep.mubr.f32.mxu0 %v2275_v55 }
 0x2d4   :  { %4324 = vmatmul.mubr.f32.gmra.mrb[138].mxu0 %v2276_v9  ;;  %v2278_v22 = vmax.f32 %v1948_v4, 0.0 }
 0x2d5   :  { %v2277_v27 = vmax.f32 %v1943_v32, 0.0  ;;  %v4107_v36 = vpop.f32.mrb[142].mxu1 }
 0x2d6   :  { %v1958_v23 = vadd.f32 %v4107_v36, %v5251_v58  ;;  %v1952_v29 = vpop.f32.mrb[143].mxu1 }
 0x2d7   :  { %v1953_v42 = vadd.f32 %v5251_v58, %v1952_v29  ;;  %4326 = vmatprep.mubr.f32.mxu0 %v2277_v27 }
 0x2d8   :  { %4327 = vmatmul.mubr.f32.gmra.mrb[140].mxu0 %v2278_v22  ;;  %v2280_v37 = vmax.f32 %v1958_v23, 0.0 }
 0x2d9   :  { %v2279_v40 = vmax.f32 %v1953_v42, 0.0  ;;  %v4110_v61 = vpop.f32.mrb[144].mxu1 }
 0x2da   :  { %v1968_v41 = vadd.f32 %v4110_v61, %v5251_v58  ;;  %v1962_v18 = vpop.f32.mrb[145].mxu1 }
 0x2db   :  { %v1963_v57 = vadd.f32 %v5251_v58, %v1962_v18  ;;  %4329 = vmatprep.mubr.f32.mxu0 %v2279_v40 }
 0x2dc   :  { %4330 = vmatmul.mubr.f32.gmra.mrb[142].mxu0 %v2280_v37  ;;  %v2282_v38 = vmax.f32 %v1968_v41, 0.0 }
 0x2dd   :  { %v2281_v48 = vmax.f32 %v1963_v57, 0.0  ;;  %v4113_v51 = vpop.f32.mrb[146].mxu1 }
 0x2de   :  { %v1978_v12 = vadd.f32 %v4113_v51, %v5251_v58  ;;  %v1972_v30 = vpop.f32.mrb[147].mxu1 }
 0x2df   :  { %v1973_v6 = vadd.f32 %v5251_v58, %v1972_v30  ;;  %4332 = vmatprep.mubr.f32.mxu0 %v2281_v48 }
 0x2e0   :  { %4333 = vmatmul.mubr.f32.gmra.mrb[144].mxu0 %v2282_v38  ;;  %v2284_v54 = vmax.f32 %v1978_v12, 0.0 }
 0x2e1   :  { %v2283_v53 = vmax.f32 %v1973_v6, 0.0  ;;  %v4116_v50 = vpop.f32.mrb[148].mxu1 }
 0x2e2   :  { %v1988_v34 = vadd.f32 %v4116_v50, %v5251_v58  ;;  %v1982_v45 = vpop.f32.mrb[149].mxu1 }
 0x2e3   :  { %v1983_v28 = vadd.f32 %v5251_v58, %v1982_v45  ;;  %4335 = vmatprep.mubr.f32.mxu0 %v2283_v53 }
 0x2e4   :  { %4336 = vmatmul.mubr.f32.gmra.mrb[146].mxu0 %v2284_v54  ;;  %v2286_v0 = vmax.f32 %v1988_v34, 0.0 }
 0x2e5   :  { %v2285_v49 = vmax.f32 %v1983_v28, 0.0  ;;  %v4119_v56 = vpop.f32.mrb[150].mxu1 }
 0x2e6   :  { %v1998_v47 = vadd.f32 %v4119_v56, %v5251_v58  ;;  %v1992_v63 = vpop.f32.mrb[151].mxu1 }
 0x2e7   :  { %v1993_v15 = vadd.f32 %v5251_v58, %v1992_v63  ;;  %4338 = vmatprep.mubr.f32.mxu0 %v2285_v49 }
 0x2e8   :  { %4339 = vmatmul.mubr.f32.gmra.mrb[148].mxu0 %v2286_v0  ;;  %v2288_v8 = vmax.f32 %v1998_v47, 0.0 }
 0x2e9   :  { %v2287_v60 = vmax.f32 %v1993_v15, 0.0  ;;  %v4122_v5 = vpop.f32.mrb[152].mxu1  ;;  %v5401_v15 = vld [vmem:[#allocation13] ss:$0 sm:$0xff] }
 0x2ea   :  { %v2008_v10 = vadd.f32 %v4122_v5, %v5251_v58  ;;  %v2002_v39 = vpop.f32.mrb[153].mxu1 }
 0x2eb   :  { %v2003_v62 = vadd.f32 %v5251_v58, %v2002_v39  ;;  %4341 = vmatprep.mubr.f32.mxu0 %v2287_v60 }
 0x2ec   :  { %4342 = vmatmul.mubr.f32.gmra.mrb[150].mxu0 %v2288_v8  ;;  %v2290_v26 = vmax.f32 %v2008_v10, 0.0 }
 0x2ed   :  { %v2289_v7 = vmax.f32 %v2003_v62, 0.0  ;;  %v4125_v2 = vpop.f32.mrb[154].mxu1 }
 0x2ee   :  { %v2018_v20 = vadd.f32 %v4125_v2, %v5251_v58  ;;  %v2012_v25 = vpop.f32.mrb[155].mxu1 }
 0x2ef   :  { %v2013_v11 = vadd.f32 %v5251_v58, %v2012_v25  ;;  %4344 = vmatprep.mubr.f32.mxu0 %v2289_v7 }
 0x2f0   :  { %4345 = vmatmul.mubr.f32.gmra.mrb[152].mxu0 %v2290_v26  ;;  %v2292_v16 = vmax.f32 %v2018_v20, 0.0 }
 0x2f1   :  { %v2291_v17 = vmax.f32 %v2013_v11, 0.0  ;;  %v4128_v1 = vpop.f32.mrb[156].mxu1 }
 0x2f2   :  { %v2028_v35 = vadd.f32 %v4128_v1, %v5251_v58  ;;  %v2022_v19 = vpop.f32.mrb[157].mxu1 }
 0x2f3   :  { %v2023_v31 = vadd.f32 %v5251_v58, %v2022_v19  ;;  %4347 = vmatprep.mubr.f32.mxu0 %v2291_v17 }
 0x2f4   :  { %4348 = vmatmul.mubr.f32.gmra.mrb[154].mxu0 %v2292_v16  ;;  %v2294_v46 = vmax.f32 %v2028_v35, 0.0 }
 0x2f5   :  { %v2293_v13 = vmax.f32 %v2023_v31, 0.0  ;;  %v4131_v52 = vpop.f32.mrb[158].mxu1 }
 0x2f6   :  { %v2038_v14 = vadd.f32 %v4131_v52, %v5251_v58  ;;  %v2032_v3 = vpop.f32.mrb[159].mxu1 }
 0x2f7   :  { %v2033_v43 = vadd.f32 %v5251_v58, %v2032_v3  ;;  %4350 = vmatprep.mubr.f32.mxu0 %v2293_v13 }
 0x2f8   :  { %4351 = vmatmul.mubr.f32.gmra.mrb[156].mxu0 %v2294_v46  ;;  %v2296_v44 = vmax.f32 %v2038_v14, 0.0  ;;  %v5411_v14 = vld [vmem:[#allocation10] ss:$0 sm:$0xff] }
 0x2f9   :  { %v2295_v24 = vmax.f32 %v2033_v43, 0.0  ;;  %v4134_v59 = vpop.f32.mrb[160].mxu1 }
 0x2fa   :  { %v2048_v55 = vadd.f32 %v4134_v59, %v5251_v58  ;;  %v2042_v21 = vpop.f32.mrb[161].mxu1 }
 0x2fb   :  { %v2043_v9 = vadd.f32 %v5251_v58, %v2042_v21  ;;  %4353 = vmatprep.mubr.f32.mxu0 %v2295_v24 }
 0x2fc   :  { %4354 = vmatmul.mubr.f32.gmra.mrb[158].mxu0 %v2296_v44  ;;  %v2298_v32 = vmax.f32 %v2048_v55, 0.0 }
 0x2fd   :  { %v2297_v4 = vmax.f32 %v2043_v9, 0.0  ;;  %v4137_v33 = vpop.f32.mrb[162].mxu1 }
 0x2fe   :  { %v2058_v27 = vadd.f32 %v4137_v33, %v5251_v58  ;;  %v2052_v36 = vpop.f32.mrb[163].mxu1 }
 0x2ff   :  { %v2053_v22 = vadd.f32 %v5251_v58, %v2052_v36  ;;  %4356 = vmatprep.mubr.f32.mxu0 %v2297_v4 }
 0x300   :  { %4357 = vmatmul.mubr.f32.gmra.mrb[160].mxu0 %v2298_v32  ;;  %v2300_v42 = vmax.f32 %v2058_v27, 0.0 }
 0x301   :  { %v2299_v23 = vmax.f32 %v2053_v22, 0.0  ;;  %v4140_v29 = vpop.f32.mrb[164].mxu1 }
 0x302   :  { %v2068_v40 = vadd.f32 %v4140_v29, %v5251_v58  ;;  %v2062_v61 = vpop.f32.mrb[165].mxu1 }
 0x303   :  { %v2063_v37 = vadd.f32 %v5251_v58, %v2062_v61  ;;  %4359 = vmatprep.mubr.f32.mxu0 %v2299_v23 }
 0x304   :  { %4360 = vmatmul.mubr.f32.gmra.mrb[162].mxu0 %v2300_v42  ;;  %v2302_v57 = vmax.f32 %v2068_v40, 0.0 }
 0x305   :  { %v2301_v41 = vmax.f32 %v2063_v37, 0.0  ;;  %v4143_v18 = vpop.f32.mrb[166].mxu1 }
 0x306   :  { %v2078_v48 = vadd.f32 %v4143_v18, %v5251_v58  ;;  %v2072_v51 = vpop.f32.mrb[167].mxu1 }
 0x307   :  { %v2073_v38 = vadd.f32 %v5251_v58, %v2072_v51  ;;  %4362 = vmatprep.mubr.f32.mxu0 %v2301_v41 }
 0x308   :  { %4363 = vmatmul.mubr.f32.gmra.mrb[164].mxu0 %v2302_v57  ;;  %v2304_v6 = vmax.f32 %v2078_v48, 0.0 }
 0x309   :  { %v2303_v12 = vmax.f32 %v2073_v38, 0.0  ;;  %v4146_v30 = vpop.f32.mrb[168].mxu1 }
 0x30a   :  { %v2088_v53 = vadd.f32 %v4146_v30, %v5251_v58  ;;  %v2082_v50 = vpop.f32.mrb[169].mxu1 }
 0x30b   :  { %v2083_v54 = vadd.f32 %v5251_v58, %v2082_v50  ;;  %4365 = vmatprep.mubr.f32.mxu0 %v2303_v12 }
 0x30c   :  { %4366 = vmatmul.mubr.f32.gmra.mrb[166].mxu0 %v2304_v6  ;;  %v2306_v28 = vmax.f32 %v2088_v53, 0.0 }
 0x30d   :  { %v2305_v34 = vmax.f32 %v2083_v54, 0.0  ;;  %v4149_v45 = vpop.f32.mrb[170].mxu1 }
 0x30e   :  { %v2098_v49 = vadd.f32 %v4149_v45, %v5251_v58  ;;  %v2092_v56 = vpop.f32.mrb[171].mxu1 }
 0x30f   :  { %v2093_v0 = vadd.f32 %v5251_v58, %v2092_v56  ;;  %4368 = vmatprep.mubr.f32.mxu0 %v2305_v34 }
 0x310   :  { %4369 = vmatmul.mubr.f32.gmra.mrb[168].mxu0 %v2306_v28  ;;  %v2308_v60 = vmax.f32 %v2098_v49, 0.0 }
 0x311   :  { %v2307_v47 = vmax.f32 %v2093_v0, 0.0  ;;  %v4152_v63 = vpop.f32.mrb[172].mxu1 }
 0x312   :  { %v2108_v5 = vadd.f32 %v4152_v63, %v5251_v58  ;;  %v2102_v8 = vpop.f32.mrb[173].mxu1 }
 0x313   :  { %v2103_v10 = vadd.f32 %v5251_v58, %v2102_v8  ;;  %v4214_v39 = vpop.f32.mrb[64].mxu0  ;;  %4371 = vmatprep.mubr.f32.mxu0 %v2307_v47 }
 0x314   :  { %v2424_v62 = vadd.f32 %v4214_v39, %v5401_v15  ;;  %v2418_v7 = vpop.f32.mrb[65].mxu0  ;;  %4372 = vmatmul.mubr.f32.gmra.mrb[170].mxu0 %v2308_v60  ;;  %v2310_v25 = vmax.f32 %v2108_v5, 0.0 }
 0x315   :  { %v2309_v2 = vmax.f32 %v2103_v10, 0.0  ;;  %v2419_v26 = vadd.f32 %v5401_v15, %v2418_v7  ;;  %v4155_v20 = vpop.f32.mrb[174].mxu1 }
 0x316   :  { %3058 = vst [vmem:[#allocation14 + $0x8] sm:$0xff] %v2424_v62  ;;  %v2118_v11 = vadd.f32 %v4155_v20, %v5251_v58  ;;  %v2112_v17 = vpop.f32.mrb[175].mxu1 }
 0x317   :  { %3057 = vst [vmem:[#allocation14] sm:$0xff] %v2419_v26  ;;  %v2113_v1 = vadd.f32 %v5251_v58, %v2112_v17  ;;  %v4217_v16 = vpop.f32.mrb[66].mxu0  ;;  %4374 = vmatprep.mubr.f32.mxu0 %v2309_v2 }
 0x318   :  { %v2434_v35 = vadd.f32 %v4217_v16, %v5401_v15  ;;  %v2428_v19 = vpop.f32.mrb[67].mxu0  ;;  %4375 = vmatmul.mubr.f32.gmra.mrb[172].mxu0 %v2310_v25  ;;  %v2312_v46 = vmax.f32 %v2118_v11, 0.0 }
 0x319   :  { %v2311_v31 = vmax.f32 %v2113_v1, 0.0  ;;  %v2429_v13 = vadd.f32 %v5401_v15, %v2428_v19  ;;  %v4158_v52 = vpop.f32.mrb[176].mxu1 }
 0x31a   :  { %3060 = vst [vmem:[#allocation14 + $0x18] sm:$0xff] %v2434_v35  ;;  %v2128_v3 = vadd.f32 %v5411_v14, %v4158_v52  ;;  %v2122_v43 = vpop.f32.mrb[177].mxu1 }
 0x31b   :  { %3059 = vst [vmem:[#allocation14 + $0x10] sm:$0xff] %v2429_v13  ;;  %v2123_v58 = vadd.f32 %v5411_v14, %v2122_v43  ;;  %v4220_v24 = vpop.f32.mrb[68].mxu0  ;;  %4377 = vmatprep.mubr.f32.mxu0 %v2311_v31 }
 0x31c   :  { %v2444_v59 = vadd.f32 %v4220_v24, %v5401_v15  ;;  %v2438_v44 = vpop.f32.mrb[69].mxu0  ;;  %4378 = vmatmul.mubr.f32.gmra.mrb[174].mxu0 %v2312_v46  ;;  %v2314_v4 = vmax.f32 %v2128_v3, 0.0 }
 0x31d   :  { %v2313_v55 = vmax.f32 %v2123_v58, 0.0  ;;  %v2439_v21 = vadd.f32 %v5401_v15, %v2438_v44  ;;  %v4161_v9 = vpop.f32.mrb[178].mxu1 }
 0x31e   :  { %3062 = vst [vmem:[#allocation14 + $0x28] sm:$0xff] %v2444_v59  ;;  %v2138_v33 = vadd.f32 %v5411_v14, %v4161_v9  ;;  %v2132_v32 = vpop.f32.mrb[179].mxu1 }
 0x31f   :  { %3061 = vst [vmem:[#allocation14 + $0x20] sm:$0xff] %v2439_v21  ;;  %v2133_v27 = vadd.f32 %v5411_v14, %v2132_v32  ;;  %v4223_v36 = vpop.f32.mrb[70].mxu0  ;;  %4380 = vmatprep.mubr.f32.mxu0 %v2313_v55 }
 0x320   :  { %v2454_v22 = vadd.f32 %v4223_v36, %v5401_v15  ;;  %v2448_v23 = vpop.f32.mrb[71].mxu0  ;;  %4381 = vmatmul.mubr.f32.gmra.mrb[176].mxu0 %v2314_v4  ;;  %v2316_v61 = vmax.f32 %v2138_v33, 0.0 }
 0x321   :  { %v2315_v29 = vmax.f32 %v2133_v27, 0.0  ;;  %v2449_v42 = vadd.f32 %v5401_v15, %v2448_v23  ;;  %v4164_v40 = vpop.f32.mrb[180].mxu1 }
 0x322   :  { %3064 = vst [vmem:[#allocation14 + $0x38] sm:$0xff] %v2454_v22  ;;  %v2148_v37 = vadd.f32 %v5411_v14, %v4164_v40  ;;  %v2142_v41 = vpop.f32.mrb[181].mxu1 }
 0x323   :  { %3063 = vst [vmem:[#allocation14 + $0x30] sm:$0xff] %v2449_v42  ;;  %v2143_v18 = vadd.f32 %v5411_v14, %v2142_v41  ;;  %v4226_v57 = vpop.f32.mrb[72].mxu0  ;;  %4383 = vmatprep.mubr.f32.mxu0 %v2315_v29 }
 0x324   :  { %v2464_v48 = vadd.f32 %v4226_v57, %v5401_v15  ;;  %v2458_v51 = vpop.f32.mrb[73].mxu0  ;;  %4384 = vmatmul.mubr.f32.gmra.mrb[178].mxu0 %v2316_v61  ;;  %v2318_v6 = vmax.f32 %v2148_v37, 0.0 }
 0x325   :  { %v2317_v38 = vmax.f32 %v2143_v18, 0.0  ;;  %v2459_v12 = vadd.f32 %v5401_v15, %v2458_v51  ;;  %v4167_v30 = vpop.f32.mrb[182].mxu1 }
 0x326   :  { %3066 = vst [vmem:[#allocation14 + $0x48] sm:$0xff] %v2464_v48  ;;  %v2158_v53 = vadd.f32 %v5411_v14, %v4167_v30  ;;  %v2152_v50 = vpop.f32.mrb[183].mxu1 }
 0x327   :  { %3065 = vst [vmem:[#allocation14 + $0x40] sm:$0xff] %v2459_v12  ;;  %v2153_v54 = vadd.f32 %v5411_v14, %v2152_v50  ;;  %v4229_v34 = vpop.f32.mrb[74].mxu0  ;;  %4386 = vmatprep.mubr.f32.mxu0 %v2317_v38 }
 0x328   :  { %v2474_v45 = vadd.f32 %v4229_v34, %v5401_v15  ;;  %v2468_v28 = vpop.f32.mrb[75].mxu0  ;;  %4387 = vmatmul.mubr.f32.gmra.mrb[180].mxu0 %v2318_v6  ;;  %v2320_v47 = vmax.f32 %v2158_v53, 0.0 }
 0x329   :  { %v2319_v49 = vmax.f32 %v2153_v54, 0.0  ;;  %v2469_v56 = vadd.f32 %v5401_v15, %v2468_v28  ;;  %v4170_v0 = vpop.f32.mrb[184].mxu1 }
 0x32a   :  { %3068 = vst [vmem:[#allocation14 + $0x58] sm:$0xff] %v2474_v45  ;;  %v2168_v63 = vadd.f32 %v5411_v14, %v4170_v0  ;;  %v2162_v60 = vpop.f32.mrb[185].mxu1 }
 0x32b   :  { %3067 = vst [vmem:[#allocation14 + $0x50] sm:$0xff] %v2469_v56  ;;  %v2163_v5 = vadd.f32 %v5411_v14, %v2162_v60  ;;  %v4232_v8 = vpop.f32.mrb[76].mxu0  ;;  %4389 = vmatprep.mubr.f32.mxu0 %v2319_v49 }
 0x32c   :  { %v2484_v10 = vadd.f32 %v4232_v8, %v5401_v15  ;;  %v2478_v39 = vpop.f32.mrb[77].mxu0  ;;  %4390 = vmatmul.mubr.f32.gmra.mrb[182].mxu0 %v2320_v47  ;;  %v2322_v26 = vmax.f32 %v2168_v63, 0.0 }
 0x32d   :  { %v2321_v62 = vmax.f32 %v2163_v5, 0.0  ;;  %v2479_v7 = vadd.f32 %v5401_v15, %v2478_v39  ;;  %v4173_v2 = vpop.f32.mrb[186].mxu1 }
 0x32e   :  { %3070 = vst [vmem:[#allocation14 + $0x68] sm:$0xff] %v2484_v10  ;;  %v2178_v20 = vadd.f32 %v5411_v14, %v4173_v2  ;;  %v2172_v25 = vpop.f32.mrb[187].mxu1 }
 0x32f   :  { %3069 = vst [vmem:[#allocation14 + $0x60] sm:$0xff] %v2479_v7  ;;  %v2173_v11 = vadd.f32 %v5411_v14, %v2172_v25  ;;  %v4235_v17 = vpop.f32.mrb[78].mxu0  ;;  %4392 = vmatprep.mubr.f32.mxu0 %v2321_v62 }
 0x330   :  { %v2494_v1 = vadd.f32 %v4235_v17, %v5401_v15  ;;  %v2488_v16 = vpop.f32.mrb[79].mxu0  ;;  %4393 = vmatmul.mubr.f32.gmra.mrb[184].mxu0 %v2322_v26  ;;  %v2324_v13 = vmax.f32 %v2178_v20, 0.0 }
 0x331   :  { %v2323_v35 = vmax.f32 %v2173_v11, 0.0  ;;  %v2489_v19 = vadd.f32 %v5401_v15, %v2488_v16  ;;  %v4176_v31 = vpop.f32.mrb[188].mxu1 }
 0x332   :  { %3072 = vst [vmem:[#allocation14 + $0x78] sm:$0xff] %v2494_v1  ;;  %v2188_v52 = vadd.f32 %v5411_v14, %v4176_v31  ;;  %v2182_v46 = vpop.f32.mrb[189].mxu1 }
 0x333   :  { %3071 = vst [vmem:[#allocation14 + $0x70] sm:$0xff] %v2489_v19  ;;  %v2183_v3 = vadd.f32 %v5411_v14, %v2182_v46  ;;  %v4238_v43 = vpop.f32.mrb[80].mxu0  ;;  %4395 = vmatprep.mubr.f32.mxu0 %v2323_v35 }
 0x334   :  { %v2504_v58 = vadd.f32 %v4238_v43, %v5401_v15  ;;  %v2498_v24 = vpop.f32.mrb[81].mxu0  ;;  %4396 = vmatmul.mubr.f32.gmra.mrb[186].mxu0 %v2324_v13  ;;  %v2326_v21 = vmax.f32 %v2188_v52, 0.0 }
 0x335   :  { %v2325_v59 = vmax.f32 %v2183_v3, 0.0  ;;  %v2499_v44 = vadd.f32 %v5401_v15, %v2498_v24  ;;  %v4179_v55 = vpop.f32.mrb[190].mxu1 }
 0x336   :  { %3074 = vst [vmem:[#allocation14 + $0x88] sm:$0xff] %v2504_v58  ;;  %v2198_v9 = vadd.f32 %v5411_v14, %v4179_v55  ;;  %v2192_v4 = vpop.f32.mrb[191].mxu1 }
 0x337   :  { %3073 = vst [vmem:[#allocation14 + $0x80] sm:$0xff] %v2499_v44  ;;  %v2193_v33 = vadd.f32 %v5411_v14, %v2192_v4  ;;  %v4241_v32 = vpop.f32.mrb[82].mxu0  ;;  %4398 = vmatprep.mubr.f32.mxu0 %v2325_v59 }
 0x338   :  { %v2514_v27 = vadd.f32 %v4241_v32, %v5401_v15  ;;  %v2508_v36 = vpop.f32.mrb[83].mxu0  ;;  %4399 = vmatmul.mubr.f32.gmra.mrb[188].mxu0 %v2326_v21  ;;  %v2328_v29 = vmax.f32 %v2198_v9, 0.0 }
 0x339   :  { %v2327_v22 = vmax.f32 %v2193_v33, 0.0  ;;  %v2509_v23 = vadd.f32 %v5401_v15, %v2508_v36 }
 0x33a   :  { %3076 = vst [vmem:[#allocation14 + $0x98] sm:$0xff] %v2514_v27 }
 0x33b   :  { %3075 = vst [vmem:[#allocation14 + $0x90] sm:$0xff] %v2509_v23  ;;  %v4244_v42 = vpop.f32.mrb[84].mxu0  ;;  %4401 = vmatprep.mubr.f32.mxu0 %v2327_v22 }
 0x33c   :  { %v2524_v40 = vadd.f32 %v4244_v42, %v5401_v15  ;;  %v2518_v61 = vpop.f32.mrb[85].mxu0  ;;  %4402 = vmatmul.mubr.f32.gmra.mrb[190].mxu0 %v2328_v29 }
 0x33d   :  { %v2519_v14 = vadd.f32 %v5401_v15, %v2518_v61 }
 0x33e   :  { %3078 = vst [vmem:[#allocation14 + $0xa8] sm:$0xff] %v2524_v40 }
 0x33f   :  { %3077 = vst [vmem:[#allocation14 + $0xa0] sm:$0xff] %v2519_v14  ;;  %v4247_v37 = vpop.f32.mrb[86].mxu0 }
 0x340   :  { %v2534_v41 = vadd.f32 %v4247_v37, %v5401_v15  ;;  %v2528_v18 = vpop.f32.mrb[87].mxu0 }
 0x341   :  { %v2529_v57 = vadd.f32 %v5401_v15, %v2528_v18 }
 0x342   :  { %3080 = vst [vmem:[#allocation14 + $0xb8] sm:$0xff] %v2534_v41 }
 0x343   :  { %3079 = vst [vmem:[#allocation14 + $0xb0] sm:$0xff] %v2529_v57  ;;  %v4250_v48 = vpop.f32.mrb[88].mxu0 }
 0x344   :  { %v2544_v51 = vadd.f32 %v4250_v48, %v5401_v15  ;;  %v2538_v38 = vpop.f32.mrb[89].mxu0 }
 0x345   :  { %v2539_v12 = vadd.f32 %v5401_v15, %v2538_v38 }
 0x346   :  { %3082 = vst [vmem:[#allocation14 + $0xc8] sm:$0xff] %v2544_v51 }
 0x347   :  { %3081 = vst [vmem:[#allocation14 + $0xc0] sm:$0xff] %v2539_v12  ;;  %v4253_v30 = vpop.f32.mrb[90].mxu0 }
 0x348   :  { %v2554_v6 = vadd.f32 %v4253_v30, %v5401_v15  ;;  %v2548_v53 = vpop.f32.mrb[91].mxu0 }
 0x349   :  { %v2549_v50 = vadd.f32 %v5401_v15, %v2548_v53 }
 0x34a   :  { %3084 = vst [vmem:[#allocation14 + $0xd8] sm:$0xff] %v2554_v6 }
 0x34b   :  { %3083 = vst [vmem:[#allocation14 + $0xd0] sm:$0xff] %v2549_v50  ;;  %v4256_v54 = vpop.f32.mrb[92].mxu0 }
 0x34c   :  { %v2564_v34 = vadd.f32 %v4256_v54, %v5401_v15  ;;  %v2558_v45 = vpop.f32.mrb[93].mxu0 }
 0x34d   :  { %v2559_v28 = vadd.f32 %v5401_v15, %v2558_v45 }
 0x34e   :  { %3086 = vst [vmem:[#allocation14 + $0xe8] sm:$0xff] %v2564_v34 }
 0x34f   :  { %3085 = vst [vmem:[#allocation14 + $0xe0] sm:$0xff] %v2559_v28  ;;  %v4259_v49 = vpop.f32.mrb[94].mxu0 }
 0x350   :  { %v2574_v56 = vadd.f32 %v4259_v49, %v5401_v15  ;;  %v2568_v0 = vpop.f32.mrb[95].mxu0 }
 0x351   :  { %v2569_v47 = vadd.f32 %v5401_v15, %v2568_v0 }
 0x352   :  { %3088 = vst [vmem:[#allocation14 + $0xf8] sm:$0xff] %v2574_v56 }
 0x353   :  { %3087 = vst [vmem:[#allocation14 + $0xf0] sm:$0xff] %v2569_v47  ;;  %v4262_v63 = vpop.f32.mrb[96].mxu0 }
 0x354   :  { %v2584_v60 = vadd.f32 %v4262_v63, %v5401_v15  ;;  %v2578_v5 = vpop.f32.mrb[97].mxu0 }
 0x355   :  { %v2579_v8 = vadd.f32 %v5401_v15, %v2578_v5 }
 0x356   :  { %3090 = vst [vmem:[#allocation14 + $0x108] sm:$0xff] %v2584_v60 }
 0x357   :  { %3089 = vst [vmem:[#allocation14 + $0x100] sm:$0xff] %v2579_v8  ;;  %v4265_v10 = vpop.f32.mrb[98].mxu0 }
 0x358   :  { %v2594_v39 = vadd.f32 %v4265_v10, %v5401_v15  ;;  %v2588_v62 = vpop.f32.mrb[99].mxu0 }
 0x359   :  { %v2589_v7 = vadd.f32 %v5401_v15, %v2588_v62 }
 0x35a   :  { %3092 = vst [vmem:[#allocation14 + $0x118] sm:$0xff] %v2594_v39 }
 0x35b   :  { %3091 = vst [vmem:[#allocation14 + $0x110] sm:$0xff] %v2589_v7  ;;  %v4268_v2 = vpop.f32.mrb[100].mxu0 }
 0x35c   :  { %v2604_v26 = vadd.f32 %v4268_v2, %v5401_v15  ;;  %v2598_v20 = vpop.f32.mrb[101].mxu0 }
 0x35d   :  { %v2599_v25 = vadd.f32 %v5401_v15, %v2598_v20 }
 0x35e   :  { %3094 = vst [vmem:[#allocation14 + $0x128] sm:$0xff] %v2604_v26 }
 0x35f   :  { %3093 = vst [vmem:[#allocation14 + $0x120] sm:$0xff] %v2599_v25  ;;  %v4271_v11 = vpop.f32.mrb[102].mxu0 }
 0x360   :  { %v2614_v17 = vadd.f32 %v4271_v11, %v5401_v15  ;;  %v2608_v1 = vpop.f32.mrb[103].mxu0 }
 0x361   :  { %v2609_v16 = vadd.f32 %v5401_v15, %v2608_v1 }
 0x362   :  { %3096 = vst [vmem:[#allocation14 + $0x138] sm:$0xff] %v2614_v17 }
 0x363   :  { %3095 = vst [vmem:[#allocation14 + $0x130] sm:$0xff] %v2609_v16  ;;  %v4274_v35 = vpop.f32.mrb[104].mxu0 }
 0x364   :  { %v2624_v19 = vadd.f32 %v4274_v35, %v5401_v15  ;;  %v2618_v31 = vpop.f32.mrb[105].mxu0 }
 0x365   :  { %v2619_v13 = vadd.f32 %v5401_v15, %v2618_v31 }
 0x366   :  { %3098 = vst [vmem:[#allocation14 + $0x148] sm:$0xff] %v2624_v19 }
 0x367   :  { %3097 = vst [vmem:[#allocation14 + $0x140] sm:$0xff] %v2619_v13  ;;  %v4277_v52 = vpop.f32.mrb[106].mxu0 }
 0x368   :  { %v2634_v46 = vadd.f32 %v4277_v52, %v5401_v15  ;;  %v2628_v3 = vpop.f32.mrb[107].mxu0 }
 0x369   :  { %v2629_v43 = vadd.f32 %v5401_v15, %v2628_v3 }
 0x36a   :  { %3100 = vst [vmem:[#allocation14 + $0x158] sm:$0xff] %v2634_v46 }
 0x36b   :  { %3099 = vst [vmem:[#allocation14 + $0x150] sm:$0xff] %v2629_v43  ;;  %v4280_v58 = vpop.f32.mrb[108].mxu0 }
 0x36c   :  { %v2644_v24 = vadd.f32 %v4280_v58, %v5401_v15  ;;  %v2638_v59 = vpop.f32.mrb[109].mxu0 }
 0x36d   :  { %v2639_v44 = vadd.f32 %v5401_v15, %v2638_v59 }
 0x36e   :  { %3102 = vst [vmem:[#allocation14 + $0x168] sm:$0xff] %v2644_v24 }
 0x36f   :  { %3101 = vst [vmem:[#allocation14 + $0x160] sm:$0xff] %v2639_v44  ;;  %v4283_v55 = vpop.f32.mrb[110].mxu0 }
 0x370   :  { %v2654_v21 = vadd.f32 %v4283_v55, %v5401_v15  ;;  %v2648_v9 = vpop.f32.mrb[111].mxu0 }
 0x371   :  { %v2649_v4 = vadd.f32 %v5401_v15, %v2648_v9 }
 0x372   :  { %3104 = vst [vmem:[#allocation14 + $0x178] sm:$0xff] %v2654_v21 }
 0x373   :  { %3103 = vst [vmem:[#allocation14 + $0x170] sm:$0xff] %v2649_v4  ;;  %v4286_v33 = vpop.f32.mrb[112].mxu0 }
 0x374   :  { %v2664_v32 = vadd.f32 %v4286_v33, %v5401_v15  ;;  %v2658_v27 = vpop.f32.mrb[113].mxu0 }
 0x375   :  { %v2659_v36 = vadd.f32 %v5401_v15, %v2658_v27 }
 0x376   :  { %3106 = vst [vmem:[#allocation14 + $0x188] sm:$0xff] %v2664_v32 }
 0x377   :  { %3105 = vst [vmem:[#allocation14 + $0x180] sm:$0xff] %v2659_v36  ;;  %v4289_v22 = vpop.f32.mrb[114].mxu0 }
 0x378   :  { %v2674_v23 = vadd.f32 %v4289_v22, %v5401_v15  ;;  %v2668_v29 = vpop.f32.mrb[115].mxu0 }
 0x379   :  { %v2669_v42 = vadd.f32 %v5401_v15, %v2668_v29 }
 0x37a   :  { %3108 = vst [vmem:[#allocation14 + $0x198] sm:$0xff] %v2674_v23 }
 0x37b   :  { %3107 = vst [vmem:[#allocation14 + $0x190] sm:$0xff] %v2669_v42  ;;  %v4292_v40 = vpop.f32.mrb[116].mxu0 }
 0x37c   :  { %v2684_v61 = vadd.f32 %v4292_v40, %v5401_v15  ;;  %v2678_v14 = vpop.f32.mrb[117].mxu0 }
 0x37d   :  { %v2679_v37 = vadd.f32 %v5401_v15, %v2678_v14 }
 0x37e   :  { %3110 = vst [vmem:[#allocation14 + $0x1a8] sm:$0xff] %v2684_v61 }
 0x37f   :  { %3109 = vst [vmem:[#allocation14 + $0x1a0] sm:$0xff] %v2679_v37  ;;  %v4295_v41 = vpop.f32.mrb[118].mxu0 }
 0x380   :  { %v2694_v18 = vadd.f32 %v4295_v41, %v5401_v15  ;;  %v2688_v57 = vpop.f32.mrb[119].mxu0 }
 0x381   :  { %v2689_v48 = vadd.f32 %v5401_v15, %v2688_v57 }
 0x382   :  { %3112 = vst [vmem:[#allocation14 + $0x1b8] sm:$0xff] %v2694_v18 }
 0x383   :  { %3111 = vst [vmem:[#allocation14 + $0x1b0] sm:$0xff] %v2689_v48  ;;  %v4298_v51 = vpop.f32.mrb[120].mxu0 }
 0x384   :  { %v2704_v38 = vadd.f32 %v4298_v51, %v5401_v15  ;;  %v2698_v12 = vpop.f32.mrb[121].mxu0 }
 0x385   :  { %v2699_v30 = vadd.f32 %v5401_v15, %v2698_v12 }
 0x386   :  { %3114 = vst [vmem:[#allocation14 + $0x1c8] sm:$0xff] %v2704_v38 }
 0x387   :  { %3113 = vst [vmem:[#allocation14 + $0x1c0] sm:$0xff] %v2699_v30  ;;  %v4301_v6 = vpop.f32.mrb[122].mxu0 }
 0x388   :  { %v2714_v53 = vadd.f32 %v4301_v6, %v5401_v15  ;;  %v2708_v50 = vpop.f32.mrb[123].mxu0 }
 0x389   :  { %v2709_v54 = vadd.f32 %v5401_v15, %v2708_v50 }
 0x38a   :  { %3116 = vst [vmem:[#allocation14 + $0x1d8] sm:$0xff] %v2714_v53 }
 0x38b   :  { %3115 = vst [vmem:[#allocation14 + $0x1d0] sm:$0xff] %v2709_v54  ;;  %v4304_v34 = vpop.f32.mrb[124].mxu0 }
 0x38c   :  { %v2724_v45 = vadd.f32 %v4304_v34, %v5401_v15  ;;  %v2718_v28 = vpop.f32.mrb[125].mxu0 }
 0x38d   :  { %v2719_v49 = vadd.f32 %v5401_v15, %v2718_v28 }
 0x38e   :  { %3118 = vst [vmem:[#allocation14 + $0x1e8] sm:$0xff] %v2724_v45 }
 0x38f   :  { %3117 = vst [vmem:[#allocation14 + $0x1e0] sm:$0xff] %v2719_v49  ;;  %v4307_v56 = vpop.f32.mrb[126].mxu0 }
 0x390   :  { %v2734_v0 = vadd.f32 %v4307_v56, %v5401_v15  ;;  %v2728_v47 = vpop.f32.mrb[127].mxu0 }
 0x391   :  { %v2729_v63 = vadd.f32 %v5401_v15, %v2728_v47 }
 0x392   :  { %3120 = vst [vmem:[#allocation14 + $0x1f8] sm:$0xff] %v2734_v0 }
 0x393   :  { %3119 = vst [vmem:[#allocation14 + $0x1f0] sm:$0xff] %v2729_v63  ;;  %v4310_v60 = vpop.f32.mrb[128].mxu0 }
 0x394   :  { %v2744_v5 = vadd.f32 %v4310_v60, %v5401_v15  ;;  %v2738_v8 = vpop.f32.mrb[129].mxu0 }
 0x395   :  { %v2739_v10 = vadd.f32 %v5401_v15, %v2738_v8 }
 0x396   :  { %3122 = vst [vmem:[#allocation14 + $0x208] sm:$0xff] %v2744_v5 }
 0x397   :  { %3121 = vst [vmem:[#allocation14 + $0x200] sm:$0xff] %v2739_v10  ;;  %v4313_v39 = vpop.f32.mrb[130].mxu0 }
 0x398   :  { %v2754_v62 = vadd.f32 %v4313_v39, %v5401_v15  ;;  %v2748_v7 = vpop.f32.mrb[131].mxu0 }
 0x399   :  { %v2749_v2 = vadd.f32 %v5401_v15, %v2748_v7 }
 0x39a   :  { %3124 = vst [vmem:[#allocation14 + $0x218] sm:$0xff] %v2754_v62 }
 0x39b   :  { %3123 = vst [vmem:[#allocation14 + $0x210] sm:$0xff] %v2749_v2  ;;  %v4316_v26 = vpop.f32.mrb[132].mxu0 }
 0x39c   :  { %v2764_v20 = vadd.f32 %v4316_v26, %v5401_v15  ;;  %v2758_v25 = vpop.f32.mrb[133].mxu0 }
 0x39d   :  { %v2759_v11 = vadd.f32 %v5401_v15, %v2758_v25 }
 0x39e   :  { %3126 = vst [vmem:[#allocation14 + $0x228] sm:$0xff] %v2764_v20 }
 0x39f   :  { %3125 = vst [vmem:[#allocation14 + $0x220] sm:$0xff] %v2759_v11  ;;  %v4319_v17 = vpop.f32.mrb[134].mxu0 }
 0x3a0   :  { %v2774_v1 = vadd.f32 %v4319_v17, %v5401_v15  ;;  %v2768_v16 = vpop.f32.mrb[135].mxu0 }
 0x3a1   :  { %v2769_v35 = vadd.f32 %v5401_v15, %v2768_v16 }
 0x3a2   :  { %3128 = vst [vmem:[#allocation14 + $0x238] sm:$0xff] %v2774_v1 }
 0x3a3   :  { %3127 = vst [vmem:[#allocation14 + $0x230] sm:$0xff] %v2769_v35  ;;  %v4322_v19 = vpop.f32.mrb[136].mxu0 }
 0x3a4   :  { %v2784_v31 = vadd.f32 %v4322_v19, %v5401_v15  ;;  %v2778_v13 = vpop.f32.mrb[137].mxu0 }
 0x3a5   :  { %v2779_v52 = vadd.f32 %v5401_v15, %v2778_v13 }
 0x3a6   :  { %3130 = vst [vmem:[#allocation14 + $0x248] sm:$0xff] %v2784_v31 }
 0x3a7   :  { %3129 = vst [vmem:[#allocation14 + $0x240] sm:$0xff] %v2779_v52  ;;  %v4325_v46 = vpop.f32.mrb[138].mxu0 }
 0x3a8   :  { %v2794_v3 = vadd.f32 %v4325_v46, %v5401_v15  ;;  %v2788_v43 = vpop.f32.mrb[139].mxu0 }
 0x3a9   :  { %v2789_v58 = vadd.f32 %v5401_v15, %v2788_v43 }
 0x3aa   :  { %3132 = vst [vmem:[#allocation14 + $0x258] sm:$0xff] %v2794_v3 }
 0x3ab   :  { %3131 = vst [vmem:[#allocation14 + $0x250] sm:$0xff] %v2789_v58  ;;  %v4328_v24 = vpop.f32.mrb[140].mxu0 }
 0x3ac   :  { %v2804_v59 = vadd.f32 %v4328_v24, %v5401_v15  ;;  %v2798_v44 = vpop.f32.mrb[141].mxu0 }
 0x3ad   :  { %v2799_v55 = vadd.f32 %v5401_v15, %v2798_v44 }
 0x3ae   :  { %3134 = vst [vmem:[#allocation14 + $0x268] sm:$0xff] %v2804_v59 }
 0x3af   :  { %3133 = vst [vmem:[#allocation14 + $0x260] sm:$0xff] %v2799_v55  ;;  %v4331_v21 = vpop.f32.mrb[142].mxu0 }
 0x3b0   :  { %v2814_v9 = vadd.f32 %v4331_v21, %v5401_v15  ;;  %v2808_v4 = vpop.f32.mrb[143].mxu0 }
 0x3b1   :  { %v2809_v33 = vadd.f32 %v5401_v15, %v2808_v4 }
 0x3b2   :  { %3136 = vst [vmem:[#allocation14 + $0x278] sm:$0xff] %v2814_v9 }
 0x3b3   :  { %3135 = vst [vmem:[#allocation14 + $0x270] sm:$0xff] %v2809_v33  ;;  %v4334_v32 = vpop.f32.mrb[144].mxu0 }
 0x3b4   :  { %v2824_v27 = vadd.f32 %v4334_v32, %v5401_v15  ;;  %v2818_v36 = vpop.f32.mrb[145].mxu0 }
 0x3b5   :  { %v2819_v22 = vadd.f32 %v5401_v15, %v2818_v36 }
 0x3b6   :  { %3138 = vst [vmem:[#allocation14 + $0x288] sm:$0xff] %v2824_v27 }
 0x3b7   :  { %3137 = vst [vmem:[#allocation14 + $0x280] sm:$0xff] %v2819_v22  ;;  %v4337_v23 = vpop.f32.mrb[146].mxu0 }
 0x3b8   :  { %v2834_v29 = vadd.f32 %v4337_v23, %v5401_v15  ;;  %v2828_v42 = vpop.f32.mrb[147].mxu0 }
 0x3b9   :  { %v2829_v40 = vadd.f32 %v5401_v15, %v2828_v42 }
 0x3ba   :  { %3140 = vst [vmem:[#allocation14 + $0x298] sm:$0xff] %v2834_v29 }
 0x3bb   :  { %3139 = vst [vmem:[#allocation14 + $0x290] sm:$0xff] %v2829_v40  ;;  %v4340_v61 = vpop.f32.mrb[148].mxu0 }
 0x3bc   :  { %v2844_v14 = vadd.f32 %v4340_v61, %v5401_v15  ;;  %v2838_v37 = vpop.f32.mrb[149].mxu0 }
 0x3bd   :  { %v2839_v41 = vadd.f32 %v5401_v15, %v2838_v37 }
 0x3be   :  { %3142 = vst [vmem:[#allocation14 + $0x2a8] sm:$0xff] %v2844_v14 }
 0x3bf   :  { %3141 = vst [vmem:[#allocation14 + $0x2a0] sm:$0xff] %v2839_v41  ;;  %v4343_v18 = vpop.f32.mrb[150].mxu0 }
 0x3c0   :  { %v2854_v57 = vadd.f32 %v4343_v18, %v5401_v15  ;;  %v2848_v48 = vpop.f32.mrb[151].mxu0 }
 0x3c1   :  { %v2849_v51 = vadd.f32 %v5401_v15, %v2848_v48 }
 0x3c2   :  { %3144 = vst [vmem:[#allocation14 + $0x2b8] sm:$0xff] %v2854_v57 }
 0x3c3   :  { %3143 = vst [vmem:[#allocation14 + $0x2b0] sm:$0xff] %v2849_v51  ;;  %v4346_v38 = vpop.f32.mrb[152].mxu0 }
 0x3c4   :  { %v2864_v12 = vadd.f32 %v4346_v38, %v5401_v15  ;;  %v2858_v30 = vpop.f32.mrb[153].mxu0 }
 0x3c5   :  { %v2859_v6 = vadd.f32 %v5401_v15, %v2858_v30 }
 0x3c6   :  { %3146 = vst [vmem:[#allocation14 + $0x2c8] sm:$0xff] %v2864_v12 }
 0x3c7   :  { %3145 = vst [vmem:[#allocation14 + $0x2c0] sm:$0xff] %v2859_v6  ;;  %v4349_v53 = vpop.f32.mrb[154].mxu0 }
 0x3c8   :  { %v2874_v50 = vadd.f32 %v4349_v53, %v5401_v15  ;;  %v2868_v54 = vpop.f32.mrb[155].mxu0 }
 0x3c9   :  { %v2869_v34 = vadd.f32 %v5401_v15, %v2868_v54 }
 0x3ca   :  { %3148 = vst [vmem:[#allocation14 + $0x2d8] sm:$0xff] %v2874_v50 }
 0x3cb   :  { %3147 = vst [vmem:[#allocation14 + $0x2d0] sm:$0xff] %v2869_v34  ;;  %v4352_v45 = vpop.f32.mrb[156].mxu0 }
 0x3cc   :  { %v2884_v28 = vadd.f32 %v4352_v45, %v5401_v15  ;;  %v2878_v49 = vpop.f32.mrb[157].mxu0 }
 0x3cd   :  { %v2879_v56 = vadd.f32 %v5401_v15, %v2878_v49 }
 0x3ce   :  { %3150 = vst [vmem:[#allocation14 + $0x2e8] sm:$0xff] %v2884_v28 }
 0x3cf   :  { %3149 = vst [vmem:[#allocation14 + $0x2e0] sm:$0xff] %v2879_v56  ;;  %v4355_v0 = vpop.f32.mrb[158].mxu0 }
 0x3d0   :  { %v2894_v47 = vadd.f32 %v4355_v0, %v5401_v15  ;;  %v2888_v63 = vpop.f32.mrb[159].mxu0 }
 0x3d1   :  { %v2889_v60 = vadd.f32 %v5401_v15, %v2888_v63 }
 0x3d2   :  { %3152 = vst [vmem:[#allocation14 + $0x2f8] sm:$0xff] %v2894_v47 }
 0x3d3   :  { %3151 = vst [vmem:[#allocation14 + $0x2f0] sm:$0xff] %v2889_v60  ;;  %v4358_v5 = vpop.f32.mrb[160].mxu0 }
 0x3d4   :  { %v2904_v8 = vadd.f32 %v4358_v5, %v5401_v15  ;;  %v2898_v10 = vpop.f32.mrb[161].mxu0 }
 0x3d5   :  { %v2899_v39 = vadd.f32 %v5401_v15, %v2898_v10 }
 0x3d6   :  { %3154 = vst [vmem:[#allocation14 + $0x308] sm:$0xff] %v2904_v8 }
 0x3d7   :  { %3153 = vst [vmem:[#allocation14 + $0x300] sm:$0xff] %v2899_v39  ;;  %v4361_v62 = vpop.f32.mrb[162].mxu0 }
 0x3d8   :  { %v2914_v7 = vadd.f32 %v4361_v62, %v5401_v15  ;;  %v2908_v2 = vpop.f32.mrb[163].mxu0 }
 0x3d9   :  { %v2909_v26 = vadd.f32 %v5401_v15, %v2908_v2 }
 0x3da   :  { %3156 = vst [vmem:[#allocation14 + $0x318] sm:$0xff] %v2914_v7 }
 0x3db   :  { %3155 = vst [vmem:[#allocation14 + $0x310] sm:$0xff] %v2909_v26  ;;  %v4364_v20 = vpop.f32.mrb[164].mxu0 }
 0x3dc   :  { %v2924_v25 = vadd.f32 %v4364_v20, %v5401_v15  ;;  %v2918_v11 = vpop.f32.mrb[165].mxu0 }
 0x3dd   :  { %v2919_v17 = vadd.f32 %v5401_v15, %v2918_v11 }
 0x3de   :  { %3158 = vst [vmem:[#allocation14 + $0x328] sm:$0xff] %v2924_v25 }
 0x3df   :  { %3157 = vst [vmem:[#allocation14 + $0x320] sm:$0xff] %v2919_v17  ;;  %v4367_v1 = vpop.f32.mrb[166].mxu0 }
 0x3e0   :  { %v2934_v16 = vadd.f32 %v4367_v1, %v5401_v15  ;;  %v2928_v35 = vpop.f32.mrb[167].mxu0 }
 0x3e1   :  { %v2929_v19 = vadd.f32 %v5401_v15, %v2928_v35 }
 0x3e2   :  { %3160 = vst [vmem:[#allocation14 + $0x338] sm:$0xff] %v2934_v16 }
 0x3e3   :  { %3159 = vst [vmem:[#allocation14 + $0x330] sm:$0xff] %v2929_v19  ;;  %v4370_v31 = vpop.f32.mrb[168].mxu0 }
 0x3e4   :  { %v2944_v13 = vadd.f32 %v4370_v31, %v5401_v15  ;;  %v2938_v52 = vpop.f32.mrb[169].mxu0 }
 0x3e5   :  { %v2939_v46 = vadd.f32 %v5401_v15, %v2938_v52 }
 0x3e6   :  { %3162 = vst [vmem:[#allocation14 + $0x348] sm:$0xff] %v2944_v13 }
 0x3e7   :  { %3161 = vst [vmem:[#allocation14 + $0x340] sm:$0xff] %v2939_v46  ;;  %v4373_v3 = vpop.f32.mrb[170].mxu0 }
 0x3e8   :  { %v2954_v43 = vadd.f32 %v4373_v3, %v5401_v15  ;;  %v2948_v58 = vpop.f32.mrb[171].mxu0 }
 0x3e9   :  { %v2949_v24 = vadd.f32 %v5401_v15, %v2948_v58 }
 0x3ea   :  { %3164 = vst [vmem:[#allocation14 + $0x358] sm:$0xff] %v2954_v43 }
 0x3eb   :  { %3163 = vst [vmem:[#allocation14 + $0x350] sm:$0xff] %v2949_v24  ;;  %v4376_v59 = vpop.f32.mrb[172].mxu0 }
 0x3ec   :  { %v2964_v44 = vadd.f32 %v4376_v59, %v5401_v15  ;;  %v2958_v55 = vpop.f32.mrb[173].mxu0 }
 0x3ed   :  { %v2959_v21 = vadd.f32 %v5401_v15, %v2958_v55 }
 0x3ee   :  { %3166 = vst [vmem:[#allocation14 + $0x368] sm:$0xff] %v2964_v44 }
 0x3ef   :  { %3165 = vst [vmem:[#allocation14 + $0x360] sm:$0xff] %v2959_v21  ;;  %v4379_v9 = vpop.f32.mrb[174].mxu0 }
 0x3f0   :  { %v2974_v4 = vadd.f32 %v4379_v9, %v5401_v15  ;;  %v2968_v33 = vpop.f32.mrb[175].mxu0 }
 0x3f1   :  { %v2969_v32 = vadd.f32 %v5401_v15, %v2968_v33 }
 0x3f2   :  { %3168 = vst [vmem:[#allocation14 + $0x378] sm:$0xff] %v2974_v4 }
 0x3f3   :  { %3167 = vst [vmem:[#allocation14 + $0x370] sm:$0xff] %v2969_v32  ;;  %v4382_v27 = vpop.f32.mrb[176].mxu0 }
 0x3f4   :  { %v2984_v36 = vadd.f32 %v4382_v27, %v5401_v15  ;;  %v2978_v22 = vpop.f32.mrb[177].mxu0 }
 0x3f5   :  { %v2979_v23 = vadd.f32 %v5401_v15, %v2978_v22 }
 0x3f6   :  { %3170 = vst [vmem:[#allocation14 + $0x388] sm:$0xff] %v2984_v36 }
 0x3f7   :  { %3169 = vst [vmem:[#allocation14 + $0x380] sm:$0xff] %v2979_v23  ;;  %v4385_v29 = vpop.f32.mrb[178].mxu0 }
 0x3f8   :  { %v2994_v42 = vadd.f32 %v4385_v29, %v5401_v15  ;;  %v2988_v40 = vpop.f32.mrb[179].mxu0 }
 0x3f9   :  { %v2989_v61 = vadd.f32 %v5401_v15, %v2988_v40 }
 0x3fa   :  { %3172 = vst [vmem:[#allocation14 + $0x398] sm:$0xff] %v2994_v42 }
 0x3fb   :  { %3171 = vst [vmem:[#allocation14 + $0x390] sm:$0xff] %v2989_v61  ;;  %v4388_v14 = vpop.f32.mrb[180].mxu0 }
 0x3fc   :  { %v3004_v37 = vadd.f32 %v4388_v14, %v5401_v15  ;;  %v2998_v41 = vpop.f32.mrb[181].mxu0 }
 0x3fd   :  { %v2999_v18 = vadd.f32 %v5401_v15, %v2998_v41 }
 0x3fe   :  { %3174 = vst [vmem:[#allocation14 + $0x3a8] sm:$0xff] %v3004_v37 }
 0x3ff   :  { %3173 = vst [vmem:[#allocation14 + $0x3a0] sm:$0xff] %v2999_v18  ;;  %v4391_v57 = vpop.f32.mrb[182].mxu0 }
 0x400   :  { %v3014_v48 = vadd.f32 %v4391_v57, %v5401_v15  ;;  %v3008_v51 = vpop.f32.mrb[183].mxu0 }
 0x401   :  { %v3009_v38 = vadd.f32 %v5401_v15, %v3008_v51 }
 0x402   :  { %3176 = vst [vmem:[#allocation14 + $0x3b8] sm:$0xff] %v3014_v48 }
 0x403   :  { %3175 = vst [vmem:[#allocation14 + $0x3b0] sm:$0xff] %v3009_v38  ;;  %v4394_v12 = vpop.f32.mrb[184].mxu0 }
 0x404   :  { %v3024_v30 = vadd.f32 %v4394_v12, %v5401_v15  ;;  %v3018_v6 = vpop.f32.mrb[185].mxu0 }
 0x405   :  { %v3019_v53 = vadd.f32 %v5401_v15, %v3018_v6 }
 0x406   :  { %3178 = vst [vmem:[#allocation14 + $0x3c8] sm:$0xff] %v3024_v30 }
 0x407   :  { %3177 = vst [vmem:[#allocation14 + $0x3c0] sm:$0xff] %v3019_v53  ;;  %v4397_v50 = vpop.f32.mrb[186].mxu0 }
 0x408   :  { %v3034_v54 = vadd.f32 %v4397_v50, %v5401_v15  ;;  %v3028_v34 = vpop.f32.mrb[187].mxu0 }
 0x409   :  { %v3029_v45 = vadd.f32 %v5401_v15, %v3028_v34 }
 0x40a   :  { %3180 = vst [vmem:[#allocation14 + $0x3d8] sm:$0xff] %v3034_v54 }
 0x40b   :  { %3179 = vst [vmem:[#allocation14 + $0x3d0] sm:$0xff] %v3029_v45  ;;  %v4400_v28 = vpop.f32.mrb[188].mxu0 }
 0x40c   :  { %v3044_v49 = vadd.f32 %v4400_v28, %v5401_v15  ;;  %v3038_v56 = vpop.f32.mrb[189].mxu0 }
 0x40d   :  { %v3039_v0 = vadd.f32 %v5401_v15, %v3038_v56 }
 0x40e   :  { %3182 = vst [vmem:[#allocation14 + $0x3e8] sm:$0xff] %v3044_v49 }
 0x40f   :  { %3181 = vst [vmem:[#allocation14 + $0x3e0] sm:$0xff] %v3039_v0  ;;  %v4403_v47 = vpop.f32.mrb[190].mxu0 }
 0x410   :  { %v3054_v63 = vadd.f32 %v4403_v47, %v5401_v15  ;;  %v3048_v60 = vpop.f32.mrb[191].mxu0 }
 0x411   :  { %v3049_v5 = vadd.f32 %v5401_v15, %v3048_v60 }
 0x412   :  { %3184 = vst [vmem:[#allocation14 + $0x3f8] sm:$0xff] %v3054_v63 }
 0x413   :  { %3183 = vst [vmem:[#allocation14 + $0x3f0] sm:$0xff] %v3049_v5 }
 0x414   :  { %3189 = vsyncadd [#allocation4], 16256  ;;  %s4687_s6 = smov [#allocation14]  }
 0x415   :  { %s3190_s30 = sshll.u32 %s4687_s6, 4  ;;  %s3191_s30 = int_to_ptr.vmem [resolvable:$true] %s3190_s30 }
 0x416   :  { %s4646_s17 = scalar_lea.vmem %s3191_s30, 128  ;;  %s4650_s18 = scalar_lea.vmem %s3191_s30, 16384 }
 0x417   :  { %p4647_p0 = scmp.ne.s32.totalorder %s3191_s30, %s4646_s17  ;;  %p4651_p1 = scmp.lt.s32.totalorder %s3191_s30, %s3191_s30 }
 0x418   :  { %p4652_p2 = scmp.lt.s32.totalorder %s4650_s18, %s4646_s17 }
 0x41a   :  { %p4653_p3 = por %p4652_p2, %p4651_p1 }
 0x41c   :  { %p4654_p4 = pnand %p4653_p3, %p4647_p0 }
 0x41e   :  { %4657 = shalt.err (!%p4654_p4)
}
 0x41f   :  { %s4658_s21 = scalar_lea.hbm %s5575_s7, 128 }
 0x420   :  { %p4659_p5 = scmp.ne.s32.totalorder %s5575_s7, %s4658_s21  ;;  %p4662_p6 = scmp.lt.u32.totalorder %s4658_s21, %s5575_s7 }
 0x422   :  { %p4664_p7 = pnand %p4662_p6, %p4659_p5 }
 0x424   :  { %4667 = shalt.err (!%p4664_p7)
}
 0x425   :  { %3196 = dma.vmem_to_hbm [thread:$0]  %s3191_s30, 128, %s5575_s7, [#allocation4], %s4680_s13, %s4680_s13, %s4681_s14  }
 0x426   :  { %4676 = dma.done.wait [#allocation4], 16384  }
 0x427   :  { %4677 = vsyncadd [#allocation4], 4294950912 }
 0x428   :  { %3200 = vsyncpa [#allocation3], 1 }
 0x429   :  { %3201 = vsyncpa [#allocation6], 1 }
 0x42a   :  { %3202 = vsyncpa [#allocation9], 1 }
 0x42b   :  { %3203 = vsyncpa [#allocation12], 1 }
 0x42c   :  { %3204 = vsyncpa [#allocation4], 1 }

</bundles_post_ra>
